<compile_context>
chip_gen: v5e
topology: v5e:2x2
jax: 0.10.0
libtpu: 0.0.40
codegen_flags: <defaults>
</compile_context>

<pallas_src>
import functools
import math

import jax
import jax.numpy as jnp
from jax.experimental import pallas as pl
from jax.experimental.pallas import tpu as pltpu

# ----------------------------- model config (small, consistent with module) ------------------
B = 2            # batch
IN_CH = 4        # channels
IMG = 16         # img_size
PATCH = 4        # patch_size
EMBED = 32       # embed_dim
DEPTH = 2        # depth
HEADS = 4        # n_heads
DIM_HEAD = 8     # dim_head
MLP = 64         # mlp_dim
INNER = HEADS * DIM_HEAD           # 32
N_PATCH = (IMG // PATCH) ** 2      # 16
SEQ = N_PATCH + 1                  # 17 (cls token)
SEQ_PAD = 32                       # pad 17 -> 32 (sublane multiple; HEADS*SEQ_PAD = 128 lanes)
PATCH_DIM = PATCH * PATCH * IN_CH  # 64
ATTN_LANES = HEADS * SEQ_PAD       # 128


# ----------------------------- fused encoder kernel ------------------------------------------
def _encoder_kernel(
    patches_ref,      # (1, SEQ_PAD, PATCH_DIM) f32 — row 0 and rows >= SEQ are zero
    patch_w_ref,      # (PATCH_DIM, EMBED) bf16
    bias_base_ref,    # (SEQ_PAD, EMBED) f32: row0 = cls+pos0, rows 1..16 = patch_b+pos, pad = 0
    ln1_g_ref, ln1_b_ref,          # (DEPTH, 1, EMBED) f32
    wq_ref, wk_ref, wv_ref,        # (DEPTH, HEADS, EMBED, DIM_HEAD) bf16 (scale folded into wq)
    wout_ref,                      # (DEPTH, HEADS, DIM_HEAD, EMBED) bf16
    out_b_ref,                     # (DEPTH, 1, EMBED) f32
    ln2_g_ref, ln2_b_ref,          # (DEPTH, 1, EMBED) f32
    ff_w1_ref,                     # (DEPTH, EMBED, MLP) bf16
    ff_b1_ref,                     # (DEPTH, 1, MLP) f32
    ff_w2_ref,                     # (DEPTH, MLP, EMBED) bf16
    ff_b2_ref,                     # (DEPTH, 1, EMBED) f32
    lnf_g_ref, lnf_b_ref,          # (1, EMBED) f32
    x_out_ref,                     # (1, SEQ_PAD, EMBED) f32
    *attn_refs,                    # optional: (1, DEPTH, SEQ_PAD, HEADS*SEQ_PAD) f32
    store_attn: bool,
):
    bf16 = jnp.bfloat16

    def layernorm(x, g, b):
        mu = jnp.mean(x, axis=-1, keepdims=True)
        var = jnp.mean(jnp.square(x - mu), axis=-1, keepdims=True)
        return (x - mu) * jax.lax.rsqrt(var + 1e-5) * g + b   # eps=1e-5 (PyTorch default)

    # additive key-padding mask: padded key columns (>= SEQ) get -1e30 before softmax
    col_ids = jax.lax.broadcasted_iota(jnp.int32, (SEQ_PAD, SEQ_PAD), 1)
    key_mask = jnp.where(col_ids < SEQ, 0.0, -1e30).astype(jnp.float32)   # (S, S), bcasts over H

    # patch embedding + cls token + positional embedding (zero patch rows pick up only bias_base)
    x = (
        jnp.dot(patches_ref[0].astype(bf16), patch_w_ref[...],
                preferred_element_type=jnp.float32)
        + bias_base_ref[...]
    )  # (SEQ_PAD, EMBED) f32

    dn_proj = (((2,), (1,)), ((0,), (0,)))   # (H,S,K) x (H,K,N) -> (H,S,N)
    dn_qk = (((2,), (2,)), ((0,), (0,)))     # (H,S,d) x (H,T,d) -> (H,S,T)

    for l in range(DEPTH):
        # ---- attention block: x = x + Attn(LN(x)) ----
        xn = layernorm(x, ln1_g_ref[l], ln1_b_ref[l])                       # f32 (S, E)
        xn_h = jnp.broadcast_to(xn.astype(bf16)[None], (HEADS, SEQ_PAD, EMBED))

        q = jax.lax.dot_general(xn_h, wq_ref[l], dn_proj,
                                preferred_element_type=jnp.float32)         # (H, S, dh); scale folded
        k = jax.lax.dot_general(xn_h, wk_ref[l], dn_proj,
                                preferred_element_type=jnp.float32)         # (H, S, dh)
        v = jax.lax.dot_general(xn_h, wv_ref[l], dn_proj,
                                preferred_element_type=jnp.float32)         # (H, S, dh)

        s = jax.lax.dot_general(q, k, dn_qk,
                                preferred_element_type=jnp.float32) + key_mask   # (H, S, S)
        s = s - jnp.max(s, axis=-1, keepdims=True)
        e = jnp.exp(s)
        # exact divide (not approx reciprocal) so returned attention rows sum to 1
        p = e / jnp.sum(e, axis=-1, keepdims=True)                          # (H, S, S)

        if store_attn:
            # lane-dense store: pack all heads along lanes -> one (SEQ_PAD, 128) slab per layer
            slab = jnp.concatenate([p[h] for h in range(HEADS)], axis=-1)   # (S, H*S) = (32, 128)
            attn_refs[0][0, l] = slab

        ctx = jax.lax.dot_general(p, v, dn_proj,
                                  preferred_element_type=jnp.float32)       # (H, S, dh)
        # output projection: one batched MXU op + cheap sum over the head axis
        proj_h = jax.lax.dot_general(ctx.astype(bf16), wout_ref[l], dn_proj,
                                     preferred_element_type=jnp.float32)    # (H, S, E)
        x = x + jnp.sum(proj_h, axis=0) + out_b_ref[l]

        # ---- feed-forward block: x = x + FFN(LN(x)) ----
        xn2 = layernorm(x, ln2_g_ref[l], ln2_b_ref[l])
        h1 = jnp.dot(xn2.astype(bf16), ff_w1_ref[l],
                     preferred_element_type=jnp.float32) + ff_b1_ref[l]
        # TODO(synk): tanh-approx GELU (EUP tanh) used in-kernel instead of exact erf nn.GELU;
        #             deviation is ~1e-3 relative, documented per review.
        h1 = jax.nn.gelu(h1, approximate=True)
        x = x + jnp.dot(h1.astype(bf16), ff_w2_ref[l],
                        preferred_element_type=jnp.float32) + ff_b2_ref[l]

    # final LayerNorm
    x_out_ref[0] = layernorm(x, lnf_g_ref[...], lnf_b_ref[...])


def _full(nd):
    return lambda b: (0,) * nd


def _fused_encoder_call(Bn, store_attn, patches_pad, patch_w, bias_base,
                        ln1_g, ln1_b, wq, wk, wv, wout, out_b,
                        ln2_g, ln2_b, ff_w1, ff_b1, ff_w2, ff_b2, lnf_g, lnf_b):
    in_specs = [
        pl.BlockSpec((1, SEQ_PAD, PATCH_DIM), lambda b: (b, 0, 0)),          # patches
        pl.BlockSpec((PATCH_DIM, EMBED), _full(2)),                          # patch_w
        pl.BlockSpec((SEQ_PAD, EMBED), _full(2)),                            # bias_base
        pl.BlockSpec((DEPTH, 1, EMBED), _full(3)),                           # ln1_g
        pl.BlockSpec((DEPTH, 1, EMBED), _full(3)),                           # ln1_b
        pl.BlockSpec((DEPTH, HEADS, EMBED, DIM_HEAD), _full(4)),             # wq
        pl.BlockSpec((DEPTH, HEADS, EMBED, DIM_HEAD), _full(4)),             # wk
        pl.BlockSpec((DEPTH, HEADS, EMBED, DIM_HEAD), _full(4)),             # wv
        pl.BlockSpec((DEPTH, HEADS, DIM_HEAD, EMBED), _full(4)),             # wout
        pl.BlockSpec((DEPTH, 1, EMBED), _full(3)),                           # out_b
        pl.BlockSpec((DEPTH, 1, EMBED), _full(3)),                           # ln2_g
        pl.BlockSpec((DEPTH, 1, EMBED), _full(3)),                           # ln2_b
        pl.BlockSpec((DEPTH, EMBED, MLP), _full(3)),                         # ff_w1
        pl.BlockSpec((DEPTH, 1, MLP), _full(3)),                             # ff_b1
        pl.BlockSpec((DEPTH, MLP, EMBED), _full(3)),                         # ff_w2
        pl.BlockSpec((DEPTH, 1, EMBED), _full(3)),                           # ff_b2
        pl.BlockSpec((1, EMBED), _full(2)),                                  # lnf_g
        pl.BlockSpec((1, EMBED), _full(2)),                                  # lnf_b
    ]
    x_spec = pl.BlockSpec((1, SEQ_PAD, EMBED), lambda b: (b, 0, 0))
    x_shape = jax.ShapeDtypeStruct((Bn, SEQ_PAD, EMBED), jnp.float32)
    if store_attn:
        # batch-major + lane-dense attention maps: one contiguous slab per grid step
        out_specs = (x_spec,
                     pl.BlockSpec((1, DEPTH, SEQ_PAD, ATTN_LANES), lambda b: (b, 0, 0, 0)))
        out_shape = (x_shape,
                     jax.ShapeDtypeStruct((Bn, DEPTH, SEQ_PAD, ATTN_LANES), jnp.float32))
        out_shapes_list = list(out_shape)
    else:
        out_specs = x_spec
        out_shape = x_shape
        out_shapes_list = [x_shape]

    args = (patches_pad, patch_w, bias_base, ln1_g, ln1_b, wq, wk, wv, wout, out_b,
            ln2_g, ln2_b, ff_w1, ff_b1, ff_w2, ff_b2, lnf_g, lnf_b)

    # rough cost hints for the XLA scheduler — pure-Python int arithmetic (no traced values)
    flops_b = 2 * SEQ_PAD * PATCH_DIM * EMBED + DEPTH * (
        3 * 2 * SEQ_PAD * EMBED * INNER                      # q / k / v projections
        + 2 * 2 * HEADS * SEQ_PAD * SEQ_PAD * DIM_HEAD       # scores + context
        + 2 * SEQ_PAD * INNER * EMBED                        # output projection
        + 2 * 2 * SEQ_PAD * EMBED * MLP                      # FFN
    )
    trans_b = DEPTH * (HEADS * SEQ_PAD * SEQ_PAD + SEQ_PAD * MLP)
    in_bytes = sum(int(a.size) * int(a.dtype.itemsize) for a in args)       # static metadata only
    out_bytes = sum(math.prod(s.shape) * jnp.dtype(s.dtype).itemsize for s in out_shapes_list)
    cost = pl.CostEstimate(flops=Bn * flops_b, transcendentals=Bn * trans_b,
                           bytes_accessed=in_bytes + out_bytes)

    res = pl.pallas_call(
        functools.partial(_encoder_kernel, store_attn=store_attn),
        out_shape=out_shape,
        grid=(Bn,),
        in_specs=in_specs,
        out_specs=out_specs,
        compiler_params=pltpu.CompilerParams(
            # v7x: split the batch across the 2 TensorCores; no-op (one extra cheap grid step)
            # on single-TC v5e/v6e.
            dimension_semantics=("parallel",),
        ),
        cost_estimate=cost,
    )(*args)

    if store_attn:
        return res
    return res, None


# ----------------------------- parameters ----------------------------------------------------
def init_params(key):
    ks = list(jax.random.split(key, 12))
    nk = iter(ks)

    def w(shape, scale=0.02):
        return scale * jax.random.normal(next(nk), shape, dtype=jnp.float32)

    return {
        "patch_w": w((PATCH_DIM, EMBED)),
        "patch_b": jnp.zeros((EMBED,), jnp.float32),
        "cls_token": w((1, 1, EMBED)),
        "pos_emb": w((1, SEQ, EMBED)),
        "lnf_g": jnp.ones((EMBED,), jnp.float32),
        "lnf_b": jnp.zeros((EMBED,), jnp.float32),
        # per-layer params stacked along a leading DEPTH axis
        "ln1_g": jnp.ones((DEPTH, EMBED), jnp.float32),
        "ln1_b": jnp.zeros((DEPTH, EMBED), jnp.float32),
        "qkv_w": w((DEPTH, EMBED, 3 * INNER)),          # Linear(dim, inner*3, bias=False)
        "out_w": w((DEPTH, INNER, EMBED)),              # to_out Linear(inner, dim)
        "out_b": jnp.zeros((DEPTH, EMBED), jnp.float32),
        "ln2_g": jnp.ones((DEPTH, EMBED), jnp.float32),
        "ln2_b": jnp.zeros((DEPTH, EMBED), jnp.float32),
        "ff_w1": w((DEPTH, EMBED, MLP)),
        "ff_b1": jnp.zeros((DEPTH, MLP), jnp.float32),
        "ff_w2": w((DEPTH, MLP, EMBED)),
        "ff_b2": jnp.zeros((DEPTH, EMBED), jnp.float32),
    }


# ----------------------------- forward pass ---------------------------------------------------
def image_transformer_encoder_forward(img, params, task_idx: int = 0, return_attn: bool = True):
    """img: (B, C, H, W) float32 (NCHW, as PyTorch). Returns (x, cls_output, weights_list, l_aux)."""
    del task_idx  # plain-ViT path ignores the task index
    Bn, C, H, W = img.shape
    p = PATCH
    nh, nw = H // p, W // p
    bf16 = jnp.bfloat16

    # rearrange 'b c (h p1) (w p2) -> b (h w) (p1 p2 c)'   (plain-JAX layout plumbing)
    patches = img.reshape(Bn, C, nh, p, nw, p).transpose(0, 2, 4, 3, 5, 1)
    patches = patches.reshape(Bn, nh * nw, p * p * C)

    # pad token axis to SEQ_PAD: row 0 reserved for cls, rows >= SEQ are zero padding
    patches_pad = jnp.zeros((Bn, SEQ_PAD, PATCH_DIM), jnp.float32)
    patches_pad = patches_pad.at[:, 1:1 + N_PATCH, :].set(patches)

    # bias_base: row0 = cls_token + pos[0]; rows 1..16 = patch_b + pos[1..16]; pad rows = 0
    pos = params["pos_emb"][0]                                   # (SEQ, EMBED)
    bias_base = jnp.zeros((SEQ_PAD, EMBED), jnp.float32)
    bias_base = bias_base.at[0].set(params["cls_token"][0, 0] + pos[0])
    bias_base = bias_base.at[1:SEQ].set(params["patch_b"][None, :] + pos[1:])

    # --- one-time weight constant folds: per-head layout, scale into Q, bf16 MXU operands ---
    scale = float(DIM_HEAD) ** -0.5
    qkv_w = params["qkv_w"]                                      # (DEPTH, EMBED, 3*INNER)

    def per_head(wc):                                            # (D,E,INNER) -> (D,H,E,dh)
        return wc.reshape(DEPTH, EMBED, HEADS, DIM_HEAD).transpose(0, 2, 1, 3)

    wq = per_head(qkv_w[:, :, :INNER] * scale).astype(bf16)
    wk = per_head(qkv_w[:, :, INNER:2 * INNER]).astype(bf16)
    wv = per_head(qkv_w[:, :, 2 * INNER:]).astype(bf16)
    wout = params["out_w"].reshape(DEPTH, HEADS, DIM_HEAD, EMBED).astype(bf16)

    x_out, attn_raw = _fused_encoder_call(
        Bn, return_attn, patches_pad, params["patch_w"].astype(bf16), bias_base,
        params["ln1_g"].reshape(DEPTH, 1, EMBED), params["ln1_b"].reshape(DEPTH, 1, EMBED),
        wq, wk, wv, wout, params["out_b"].reshape(DEPTH, 1, EMBED),
        params["ln2_g"].reshape(DEPTH, 1, EMBED), params["ln2_b"].reshape(DEPTH, 1, EMBED),
        params["ff_w1"].astype(bf16), params["ff_b1"].reshape(DEPTH, 1, MLP),
        params["ff_w2"].astype(bf16), params["ff_b2"].reshape(DEPTH, 1, EMBED),
        params["lnf_g"].reshape(1, EMBED), params["lnf_b"].reshape(1, EMBED),
    )

    cls_output = x_out[:, 0]                 # (B, D)
    tokens = x_out[:, 1:SEQ]                 # (B, N_PATCH, D)

    if return_attn:
        # (B, DEPTH, S, H*S) -> (B, DEPTH, H, S, S), drop padded rows/cols
        attn = attn_raw.reshape(Bn, DEPTH, SEQ_PAD, HEADS, SEQ_PAD).transpose(0, 1, 3, 2, 4)
        weights_list = [attn[:, l, :, :SEQ, :SEQ] for l in range(DEPTH)]   # each (B, H, S, S)
    else:
        weights_list = []

    l_aux = jnp.float32(0.0)                 # plain (non-MoE) ViT has no load-balancing loss
    return tokens, cls_output, weights_list, l_aux


# ----------------------------- main -----------------------------------------------------------
if __name__ == "__main__":
    key = jax.random.PRNGKey(0)
    pkey, ikey = jax.random.split(key)
    params = init_params(pkey)
    img = jax.random.normal(ikey, (B, IN_CH, IMG, IMG), dtype=jnp.float32)

    fwd = jax.jit(image_transformer_encoder_forward, static_argnums=(2, 3))
    x, cls_out, weights_list, l_aux = fwd(img, params, 0, True)
    jax.block_until_ready((x, cls_out, weights_list, l_aux))

    assert x.shape == (B, N_PATCH, EMBED)
    assert cls_out.shape == (B, EMBED)
    assert len(weights_list) == DEPTH
    assert weights_list[0].shape == (B, HEADS, SEQ, SEQ)
    assert bool(jnp.all(jnp.isfinite(x)))
    assert bool(jnp.all(jnp.isfinite(weights_list[0])))
    # exact-divide softmax: real rows of the attention maps sum to 1
    assert bool(jnp.allclose(weights_list[0].sum(-1), 1.0, atol=1e-3))
    print("KERNEL_OK")
</pallas_src>

<mosaic_0001>
module attributes {stable_mosaic.version = 11 : i64} {
  func.func @_encoder_kernel(%arg0: i32, %arg1: memref<1x32x64xf32, #tpu.memory_space<vmem>>, %arg2: memref<64x32xbf16, #tpu.memory_space<vmem>>, %arg3: memref<32x32xf32, #tpu.memory_space<vmem>>, %arg4: memref<2x1x32xf32, #tpu.memory_space<vmem>>, %arg5: memref<2x1x32xf32, #tpu.memory_space<vmem>>, %arg6: memref<2x4x32x8xbf16, #tpu.memory_space<vmem>>, %arg7: memref<2x4x32x8xbf16, #tpu.memory_space<vmem>>, %arg8: memref<2x4x32x8xbf16, #tpu.memory_space<vmem>>, %arg9: memref<2x4x8x32xbf16, #tpu.memory_space<vmem>>, %arg10: memref<2x1x32xf32, #tpu.memory_space<vmem>>, %arg11: memref<2x1x32xf32, #tpu.memory_space<vmem>>, %arg12: memref<2x1x32xf32, #tpu.memory_space<vmem>>, %arg13: memref<2x32x64xbf16, #tpu.memory_space<vmem>>, %arg14: memref<2x1x64xf32, #tpu.memory_space<vmem>>, %arg15: memref<2x64x32xbf16, #tpu.memory_space<vmem>>, %arg16: memref<2x1x32xf32, #tpu.memory_space<vmem>>, %arg17: memref<1x32xf32, #tpu.memory_space<vmem>>, %arg18: memref<1x32xf32, #tpu.memory_space<vmem>>, %arg19: memref<1x32x32xf32, #tpu.memory_space<vmem>>, %arg20: memref<1x2x32x128xf32, #tpu.memory_space<vmem>>) attributes {dimension_semantics = [#tpu.dimension_semantics<parallel>], iteration_bounds = array<i64: 2>, scalar_prefetch = 0 : i64, scratch_operands = 0 : i64, tpu.core_type = #tpu.core_type<tc>, window_params = [{transform_indices = @transform_0, window_bounds = array<i64: 1, 32, 64>}, {pipeline_mode = #tpu.pipeline_mode<synchronous>, transform_indices = @transform_1, window_bounds = array<i64: 64, 32>}, {pipeline_mode = #tpu.pipeline_mode<synchronous>, transform_indices = @transform_2, window_bounds = array<i64: 32, 32>}, {pipeline_mode = #tpu.pipeline_mode<synchronous>, transform_indices = @transform_3, window_bounds = array<i64: 2, 1, 32>}, {pipeline_mode = #tpu.pipeline_mode<synchronous>, transform_indices = @transform_4, window_bounds = array<i64: 2, 1, 32>}, {pipeline_mode = #tpu.pipeline_mode<synchronous>, transform_indices = @transform_5, window_bounds = array<i64: 2, 4, 32, 8>}, {pipeline_mode = #tpu.pipeline_mode<synchronous>, transform_indices = @transform_6, window_bounds = array<i64: 2, 4, 32, 8>}, {pipeline_mode = #tpu.pipeline_mode<synchronous>, transform_indices = @transform_7, window_bounds = array<i64: 2, 4, 32, 8>}, {pipeline_mode = #tpu.pipeline_mode<synchronous>, transform_indices = @transform_8, window_bounds = array<i64: 2, 4, 8, 32>}, {pipeline_mode = #tpu.pipeline_mode<synchronous>, transform_indices = @transform_9, window_bounds = array<i64: 2, 1, 32>}, {pipeline_mode = #tpu.pipeline_mode<synchronous>, transform_indices = @transform_10, window_bounds = array<i64: 2, 1, 32>}, {pipeline_mode = #tpu.pipeline_mode<synchronous>, transform_indices = @transform_11, window_bounds = array<i64: 2, 1, 32>}, {pipeline_mode = #tpu.pipeline_mode<synchronous>, transform_indices = @transform_12, window_bounds = array<i64: 2, 32, 64>}, {pipeline_mode = #tpu.pipeline_mode<synchronous>, transform_indices = @transform_13, window_bounds = array<i64: 2, 1, 64>}, {pipeline_mode = #tpu.pipeline_mode<synchronous>, transform_indices = @transform_14, window_bounds = array<i64: 2, 64, 32>}, {pipeline_mode = #tpu.pipeline_mode<synchronous>, transform_indices = @transform_15, window_bounds = array<i64: 2, 1, 32>}, {pipeline_mode = #tpu.pipeline_mode<synchronous>, transform_indices = @transform_16, window_bounds = array<i64: 1, 32>}, {pipeline_mode = #tpu.pipeline_mode<synchronous>, transform_indices = @transform_17, window_bounds = array<i64: 1, 32>}, {transform_indices = @transform_18, window_bounds = array<i64: 1, 32, 32>}, {transform_indices = @transform_19, window_bounds = array<i64: 1, 2, 32, 128>}]} {
    %0 = tpu.iota {dimensions = array<i32: 1>} : vector<32x32xi32>
    %c17_i32 = arith.constant 17 : i32
    %1 = vector.broadcast %c17_i32 : i32 to vector<32x32xi32>
    %2 = arith.cmpi slt, %0, %1 : vector<32x32xi32>
    %cst = arith.constant 0.000000e+00 : f32
    %cst_0 = arith.constant -1.000000e+30 : f32
    %3 = vector.broadcast %cst : f32 to vector<32x32xf32>
    %4 = vector.broadcast %cst_0 : f32 to vector<32x32xf32>
    %5 = arith.select %2, %3, %4 : vector<32x32xi1>, vector<32x32xf32>
    %c0 = arith.constant 0 : index
    %c0_1 = arith.constant 0 : index
    %c0_2 = arith.constant 0 : index
    %6 = vector.load %arg1[%c0, %c0_1, %c0_2] : memref<1x32x64xf32, #tpu.memory_space<vmem>>, vector<1x32x64xf32>
    %7 = vector.shape_cast %6 : vector<1x32x64xf32> to vector<32x64xf32>
    %8 = arith.truncf %7 : vector<32x64xf32> to vector<32x64xbf16>
    %c0_3 = arith.constant 0 : index
    %c0_4 = arith.constant 0 : index
    %9 = vector.load %arg2[%c0_3, %c0_4] : memref<64x32xbf16, #tpu.memory_space<vmem>>, vector<64x32xbf16>
    %cst_5 = arith.constant dense<0.000000e+00> : vector<32x32xf32>
    %10 = tpu.matmul %8, %9, %cst_5 {dimension_numbers = #tpu.dot_dimension_numbers<[1], [0], [0], [1], [0, 0, 1, 1], [], []>} : vector<32x64xbf16>, vector<64x32xbf16>, vector<32x32xf32> -> vector<32x32xf32>
    %c0_6 = arith.constant 0 : index
    %c0_7 = arith.constant 0 : index
    %11 = vector.load %arg3[%c0_6, %c0_7] : memref<32x32xf32, #tpu.memory_space<vmem>>, vector<32x32xf32>
    %12 = arith.addf %10, %11 : vector<32x32xf32>
    %c0_8 = arith.constant 0 : index
    %c0_9 = arith.constant 0 : index
    %c0_10 = arith.constant 0 : index
    %13 = vector.load %arg4[%c0_8, %c0_9, %c0_10] : memref<2x1x32xf32, #tpu.memory_space<vmem>>, vector<1x1x32xf32>
    %14 = vector.shape_cast %13 : vector<1x1x32xf32> to vector<1x32xf32>
    %c0_11 = arith.constant 0 : index
    %c0_12 = arith.constant 0 : index
    %c0_13 = arith.constant 0 : index
    %15 = vector.load %arg5[%c0_11, %c0_12, %c0_13] : memref<2x1x32xf32, #tpu.memory_space<vmem>>, vector<1x1x32xf32>
    %16 = vector.shape_cast %15 : vector<1x1x32xf32> to vector<1x32xf32>
    %cst_14 = arith.constant dense<0.000000e+00> : vector<32xf32>
    %17 = vector.multi_reduction <add>, %12, %cst_14 [1] : vector<32x32xf32> to vector<32xf32>
    %18 = vector.shape_cast %17 : vector<32xf32> to vector<32x1xf32>
    %cst_15 = arith.constant 3.200000e+01 : f32
    %19 = vector.broadcast %cst_15 : f32 to vector<32x1xf32>
    %20 = arith.divf %18, %19 : vector<32x1xf32>
    %21 = vector.broadcast %20 : vector<32x1xf32> to vector<32x32xf32>
    %22 = arith.subf %12, %21 : vector<32x32xf32>
    %23 = arith.mulf %22, %22 : vector<32x32xf32>
    %cst_16 = arith.constant dense<0.000000e+00> : vector<32xf32>
    %24 = vector.multi_reduction <add>, %23, %cst_16 [1] : vector<32x32xf32> to vector<32xf32>
    %25 = vector.shape_cast %24 : vector<32xf32> to vector<32x1xf32>
    %cst_17 = arith.constant 3.200000e+01 : f32
    %26 = vector.broadcast %cst_17 : f32 to vector<32x1xf32>
    %27 = arith.divf %25, %26 : vector<32x1xf32>
    %28 = vector.broadcast %20 : vector<32x1xf32> to vector<32x32xf32>
    %29 = arith.subf %12, %28 : vector<32x32xf32>
    %cst_18 = arith.constant 9.99999974E-6 : f32
    %30 = vector.broadcast %cst_18 : f32 to vector<32x1xf32>
    %31 = arith.addf %27, %30 : vector<32x1xf32>
    %32 = math.rsqrt %31 : vector<32x1xf32>
    %33 = vector.broadcast %32 : vector<32x1xf32> to vector<32x32xf32>
    %34 = arith.mulf %29, %33 : vector<32x32xf32>
    %35 = vector.broadcast %14 : vector<1x32xf32> to vector<32x32xf32>
    %36 = arith.mulf %34, %35 : vector<32x32xf32>
    %37 = vector.broadcast %16 : vector<1x32xf32> to vector<32x32xf32>
    %38 = arith.addf %36, %37 : vector<32x32xf32>
    %39 = arith.truncf %38 : vector<32x32xf32> to vector<32x32xbf16>
    %40 = vector.shape_cast %39 : vector<32x32xbf16> to vector<1x32x32xbf16>
    %41 = vector.shape_cast %40 : vector<1x32x32xbf16> to vector<1x32x32xbf16>
    %42 = vector.broadcast %41 : vector<1x32x32xbf16> to vector<4x32x32xbf16>
    %c0_19 = arith.constant 0 : index
    %c0_20 = arith.constant 0 : index
    %c0_21 = arith.constant 0 : index
    %c0_22 = arith.constant 0 : index
    %43 = vector.load %arg6[%c0_19, %c0_20, %c0_21, %c0_22] : memref<2x4x32x8xbf16, #tpu.memory_space<vmem>>, vector<1x4x32x8xbf16>
    %44 = vector.shape_cast %43 : vector<1x4x32x8xbf16> to vector<4x32x8xbf16>
    %cst_23 = arith.constant dense<0.000000e+00> : vector<4x32x8xf32>
    %45 = tpu.matmul %42, %44, %cst_23 {dimension_numbers = #tpu.dot_dimension_numbers<[2], [1], [1], [2], [0, 0, 0, 1, 1, 2], [0], [0]>} : vector<4x32x32xbf16>, vector<4x32x8xbf16>, vector<4x32x8xf32> -> vector<4x32x8xf32>
    %c0_24 = arith.constant 0 : index
    %c0_25 = arith.constant 0 : index
    %c0_26 = arith.constant 0 : index
    %c0_27 = arith.constant 0 : index
    %46 = vector.load %arg7[%c0_24, %c0_25, %c0_26, %c0_27] : memref<2x4x32x8xbf16, #tpu.memory_space<vmem>>, vector<1x4x32x8xbf16>
    %47 = vector.shape_cast %46 : vector<1x4x32x8xbf16> to vector<4x32x8xbf16>
    %cst_28 = arith.constant dense<0.000000e+00> : vector<4x32x8xf32>
    %48 = tpu.matmul %42, %47, %cst_28 {dimension_numbers = #tpu.dot_dimension_numbers<[2], [1], [1], [2], [0, 0, 0, 1, 1, 2], [0], [0]>} : vector<4x32x32xbf16>, vector<4x32x8xbf16>, vector<4x32x8xf32> -> vector<4x32x8xf32>
    %c0_29 = arith.constant 0 : index
    %c0_30 = arith.constant 0 : index
    %c0_31 = arith.constant 0 : index
    %c0_32 = arith.constant 0 : index
    %49 = vector.load %arg8[%c0_29, %c0_30, %c0_31, %c0_32] : memref<2x4x32x8xbf16, #tpu.memory_space<vmem>>, vector<1x4x32x8xbf16>
    %50 = vector.shape_cast %49 : vector<1x4x32x8xbf16> to vector<4x32x8xbf16>
    %cst_33 = arith.constant dense<0.000000e+00> : vector<4x32x8xf32>
    %51 = tpu.matmul %42, %50, %cst_33 {dimension_numbers = #tpu.dot_dimension_numbers<[2], [1], [1], [2], [0, 0, 0, 1, 1, 2], [0], [0]>} : vector<4x32x32xbf16>, vector<4x32x8xbf16>, vector<4x32x8xf32> -> vector<4x32x8xf32>
    %cst_34 = arith.constant dense<0.000000e+00> : vector<4x32x32xf32>
    %52 = tpu.matmul %45, %48, %cst_34 {dimension_numbers = #tpu.dot_dimension_numbers<[2], [2], [1], [1], [0, 0, 0, 1, 1, 1], [0], [0]>} : vector<4x32x8xf32>, vector<4x32x8xf32>, vector<4x32x32xf32> -> vector<4x32x32xf32>
    %53 = vector.shape_cast %5 : vector<32x32xf32> to vector<1x32x32xf32>
    %54 = vector.broadcast %53 : vector<1x32x32xf32> to vector<4x32x32xf32>
    %55 = arith.addf %52, %54 : vector<4x32x32xf32>
    %cst_35 = arith.constant dense<0xFF800000> : vector<4x32xf32>
    %56 = vector.multi_reduction <maximumf>, %55, %cst_35 [2] : vector<4x32x32xf32> to vector<4x32xf32>
    %57 = vector.shape_cast %56 : vector<4x32xf32> to vector<4x32x1xf32>
    %58 = vector.broadcast %57 : vector<4x32x1xf32> to vector<4x32x32xf32>
    %59 = arith.subf %55, %58 : vector<4x32x32xf32>
    %60 = math.exp %59 : vector<4x32x32xf32>
    %cst_36 = arith.constant dense<0.000000e+00> : vector<4x32xf32>
    %61 = vector.multi_reduction <add>, %60, %cst_36 [2] : vector<4x32x32xf32> to vector<4x32xf32>
    %62 = vector.shape_cast %61 : vector<4x32xf32> to vector<4x32x1xf32>
    %63 = vector.broadcast %62 : vector<4x32x1xf32> to vector<4x32x32xf32>
    %64 = arith.divf %60, %63 : vector<4x32x32xf32>
    %65 = vector.extract_strided_slice %64 {offsets = [0, 0, 0], sizes = [1, 32, 32], strides = [1, 1, 1]} : vector<4x32x32xf32> to vector<1x32x32xf32>
    %66 = vector.shape_cast %65 : vector<1x32x32xf32> to vector<32x32xf32>
    %67 = vector.extract_strided_slice %64 {offsets = [1, 0, 0], sizes = [1, 32, 32], strides = [1, 1, 1]} : vector<4x32x32xf32> to vector<1x32x32xf32>
    %68 = vector.shape_cast %67 : vector<1x32x32xf32> to vector<32x32xf32>
    %69 = vector.extract_strided_slice %64 {offsets = [2, 0, 0], sizes = [1, 32, 32], strides = [1, 1, 1]} : vector<4x32x32xf32> to vector<1x32x32xf32>
    %70 = vector.shape_cast %69 : vector<1x32x32xf32> to vector<32x32xf32>
    %71 = vector.extract_strided_slice %64 {offsets = [3, 0, 0], sizes = [1, 32, 32], strides = [1, 1, 1]} : vector<4x32x32xf32> to vector<1x32x32xf32>
    %72 = vector.shape_cast %71 : vector<1x32x32xf32> to vector<32x32xf32>
    %73 = tpu.concatenate %66, %68, %70, %72 in 1 : vector<32x32xf32>, vector<32x32xf32>, vector<32x32xf32>, vector<32x32xf32> -> vector<32x128xf32>
    %c0_37 = arith.constant 0 : index
    %c0_38 = arith.constant 0 : index
    %c0_39 = arith.constant 0 : index
    %c0_40 = arith.constant 0 : index
    %74 = vector.load %arg20[%c0_37, %c0_38, %c0_39, %c0_40] : memref<1x2x32x128xf32, #tpu.memory_space<vmem>>, vector<1x1x32x128xf32>
    %75 = vector.shape_cast %74 : vector<1x1x32x128xf32> to vector<32x128xf32>
    %76 = vector.shape_cast %73 : vector<32x128xf32> to vector<1x1x32x128xf32>
    tpu.vector_store %arg20[%c0_37, %c0_38, %c0_39, %c0_40], %76 {strides = array<i32>} : memref<1x2x32x128xf32, #tpu.memory_space<vmem>>, vector<1x1x32x128xf32>,
    %cst_41 = arith.constant dense<0.000000e+00> : vector<4x32x8xf32>
    %77 = tpu.matmul %64, %51, %cst_41 {dimension_numbers = #tpu.dot_dimension_numbers<[2], [1], [1], [2], [0, 0, 0, 1, 1, 2], [0], [0]>} : vector<4x32x32xf32>, vector<4x32x8xf32>, vector<4x32x8xf32> -> vector<4x32x8xf32>
    %78 = arith.truncf %77 : vector<4x32x8xf32> to vector<4x32x8xbf16>
    %c0_42 = arith.constant 0 : index
    %c0_43 = arith.constant 0 : index
    %c0_44 = arith.constant 0 : index
    %c0_45 = arith.constant 0 : index
    %79 = vector.load %arg9[%c0_42, %c0_43, %c0_44, %c0_45] : memref<2x4x8x32xbf16, #tpu.memory_space<vmem>>, vector<1x4x8x32xbf16>
    %80 = vector.shape_cast %79 : vector<1x4x8x32xbf16> to vector<4x8x32xbf16>
    %cst_46 = arith.constant dense<0.000000e+00> : vector<4x32x32xf32>
    %81 = tpu.matmul %78, %80, %cst_46 {dimension_numbers = #tpu.dot_dimension_numbers<[2], [1], [1], [2], [0, 0, 0, 1, 1, 2], [0], [0]>} : vector<4x32x8xbf16>, vector<4x8x32xbf16>, vector<4x32x32xf32> -> vector<4x32x32xf32>
    %cst_47 = arith.constant dense<0.000000e+00> : vector<32x32xf32>
    %82 = vector.multi_reduction <add>, %81, %cst_47 [0] : vector<4x32x32xf32> to vector<32x32xf32>
    %83 = arith.addf %12, %82 : vector<32x32xf32>
    %c0_48 = arith.constant 0 : index
    %c0_49 = arith.constant 0 : index
    %c0_50 = arith.constant 0 : index
    %84 = vector.load %arg10[%c0_48, %c0_49, %c0_50] : memref<2x1x32xf32, #tpu.memory_space<vmem>>, vector<1x1x32xf32>
    %85 = vector.shape_cast %84 : vector<1x1x32xf32> to vector<1x32xf32>
    %86 = vector.broadcast %85 : vector<1x32xf32> to vector<32x32xf32>
    %87 = arith.addf %83, %86 : vector<32x32xf32>
    %c0_51 = arith.constant 0 : index
    %c0_52 = arith.constant 0 : index
    %c0_53 = arith.constant 0 : index
    %88 = vector.load %arg11[%c0_51, %c0_52, %c0_53] : memref<2x1x32xf32, #tpu.memory_space<vmem>>, vector<1x1x32xf32>
    %89 = vector.shape_cast %88 : vector<1x1x32xf32> to vector<1x32xf32>
    %c0_54 = arith.constant 0 : index
    %c0_55 = arith.constant 0 : index
    %c0_56 = arith.constant 0 : index
    %90 = vector.load %arg12[%c0_54, %c0_55, %c0_56] : memref<2x1x32xf32, #tpu.memory_space<vmem>>, vector<1x1x32xf32>
    %91 = vector.shape_cast %90 : vector<1x1x32xf32> to vector<1x32xf32>
    %cst_57 = arith.constant dense<0.000000e+00> : vector<32xf32>
    %92 = vector.multi_reduction <add>, %87, %cst_57 [1] : vector<32x32xf32> to vector<32xf32>
    %93 = vector.shape_cast %92 : vector<32xf32> to vector<32x1xf32>
    %cst_58 = arith.constant 3.200000e+01 : f32
    %94 = vector.broadcast %cst_58 : f32 to vector<32x1xf32>
    %95 = arith.divf %93, %94 : vector<32x1xf32>
    %96 = vector.broadcast %95 : vector<32x1xf32> to vector<32x32xf32>
    %97 = arith.subf %87, %96 : vector<32x32xf32>
    %98 = arith.mulf %97, %97 : vector<32x32xf32>
    %cst_59 = arith.constant dense<0.000000e+00> : vector<32xf32>
    %99 = vector.multi_reduction <add>, %98, %cst_59 [1] : vector<32x32xf32> to vector<32xf32>
    %100 = vector.shape_cast %99 : vector<32xf32> to vector<32x1xf32>
    %cst_60 = arith.constant 3.200000e+01 : f32
    %101 = vector.broadcast %cst_60 : f32 to vector<32x1xf32>
    %102 = arith.divf %100, %101 : vector<32x1xf32>
    %103 = vector.broadcast %95 : vector<32x1xf32> to vector<32x32xf32>
    %104 = arith.subf %87, %103 : vector<32x32xf32>
    %cst_61 = arith.constant 9.99999974E-6 : f32
    %105 = vector.broadcast %cst_61 : f32 to vector<32x1xf32>
    %106 = arith.addf %102, %105 : vector<32x1xf32>
    %107 = math.rsqrt %106 : vector<32x1xf32>
    %108 = vector.broadcast %107 : vector<32x1xf32> to vector<32x32xf32>
    %109 = arith.mulf %104, %108 : vector<32x32xf32>
    %110 = vector.broadcast %89 : vector<1x32xf32> to vector<32x32xf32>
    %111 = arith.mulf %109, %110 : vector<32x32xf32>
    %112 = vector.broadcast %91 : vector<1x32xf32> to vector<32x32xf32>
    %113 = arith.addf %111, %112 : vector<32x32xf32>
    %114 = arith.truncf %113 : vector<32x32xf32> to vector<32x32xbf16>
    %c0_62 = arith.constant 0 : index
    %c0_63 = arith.constant 0 : index
    %c0_64 = arith.constant 0 : index
    %115 = vector.load %arg13[%c0_62, %c0_63, %c0_64] : memref<2x32x64xbf16, #tpu.memory_space<vmem>>, vector<1x32x64xbf16>
    %116 = vector.shape_cast %115 : vector<1x32x64xbf16> to vector<32x64xbf16>
    %cst_65 = arith.constant dense<0.000000e+00> : vector<32x64xf32>
    %117 = tpu.matmul %114, %116, %cst_65 {dimension_numbers = #tpu.dot_dimension_numbers<[1], [0], [0], [1], [0, 0, 1, 1], [], []>} : vector<32x32xbf16>, vector<32x64xbf16>, vector<32x64xf32> -> vector<32x64xf32>
    %c0_66 = arith.constant 0 : index
    %c0_67 = arith.constant 0 : index
    %c0_68 = arith.constant 0 : index
    %118 = vector.load %arg14[%c0_66, %c0_67, %c0_68] : memref<2x1x64xf32, #tpu.memory_space<vmem>>, vector<1x1x64xf32>
    %119 = vector.shape_cast %118 : vector<1x1x64xf32> to vector<1x64xf32>
    %120 = vector.broadcast %119 : vector<1x64xf32> to vector<32x64xf32>
    %121 = arith.addf %117, %120 : vector<32x64xf32>
    %122 = arith.mulf %121, %121 : vector<32x64xf32>
    %123 = arith.mulf %121, %122 : vector<32x64xf32>
    %cst_69 = arith.constant 4.471500e-02 : f32
    %124 = vector.broadcast %cst_69 : f32 to vector<32x64xf32>
    %125 = arith.mulf %124, %123 : vector<32x64xf32>
    %126 = arith.addf %121, %125 : vector<32x64xf32>
    %cst_70 = arith.constant 0.797884583 : f32
    %127 = vector.broadcast %cst_70 : f32 to vector<32x64xf32>
    %128 = arith.mulf %127, %126 : vector<32x64xf32>
    %129 = math.tanh %128 : vector<32x64xf32>
    %cst_71 = arith.constant 1.000000e+00 : f32
    %130 = vector.broadcast %cst_71 : f32 to vector<32x64xf32>
    %131 = arith.addf %130, %129 : vector<32x64xf32>
    %cst_72 = arith.constant 5.000000e-01 : f32
    %132 = vector.broadcast %cst_72 : f32 to vector<32x64xf32>
    %133 = arith.mulf %132, %131 : vector<32x64xf32>
    %134 = arith.mulf %121, %133 : vector<32x64xf32>
    %135 = arith.truncf %134 : vector<32x64xf32> to vector<32x64xbf16>
    %c0_73 = arith.constant 0 : index
    %c0_74 = arith.constant 0 : index
    %c0_75 = arith.constant 0 : index
    %136 = vector.load %arg15[%c0_73, %c0_74, %c0_75] : memref<2x64x32xbf16, #tpu.memory_space<vmem>>, vector<1x64x32xbf16>
    %137 = vector.shape_cast %136 : vector<1x64x32xbf16> to vector<64x32xbf16>
    %cst_76 = arith.constant dense<0.000000e+00> : vector<32x32xf32>
    %138 = tpu.matmul %135, %137, %cst_76 {dimension_numbers = #tpu.dot_dimension_numbers<[1], [0], [0], [1], [0, 0, 1, 1], [], []>} : vector<32x64xbf16>, vector<64x32xbf16>, vector<32x32xf32> -> vector<32x32xf32>
    %139 = arith.addf %87, %138 : vector<32x32xf32>
    %c0_77 = arith.constant 0 : index
    %c0_78 = arith.constant 0 : index
    %c0_79 = arith.constant 0 : index
    %140 = vector.load %arg16[%c0_77, %c0_78, %c0_79] : memref<2x1x32xf32, #tpu.memory_space<vmem>>, vector<1x1x32xf32>
    %141 = vector.shape_cast %140 : vector<1x1x32xf32> to vector<1x32xf32>
    %142 = vector.broadcast %141 : vector<1x32xf32> to vector<32x32xf32>
    %143 = arith.addf %139, %142 : vector<32x32xf32>
    %c1 = arith.constant 1 : index
    %c0_80 = arith.constant 0 : index
    %c0_81 = arith.constant 0 : index
    %144 = vector.load %arg4[%c1, %c0_80, %c0_81] : memref<2x1x32xf32, #tpu.memory_space<vmem>>, vector<1x1x32xf32>
    %145 = vector.shape_cast %144 : vector<1x1x32xf32> to vector<1x32xf32>
    %c1_82 = arith.constant 1 : index
    %c0_83 = arith.constant 0 : index
    %c0_84 = arith.constant 0 : index
    %146 = vector.load %arg5[%c1_82, %c0_83, %c0_84] : memref<2x1x32xf32, #tpu.memory_space<vmem>>, vector<1x1x32xf32>
    %147 = vector.shape_cast %146 : vector<1x1x32xf32> to vector<1x32xf32>
    %cst_85 = arith.constant dense<0.000000e+00> : vector<32xf32>
    %148 = vector.multi_reduction <add>, %143, %cst_85 [1] : vector<32x32xf32> to vector<32xf32>
    %149 = vector.shape_cast %148 : vector<32xf32> to vector<32x1xf32>
    %cst_86 = arith.constant 3.200000e+01 : f32
    %150 = vector.broadcast %cst_86 : f32 to vector<32x1xf32>
    %151 = arith.divf %149, %150 : vector<32x1xf32>
    %152 = vector.broadcast %151 : vector<32x1xf32> to vector<32x32xf32>
    %153 = arith.subf %143, %152 : vector<32x32xf32>
    %154 = arith.mulf %153, %153 : vector<32x32xf32>
    %cst_87 = arith.constant dense<0.000000e+00> : vector<32xf32>
    %155 = vector.multi_reduction <add>, %154, %cst_87 [1] : vector<32x32xf32> to vector<32xf32>
    %156 = vector.shape_cast %155 : vector<32xf32> to vector<32x1xf32>
    %cst_88 = arith.constant 3.200000e+01 : f32
    %157 = vector.broadcast %cst_88 : f32 to vector<32x1xf32>
    %158 = arith.divf %156, %157 : vector<32x1xf32>
    %159 = vector.broadcast %151 : vector<32x1xf32> to vector<32x32xf32>
    %160 = arith.subf %143, %159 : vector<32x32xf32>
    %cst_89 = arith.constant 9.99999974E-6 : f32
    %161 = vector.broadcast %cst_89 : f32 to vector<32x1xf32>
    %162 = arith.addf %158, %161 : vector<32x1xf32>
    %163 = math.rsqrt %162 : vector<32x1xf32>
    %164 = vector.broadcast %163 : vector<32x1xf32> to vector<32x32xf32>
    %165 = arith.mulf %160, %164 : vector<32x32xf32>
    %166 = vector.broadcast %145 : vector<1x32xf32> to vector<32x32xf32>
    %167 = arith.mulf %165, %166 : vector<32x32xf32>
    %168 = vector.broadcast %147 : vector<1x32xf32> to vector<32x32xf32>
    %169 = arith.addf %167, %168 : vector<32x32xf32>
    %170 = arith.truncf %169 : vector<32x32xf32> to vector<32x32xbf16>
    %171 = vector.shape_cast %170 : vector<32x32xbf16> to vector<1x32x32xbf16>
    %172 = vector.shape_cast %171 : vector<1x32x32xbf16> to vector<1x32x32xbf16>
    %173 = vector.broadcast %172 : vector<1x32x32xbf16> to vector<4x32x32xbf16>
    %c1_90 = arith.constant 1 : index
    %c0_91 = arith.constant 0 : index
    %c0_92 = arith.constant 0 : index
    %c0_93 = arith.constant 0 : index
    %174 = vector.load %arg6[%c1_90, %c0_91, %c0_92, %c0_93] : memref<2x4x32x8xbf16, #tpu.memory_space<vmem>>, vector<1x4x32x8xbf16>
    %175 = vector.shape_cast %174 : vector<1x4x32x8xbf16> to vector<4x32x8xbf16>
    %cst_94 = arith.constant dense<0.000000e+00> : vector<4x32x8xf32>
    %176 = tpu.matmul %173, %175, %cst_94 {dimension_numbers = #tpu.dot_dimension_numbers<[2], [1], [1], [2], [0, 0, 0, 1, 1, 2], [0], [0]>} : vector<4x32x32xbf16>, vector<4x32x8xbf16>, vector<4x32x8xf32> -> vector<4x32x8xf32>
    %c1_95 = arith.constant 1 : index
    %c0_96 = arith.constant 0 : index
    %c0_97 = arith.constant 0 : index
    %c0_98 = arith.constant 0 : index
    %177 = vector.load %arg7[%c1_95, %c0_96, %c0_97, %c0_98] : memref<2x4x32x8xbf16, #tpu.memory_space<vmem>>, vector<1x4x32x8xbf16>
    %178 = vector.shape_cast %177 : vector<1x4x32x8xbf16> to vector<4x32x8xbf16>
    %cst_99 = arith.constant dense<0.000000e+00> : vector<4x32x8xf32>
    %179 = tpu.matmul %173, %178, %cst_99 {dimension_numbers = #tpu.dot_dimension_numbers<[2], [1], [1], [2], [0, 0, 0, 1, 1, 2], [0], [0]>} : vector<4x32x32xbf16>, vector<4x32x8xbf16>, vector<4x32x8xf32> -> vector<4x32x8xf32>
    %c1_100 = arith.constant 1 : index
    %c0_101 = arith.constant 0 : index
    %c0_102 = arith.constant 0 : index
    %c0_103 = arith.constant 0 : index
    %180 = vector.load %arg8[%c1_100, %c0_101, %c0_102, %c0_103] : memref<2x4x32x8xbf16, #tpu.memory_space<vmem>>, vector<1x4x32x8xbf16>
    %181 = vector.shape_cast %180 : vector<1x4x32x8xbf16> to vector<4x32x8xbf16>
    %cst_104 = arith.constant dense<0.000000e+00> : vector<4x32x8xf32>
    %182 = tpu.matmul %173, %181, %cst_104 {dimension_numbers = #tpu.dot_dimension_numbers<[2], [1], [1], [2], [0, 0, 0, 1, 1, 2], [0], [0]>} : vector<4x32x32xbf16>, vector<4x32x8xbf16>, vector<4x32x8xf32> -> vector<4x32x8xf32>
    %cst_105 = arith.constant dense<0.000000e+00> : vector<4x32x32xf32>
    %183 = tpu.matmul %176, %179, %cst_105 {dimension_numbers = #tpu.dot_dimension_numbers<[2], [2], [1], [1], [0, 0, 0, 1, 1, 1], [0], [0]>} : vector<4x32x8xf32>, vector<4x32x8xf32>, vector<4x32x32xf32> -> vector<4x32x32xf32>
    %184 = vector.shape_cast %5 : vector<32x32xf32> to vector<1x32x32xf32>
    %185 = vector.broadcast %184 : vector<1x32x32xf32> to vector<4x32x32xf32>
    %186 = arith.addf %183, %185 : vector<4x32x32xf32>
    %cst_106 = arith.constant dense<0xFF800000> : vector<4x32xf32>
    %187 = vector.multi_reduction <maximumf>, %186, %cst_106 [2] : vector<4x32x32xf32> to vector<4x32xf32>
    %188 = vector.shape_cast %187 : vector<4x32xf32> to vector<4x32x1xf32>
    %189 = vector.broadcast %188 : vector<4x32x1xf32> to vector<4x32x32xf32>
    %190 = arith.subf %186, %189 : vector<4x32x32xf32>
    %191 = math.exp %190 : vector<4x32x32xf32>
    %cst_107 = arith.constant dense<0.000000e+00> : vector<4x32xf32>
    %192 = vector.multi_reduction <add>, %191, %cst_107 [2] : vector<4x32x32xf32> to vector<4x32xf32>
    %193 = vector.shape_cast %192 : vector<4x32xf32> to vector<4x32x1xf32>
    %194 = vector.broadcast %193 : vector<4x32x1xf32> to vector<4x32x32xf32>
    %195 = arith.divf %191, %194 : vector<4x32x32xf32>
    %196 = vector.extract_strided_slice %195 {offsets = [0, 0, 0], sizes = [1, 32, 32], strides = [1, 1, 1]} : vector<4x32x32xf32> to vector<1x32x32xf32>
    %197 = vector.shape_cast %196 : vector<1x32x32xf32> to vector<32x32xf32>
    %198 = vector.extract_strided_slice %195 {offsets = [1, 0, 0], sizes = [1, 32, 32], strides = [1, 1, 1]} : vector<4x32x32xf32> to vector<1x32x32xf32>
    %199 = vector.shape_cast %198 : vector<1x32x32xf32> to vector<32x32xf32>
    %200 = vector.extract_strided_slice %195 {offsets = [2, 0, 0], sizes = [1, 32, 32], strides = [1, 1, 1]} : vector<4x32x32xf32> to vector<1x32x32xf32>
    %201 = vector.shape_cast %200 : vector<1x32x32xf32> to vector<32x32xf32>
    %202 = vector.extract_strided_slice %195 {offsets = [3, 0, 0], sizes = [1, 32, 32], strides = [1, 1, 1]} : vector<4x32x32xf32> to vector<1x32x32xf32>
    %203 = vector.shape_cast %202 : vector<1x32x32xf32> to vector<32x32xf32>
    %204 = tpu.concatenate %197, %199, %201, %203 in 1 : vector<32x32xf32>, vector<32x32xf32>, vector<32x32xf32>, vector<32x32xf32> -> vector<32x128xf32>
    %c0_108 = arith.constant 0 : index
    %c1_109 = arith.constant 1 : index
    %c0_110 = arith.constant 0 : index
    %c0_111 = arith.constant 0 : index
    %205 = vector.load %arg20[%c0_108, %c1_109, %c0_110, %c0_111] : memref<1x2x32x128xf32, #tpu.memory_space<vmem>>, vector<1x1x32x128xf32>
    %206 = vector.shape_cast %205 : vector<1x1x32x128xf32> to vector<32x128xf32>
    %207 = vector.shape_cast %204 : vector<32x128xf32> to vector<1x1x32x128xf32>
    tpu.vector_store %arg20[%c0_108, %c1_109, %c0_110, %c0_111], %207 {strides = array<i32>} : memref<1x2x32x128xf32, #tpu.memory_space<vmem>>, vector<1x1x32x128xf32>,
    %cst_112 = arith.constant dense<0.000000e+00> : vector<4x32x8xf32>
    %208 = tpu.matmul %195, %182, %cst_112 {dimension_numbers = #tpu.dot_dimension_numbers<[2], [1], [1], [2], [0, 0, 0, 1, 1, 2], [0], [0]>} : vector<4x32x32xf32>, vector<4x32x8xf32>, vector<4x32x8xf32> -> vector<4x32x8xf32>
    %209 = arith.truncf %208 : vector<4x32x8xf32> to vector<4x32x8xbf16>
    %c1_113 = arith.constant 1 : index
    %c0_114 = arith.constant 0 : index
    %c0_115 = arith.constant 0 : index
    %c0_116 = arith.constant 0 : index
    %210 = vector.load %arg9[%c1_113, %c0_114, %c0_115, %c0_116] : memref<2x4x8x32xbf16, #tpu.memory_space<vmem>>, vector<1x4x8x32xbf16>
    %211 = vector.shape_cast %210 : vector<1x4x8x32xbf16> to vector<4x8x32xbf16>
    %cst_117 = arith.constant dense<0.000000e+00> : vector<4x32x32xf32>
    %212 = tpu.matmul %209, %211, %cst_117 {dimension_numbers = #tpu.dot_dimension_numbers<[2], [1], [1], [2], [0, 0, 0, 1, 1, 2], [0], [0]>} : vector<4x32x8xbf16>, vector<4x8x32xbf16>, vector<4x32x32xf32> -> vector<4x32x32xf32>
    %cst_118 = arith.constant dense<0.000000e+00> : vector<32x32xf32>
    %213 = vector.multi_reduction <add>, %212, %cst_118 [0] : vector<4x32x32xf32> to vector<32x32xf32>
    %214 = arith.addf %143, %213 : vector<32x32xf32>
    %c1_119 = arith.constant 1 : index
    %c0_120 = arith.constant 0 : index
    %c0_121 = arith.constant 0 : index
    %215 = vector.load %arg10[%c1_119, %c0_120, %c0_121] : memref<2x1x32xf32, #tpu.memory_space<vmem>>, vector<1x1x32xf32>
    %216 = vector.shape_cast %215 : vector<1x1x32xf32> to vector<1x32xf32>
    %217 = vector.broadcast %216 : vector<1x32xf32> to vector<32x32xf32>
    %218 = arith.addf %214, %217 : vector<32x32xf32>
    %c1_122 = arith.constant 1 : index
    %c0_123 = arith.constant 0 : index
    %c0_124 = arith.constant 0 : index
    %219 = vector.load %arg11[%c1_122, %c0_123, %c0_124] : memref<2x1x32xf32, #tpu.memory_space<vmem>>, vector<1x1x32xf32>
    %220 = vector.shape_cast %219 : vector<1x1x32xf32> to vector<1x32xf32>
    %c1_125 = arith.constant 1 : index
    %c0_126 = arith.constant 0 : index
    %c0_127 = arith.constant 0 : index
    %221 = vector.load %arg12[%c1_125, %c0_126, %c0_127] : memref<2x1x32xf32, #tpu.memory_space<vmem>>, vector<1x1x32xf32>
    %222 = vector.shape_cast %221 : vector<1x1x32xf32> to vector<1x32xf32>
    %cst_128 = arith.constant dense<0.000000e+00> : vector<32xf32>
    %223 = vector.multi_reduction <add>, %218, %cst_128 [1] : vector<32x32xf32> to vector<32xf32>
    %224 = vector.shape_cast %223 : vector<32xf32> to vector<32x1xf32>
    %cst_129 = arith.constant 3.200000e+01 : f32
    %225 = vector.broadcast %cst_129 : f32 to vector<32x1xf32>
    %226 = arith.divf %224, %225 : vector<32x1xf32>
    %227 = vector.broadcast %226 : vector<32x1xf32> to vector<32x32xf32>
    %228 = arith.subf %218, %227 : vector<32x32xf32>
    %229 = arith.mulf %228, %228 : vector<32x32xf32>
    %cst_130 = arith.constant dense<0.000000e+00> : vector<32xf32>
    %230 = vector.multi_reduction <add>, %229, %cst_130 [1] : vector<32x32xf32> to vector<32xf32>
    %231 = vector.shape_cast %230 : vector<32xf32> to vector<32x1xf32>
    %cst_131 = arith.constant 3.200000e+01 : f32
    %232 = vector.broadcast %cst_131 : f32 to vector<32x1xf32>
    %233 = arith.divf %231, %232 : vector<32x1xf32>
    %234 = vector.broadcast %226 : vector<32x1xf32> to vector<32x32xf32>
    %235 = arith.subf %218, %234 : vector<32x32xf32>
    %cst_132 = arith.constant 9.99999974E-6 : f32
    %236 = vector.broadcast %cst_132 : f32 to vector<32x1xf32>
    %237 = arith.addf %233, %236 : vector<32x1xf32>
    %238 = math.rsqrt %237 : vector<32x1xf32>
    %239 = vector.broadcast %238 : vector<32x1xf32> to vector<32x32xf32>
    %240 = arith.mulf %235, %239 : vector<32x32xf32>
    %241 = vector.broadcast %220 : vector<1x32xf32> to vector<32x32xf32>
    %242 = arith.mulf %240, %241 : vector<32x32xf32>
    %243 = vector.broadcast %222 : vector<1x32xf32> to vector<32x32xf32>
    %244 = arith.addf %242, %243 : vector<32x32xf32>
    %245 = arith.truncf %244 : vector<32x32xf32> to vector<32x32xbf16>
    %c1_133 = arith.constant 1 : index
    %c0_134 = arith.constant 0 : index
    %c0_135 = arith.constant 0 : index
    %246 = vector.load %arg13[%c1_133, %c0_134, %c0_135] : memref<2x32x64xbf16, #tpu.memory_space<vmem>>, vector<1x32x64xbf16>
    %247 = vector.shape_cast %246 : vector<1x32x64xbf16> to vector<32x64xbf16>
    %cst_136 = arith.constant dense<0.000000e+00> : vector<32x64xf32>
    %248 = tpu.matmul %245, %247, %cst_136 {dimension_numbers = #tpu.dot_dimension_numbers<[1], [0], [0], [1], [0, 0, 1, 1], [], []>} : vector<32x32xbf16>, vector<32x64xbf16>, vector<32x64xf32> -> vector<32x64xf32>
    %c1_137 = arith.constant 1 : index
    %c0_138 = arith.constant 0 : index
    %c0_139 = arith.constant 0 : index
    %249 = vector.load %arg14[%c1_137, %c0_138, %c0_139] : memref<2x1x64xf32, #tpu.memory_space<vmem>>, vector<1x1x64xf32>
    %250 = vector.shape_cast %249 : vector<1x1x64xf32> to vector<1x64xf32>
    %251 = vector.broadcast %250 : vector<1x64xf32> to vector<32x64xf32>
    %252 = arith.addf %248, %251 : vector<32x64xf32>
    %253 = arith.mulf %252, %252 : vector<32x64xf32>
    %254 = arith.mulf %252, %253 : vector<32x64xf32>
    %cst_140 = arith.constant 4.471500e-02 : f32
    %255 = vector.broadcast %cst_140 : f32 to vector<32x64xf32>
    %256 = arith.mulf %255, %254 : vector<32x64xf32>
    %257 = arith.addf %252, %256 : vector<32x64xf32>
    %cst_141 = arith.constant 0.797884583 : f32
    %258 = vector.broadcast %cst_141 : f32 to vector<32x64xf32>
    %259 = arith.mulf %258, %257 : vector<32x64xf32>
    %260 = math.tanh %259 : vector<32x64xf32>
    %cst_142 = arith.constant 1.000000e+00 : f32
    %261 = vector.broadcast %cst_142 : f32 to vector<32x64xf32>
    %262 = arith.addf %261, %260 : vector<32x64xf32>
    %cst_143 = arith.constant 5.000000e-01 : f32
    %263 = vector.broadcast %cst_143 : f32 to vector<32x64xf32>
    %264 = arith.mulf %263, %262 : vector<32x64xf32>
    %265 = arith.mulf %252, %264 : vector<32x64xf32>
    %266 = arith.truncf %265 : vector<32x64xf32> to vector<32x64xbf16>
    %c1_144 = arith.constant 1 : index
    %c0_145 = arith.constant 0 : index
    %c0_146 = arith.constant 0 : index
    %267 = vector.load %arg15[%c1_144, %c0_145, %c0_146] : memref<2x64x32xbf16, #tpu.memory_space<vmem>>, vector<1x64x32xbf16>
    %268 = vector.shape_cast %267 : vector<1x64x32xbf16> to vector<64x32xbf16>
    %cst_147 = arith.constant dense<0.000000e+00> : vector<32x32xf32>
    %269 = tpu.matmul %266, %268, %cst_147 {dimension_numbers = #tpu.dot_dimension_numbers<[1], [0], [0], [1], [0, 0, 1, 1], [], []>} : vector<32x64xbf16>, vector<64x32xbf16>, vector<32x32xf32> -> vector<32x32xf32>
    %270 = arith.addf %218, %269 : vector<32x32xf32>
    %c1_148 = arith.constant 1 : index
    %c0_149 = arith.constant 0 : index
    %c0_150 = arith.constant 0 : index
    %271 = vector.load %arg16[%c1_148, %c0_149, %c0_150] : memref<2x1x32xf32, #tpu.memory_space<vmem>>, vector<1x1x32xf32>
    %272 = vector.shape_cast %271 : vector<1x1x32xf32> to vector<1x32xf32>
    %273 = vector.broadcast %272 : vector<1x32xf32> to vector<32x32xf32>
    %274 = arith.addf %270, %273 : vector<32x32xf32>
    %c0_151 = arith.constant 0 : index
    %c0_152 = arith.constant 0 : index
    %275 = vector.load %arg17[%c0_151, %c0_152] : memref<1x32xf32, #tpu.memory_space<vmem>>, vector<1x32xf32>
    %c0_153 = arith.constant 0 : index
    %c0_154 = arith.constant 0 : index
    %276 = vector.load %arg18[%c0_153, %c0_154] : memref<1x32xf32, #tpu.memory_space<vmem>>, vector<1x32xf32>
    %cst_155 = arith.constant dense<0.000000e+00> : vector<32xf32>
    %277 = vector.multi_reduction <add>, %274, %cst_155 [1] : vector<32x32xf32> to vector<32xf32>
    %278 = vector.shape_cast %277 : vector<32xf32> to vector<32x1xf32>
    %cst_156 = arith.constant 3.200000e+01 : f32
    %279 = vector.broadcast %cst_156 : f32 to vector<32x1xf32>
    %280 = arith.divf %278, %279 : vector<32x1xf32>
    %281 = vector.broadcast %280 : vector<32x1xf32> to vector<32x32xf32>
    %282 = arith.subf %274, %281 : vector<32x32xf32>
    %283 = arith.mulf %282, %282 : vector<32x32xf32>
    %cst_157 = arith.constant dense<0.000000e+00> : vector<32xf32>
    %284 = vector.multi_reduction <add>, %283, %cst_157 [1] : vector<32x32xf32> to vector<32xf32>
    %285 = vector.shape_cast %284 : vector<32xf32> to vector<32x1xf32>
    %cst_158 = arith.constant 3.200000e+01 : f32
    %286 = vector.broadcast %cst_158 : f32 to vector<32x1xf32>
    %287 = arith.divf %285, %286 : vector<32x1xf32>
    %288 = vector.broadcast %280 : vector<32x1xf32> to vector<32x32xf32>
    %289 = arith.subf %274, %288 : vector<32x32xf32>
    %cst_159 = arith.constant 9.99999974E-6 : f32
    %290 = vector.broadcast %cst_159 : f32 to vector<32x1xf32>
    %291 = arith.addf %287, %290 : vector<32x1xf32>
    %292 = math.rsqrt %291 : vector<32x1xf32>
    %293 = vector.broadcast %292 : vector<32x1xf32> to vector<32x32xf32>
    %294 = arith.mulf %289, %293 : vector<32x32xf32>
    %295 = vector.broadcast %275 : vector<1x32xf32> to vector<32x32xf32>
    %296 = arith.mulf %294, %295 : vector<32x32xf32>
    %297 = vector.broadcast %276 : vector<1x32xf32> to vector<32x32xf32>
    %298 = arith.addf %296, %297 : vector<32x32xf32>
    %c0_160 = arith.constant 0 : index
    %c0_161 = arith.constant 0 : index
    %c0_162 = arith.constant 0 : index
    %299 = vector.load %arg19[%c0_160, %c0_161, %c0_162] : memref<1x32x32xf32, #tpu.memory_space<vmem>>, vector<1x32x32xf32>
    %300 = vector.shape_cast %299 : vector<1x32x32xf32> to vector<32x32xf32>
    %301 = vector.shape_cast %298 : vector<32x32xf32> to vector<1x32x32xf32>
    tpu.vector_store %arg19[%c0_160, %c0_161, %c0_162], %301 {strides = array<i32>} : memref<1x32x32xf32, #tpu.memory_space<vmem>>, vector<1x32x32xf32>,
    return
  }
  func.func @transform_0(%arg0: i32) -> (i32, i32, i32) {
    %c0_i32 = arith.constant 0 : i32
    %c0_i32_0 = arith.constant 0 : i32
    %c0_i32_1 = arith.constant 0 : i32
    return %arg0, %c0_i32, %c0_i32_0 : i32, i32, i32
  }
  func.func @transform_1(%arg0: i32) -> (i32, i32) {
    %c0_i32 = arith.constant 0 : i32
    %c0_i32_0 = arith.constant 0 : i32
    %c0_i32_1 = arith.constant 0 : i32
    return %c0_i32, %c0_i32_0 : i32, i32
  }
  func.func @transform_2(%arg0: i32) -> (i32, i32) {
    %c0_i32 = arith.constant 0 : i32
    %c0_i32_0 = arith.constant 0 : i32
    %c0_i32_1 = arith.constant 0 : i32
    return %c0_i32, %c0_i32_0 : i32, i32
  }
  func.func @transform_3(%arg0: i32) -> (i32, i32, i32) {
    %c0_i32 = arith.constant 0 : i32
    %c0_i32_0 = arith.constant 0 : i32
    %c0_i32_1 = arith.constant 0 : i32
    %c0_i32_2 = arith.constant 0 : i32
    return %c0_i32, %c0_i32_0, %c0_i32_1 : i32, i32, i32
  }
  func.func @transform_4(%arg0: i32) -> (i32, i32, i32) {
    %c0_i32 = arith.constant 0 : i32
    %c0_i32_0 = arith.constant 0 : i32
    %c0_i32_1 = arith.constant 0 : i32
    %c0_i32_2 = arith.constant 0 : i32
    return %c0_i32, %c0_i32_0, %c0_i32_1 : i32, i32, i32
  }
  func.func @transform_5(%arg0: i32) -> (i32, i32, i32, i32) {
    %c0_i32 = arith.constant 0 : i32
    %c0_i32_0 = arith.constant 0 : i32
    %c0_i32_1 = arith.constant 0 : i32
    %c0_i32_2 = arith.constant 0 : i32
    %c0_i32_3 = arith.constant 0 : i32
    return %c0_i32, %c0_i32_0, %c0_i32_1, %c0_i32_2 : i32, i32, i32, i32
  }
  func.func @transform_6(%arg0: i32) -> (i32, i32, i32, i32) {
    %c0_i32 = arith.constant 0 : i32
    %c0_i32_0 = arith.constant 0 : i32
    %c0_i32_1 = arith.constant 0 : i32
    %c0_i32_2 = arith.constant 0 : i32
    %c0_i32_3 = arith.constant 0 : i32
    return %c0_i32, %c0_i32_0, %c0_i32_1, %c0_i32_2 : i32, i32, i32, i32
  }
  func.func @transform_7(%arg0: i32) -> (i32, i32, i32, i32) {
    %c0_i32 = arith.constant 0 : i32
    %c0_i32_0 = arith.constant 0 : i32
    %c0_i32_1 = arith.constant 0 : i32
    %c0_i32_2 = arith.constant 0 : i32
    %c0_i32_3 = arith.constant 0 : i32
    return %c0_i32, %c0_i32_0, %c0_i32_1, %c0_i32_2 : i32, i32, i32, i32
  }
  func.func @transform_8(%arg0: i32) -> (i32, i32, i32, i32) {
    %c0_i32 = arith.constant 0 : i32
    %c0_i32_0 = arith.constant 0 : i32
    %c0_i32_1 = arith.constant 0 : i32
    %c0_i32_2 = arith.constant 0 : i32
    %c0_i32_3 = arith.constant 0 : i32
    return %c0_i32, %c0_i32_0, %c0_i32_1, %c0_i32_2 : i32, i32, i32, i32
  }
  func.func @transform_9(%arg0: i32) -> (i32, i32, i32) {
    %c0_i32 = arith.constant 0 : i32
    %c0_i32_0 = arith.constant 0 : i32
    %c0_i32_1 = arith.constant 0 : i32
    %c0_i32_2 = arith.constant 0 : i32
    return %c0_i32, %c0_i32_0, %c0_i32_1 : i32, i32, i32
  }
  func.func @transform_10(%arg0: i32) -> (i32, i32, i32) {
    %c0_i32 = arith.constant 0 : i32
    %c0_i32_0 = arith.constant 0 : i32
    %c0_i32_1 = arith.constant 0 : i32
    %c0_i32_2 = arith.constant 0 : i32
    return %c0_i32, %c0_i32_0, %c0_i32_1 : i32, i32, i32
  }
  func.func @transform_11(%arg0: i32) -> (i32, i32, i32) {
    %c0_i32 = arith.constant 0 : i32
    %c0_i32_0 = arith.constant 0 : i32
    %c0_i32_1 = arith.constant 0 : i32
    %c0_i32_2 = arith.constant 0 : i32
    return %c0_i32, %c0_i32_0, %c0_i32_1 : i32, i32, i32
  }
  func.func @transform_12(%arg0: i32) -> (i32, i32, i32) {
    %c0_i32 = arith.constant 0 : i32
    %c0_i32_0 = arith.constant 0 : i32
    %c0_i32_1 = arith.constant 0 : i32
    %c0_i32_2 = arith.constant 0 : i32
    return %c0_i32, %c0_i32_0, %c0_i32_1 : i32, i32, i32
  }
  func.func @transform_13(%arg0: i32) -> (i32, i32, i32) {
    %c0_i32 = arith.constant 0 : i32
    %c0_i32_0 = arith.constant 0 : i32
    %c0_i32_1 = arith.constant 0 : i32
    %c0_i32_2 = arith.constant 0 : i32
    return %c0_i32, %c0_i32_0, %c0_i32_1 : i32, i32, i32
  }
  func.func @transform_14(%arg0: i32) -> (i32, i32, i32) {
    %c0_i32 = arith.constant 0 : i32
    %c0_i32_0 = arith.constant 0 : i32
    %c0_i32_1 = arith.constant 0 : i32
    %c0_i32_2 = arith.constant 0 : i32
    return %c0_i32, %c0_i32_0, %c0_i32_1 : i32, i32, i32
  }
  func.func @transform_15(%arg0: i32) -> (i32, i32, i32) {
    %c0_i32 = arith.constant 0 : i32
    %c0_i32_0 = arith.constant 0 : i32
    %c0_i32_1 = arith.constant 0 : i32
    %c0_i32_2 = arith.constant 0 : i32
    return %c0_i32, %c0_i32_0, %c0_i32_1 : i32, i32, i32
  }
  func.func @transform_16(%arg0: i32) -> (i32, i32) {
    %c0_i32 = arith.constant 0 : i32
    %c0_i32_0 = arith.constant 0 : i32
    %c0_i32_1 = arith.constant 0 : i32
    return %c0_i32, %c0_i32_0 : i32, i32
  }
  func.func @transform_17(%arg0: i32) -> (i32, i32) {
    %c0_i32 = arith.constant 0 : i32
    %c0_i32_0 = arith.constant 0 : i32
    %c0_i32_1 = arith.constant 0 : i32
    return %c0_i32, %c0_i32_0 : i32, i32
  }
  func.func @transform_18(%arg0: i32) -> (i32, i32, i32) {
    %c0_i32 = arith.constant 0 : i32
    %c0_i32_0 = arith.constant 0 : i32
    %c0_i32_1 = arith.constant 0 : i32
    return %arg0, %c0_i32, %c0_i32_0 : i32, i32, i32
  }
  func.func @transform_19(%arg0: i32) -> (i32, i32, i32, i32) {
    %c0_i32 = arith.constant 0 : i32
    %c0_i32_0 = arith.constant 0 : i32
    %c0_i32_1 = arith.constant 0 : i32
    %c0_i32_2 = arith.constant 0 : i32
    return %arg0, %c0_i32, %c0_i32_0, %c0_i32_1 : i32, i32, i32, i32
  }
}

</mosaic_0001>

<bundles_post_ra>
// kernel: image_transformer_encoder_forward.1
= control target key start
LH: loop header
LB: loop body
LE: loop exit
PB: predicated region body
PF: predicated region fallthrough
CT: control target
= control target key end

     0   :  { %s7358_s0 = inlined_call_operand.vmem [shape: f32[2,32,64], index: 0, kind: input, shape index: {}]   ;;  %s7359_s1 = inlined_call_operand.vmem [shape: bf16[64,32], index: 1, kind: input, shape index: {}]   ;;  %s7360_s2 = inlined_call_operand.vmem [shape: f32[32,32], index: 2, kind: input, shape index: {}]   ;;  %s7361_s3 = inlined_call_operand.vmem [shape: f32[2,1,32], index: 3, kind: input, shape index: {}]   ;;  %s7362_s4 = inlined_call_operand.vmem [shape: f32[2,1,32], index: 4, kind: input, shape index: {}]   ;;  %s7363_s5 = inlined_call_operand.vmem [shape: bf16[2,4,32,8], index: 5, kind: input, shape index: {}]   ;;  %s7364_s6 = inlined_call_operand.vmem [shape: bf16[2,4,32,8], index: 6, kind: input, shape index: {}]   ;;  %s7365_s7 = inlined_call_operand.vmem [shape: bf16[2,4,32,8], index: 7, kind: input, shape index: {}]   ;;  %s7366_s8 = inlined_call_operand.vmem [shape: bf16[2,4,8,32], index: 8, kind: input, shape index: {}]   ;;  %s7367_s9 = inlined_call_operand.vmem [shape: f32[2,1,32], index: 9, kind: input, shape index: {}]   ;;  %s7368_s10 = inlined_call_operand.vmem [shape: f32[2,1,32], index: 10, kind: input, shape index: {}]   ;;  %s7369_s11 = inlined_call_operand.vmem [shape: f32[2,1,32], index: 11, kind: input, shape index: {}]   ;;  %s7370_s12 = inlined_call_operand.vmem [shape: bf16[2,32,64], index: 12, kind: input, shape index: {}]   ;;  %s7371_s13 = inlined_call_operand.vmem [shape: f32[2,1,64], index: 13, kind: input, shape index: {}]   ;;  %s7372_s14 = inlined_call_operand.vmem [shape: bf16[2,64,32], index: 14, kind: input, shape index: {}]   ;;  %s7373_s15 = inlined_call_operand.vmem [shape: f32[2,1,32], index: 15, kind: input, shape index: {}]   ;;  %s7374_s16 = inlined_call_operand.vmem [shape: f32[1,32], index: 16, kind: input, shape index: {}]   ;;  %s7375_s17 = inlined_call_operand.vmem [shape: f32[1,32], index: 17, kind: input, shape index: {}]   ;;  %s7376_s18 = inlined_call_operand.vmem [shape: f32[2,32,32], index: 18, kind: output, shape index: {0}]   ;;  %s7377_s19 = inlined_call_operand.vmem [shape: f32[2,2,32,128], index: 19, kind: output, shape index: {1}]  }
   0x1   :  { %7401 = sst [smem:[#allocation17_spill]] %s7358_s0  ;;  %s5473_s0 = smov 0  }
   0x2   :  { %7402 = sst [smem:[#allocation18_spill]] %s7359_s1 }
   0x3   :  { %7403 = sst [smem:[#allocation19_spill]] %s7360_s2 }
   0x4   :  { %7404 = sst [smem:[#allocation20_spill]] %s7361_s3 }
   0x5 LB: > { %s4562_s30 = sadd.s32 4294967295, %s5366_s0   ;;  %p4566_p0 = scmp.ge.s32.totalorder %s5366_s0, 1  ;;  %s5366_s0 = sphi %s5473_s0, %s30_s0  }
   0x6   : > { %p540_p1 = scmp.lt.s32.totalorder %s5366_s0, 3 }
   0x8   : > { %p541_p2 = pnand %p4566_p0, %p540_p1 }
   0xa   : > { %544 = sbr.rel (%p541_p2) target bundleno = 4003 (0xfa3), region = 92 }
   0xf   : > { %s7405_s1 = sld [smem:[#allocation18_spill]]  ;;  %p601_p3 = scmp.lt.s32.totalorder %s4562_s30, 1  ;;  %vm7395_vm0 = vcmask 523264   ;;  %vm7400_vm1 = vcmask 261120   ;;  %v5368_v26 = vmov 32.0   ;;  %v5084_v55 = vld [vmem:[%s7363_s5 + $0x8] sm:$0xff] }
  0x10   : > { %s7406_s27 = sld [smem:[#allocation17_spill]]  ;;  %5174 = vrcp.f32 %v5368_v26  ;;  %v5088_v56 = vld [vmem:[%s7363_s5 + $0x28] sm:$0xff]  ;;  %855 = vmatpush.bf16.msra.mxu1 %v5084_v55  ;;  %5143 = vmatpush.bf16.msra.mxu2 %v5084_v55  ;;  %v5083_v59 = vld [vmem:[%s7363_s5] sm:$0xff]  ;;  %vm7396_vm15 = vcmask 64512   ;;  %s5371_s26 = smov 64  }
  0x11   : > { %s7568_s30 = smov (!%p601_p3, %s4562_s30), 1  ;;  %s7407_s2 = sld [smem:[#allocation19_spill]]  ;;  %v5096_v57 = vld [vmem:[%s7364_s6 + $0x28] sm:$0xff]  ;;  %917 = vmatpush.bf16.msra.mxu3 %v5088_v56  ;;  %v5087_v60 = vld [vmem:[%s7363_s5 + $0x20] sm:$0xff] }
  0x12   : > { %s7381_s23 = sshll.u32 %s7568_s30, 5  ;;  %v5095_v61 = vld [vmem:[%s7364_s6 + $0x20] sm:$0xff]  ;;  %s7408_s3 = sld [smem:[#allocation20_spill]] }
  0x13   : > { %s7557_s29 = sshll.u32 %s7568_s30, 5 }
  0x14   : > { %856 = vmatpush.bf16.msra.mxu1 %v5083_v59  ;;  %5144 = vmatpush.bf16.msra.mxu2 %v5083_v59  ;;  %s7318_s24 = scalar_lea.vmem %s7376_s18, %s7557_s29 }
  0x15   : > { %v5082_v0 = vld [vmem:[%s7405_s1 + $0x18] sm:$0xff]  ;;  %v5081_v1 = vld [vmem:[%s7405_s1 + $0x10] sm:$0xff]  ;;  %v5080_v2 = vld [vmem:[%s7405_s1 + $0x8] sm:$0xff]  ;;  %918 = vmatpush.bf16.msra.mxu3 %v5087_v60 }
  0x16   : > { %674 = vmatpush.bf16.msra.mxu0 %v5082_v0  ;;  %s605_s28 = scalar_lea.vmem %s7406_s27, %s7381_s23  ;;  %v5079_v3 = vld [vmem:[%s7405_s1] sm:$0xff]  ;;  %v5175_v27 = vpop.eup %5174  ;;  %s5370_s23 = smov 32  }
  0x17   : > { %v621_v4 = vld [vmem:[%s605_s28] sm:$0xff]  ;;  %v622_v5 = vld [vmem:[%s605_s28 + $0x8] sm:$0xff]  ;;  %v623_v7 = vld [vmem:[%s605_s28 + $0x10] sm:$0xff]  ;;  %v705_v28 = vmul.f32 32.0, %v5175_v27  ;;  %vm709_vm2 = vweird.f32 %v5175_v27  ;;  %s5372_s27 = smov 96  }
  0x18   : > { %v625_v6 = vpack.c.bf16 %v622_v5, %v621_v4  ;;  %v624_v8 = vld [vmem:[%s605_s28 + $0x18] sm:$0xff]  ;;  %v635_v10 = vld [vmem:[%s7407_s2] sm:$0xff]  ;;  %v636_v14 = vld [vmem:[%s7407_s2 + $0x8] sm:$0xff] }
  0x19   : > { %v626_v9 = vpack.c.bf16 %v624_v8, %v623_v7  ;;  %v637_v18 = vld [vmem:[%s7407_s2 + $0x10] sm:$0xff]  ;;  %v638_v22 = vld [vmem:[%s7407_s2 + $0x18] sm:$0xff]  ;;  %v706_v29 = vsub.f32 1.0, %v705_v28 }
  0x1a   : > { %675 = vmatpush.bf16.msra.mxu0 %v5081_v1 }
  0x1b   : > { %v707_v30 = vmul.f32 %v5175_v27, %v706_v29 }
  0x1d   : > { %v708_v31 = vadd.f32 %v5175_v27, %v707_v30 }
  0x1e   : > { %676 = vmatpush.bf16.msra.mxu0 %v5080_v2 }
  0x1f   : > { %v5531_v32 = vsel %vm709_vm2, %v5175_v27, %v708_v31  ;;  %v5159_v27 = vld [vmem:[%s7362_s4] ss:$0 sm:$0xff] }
  0x22   : > { %677 = vmatpush.bf16.msra.mxu0 %v5079_v3 }
  0x25   : > { %4589 = vmatmul.msk.bf16.vlgmr.msra.gmra.mxu0 %vm7395_vm0, %v625_v6 }
  0x26   : > { %1057 = vmatpush.bf16.msrb.mxu0 %v5096_v57 }
  0x2a   : > { %1058 = vmatpush.bf16.msrb.mxu0 %v5095_v61 }
  0x35   : > { %4590 = vmatmul.msk.bf16.gmra.mxu0 %vm7395_vm0, %v626_v9 }
  0xa2   : > { %v679_v11 = vpop.f32.mrf.mxu0 }
  0xa3   : > { %v5506_v12 = vadd.f32 %v679_v11, %v635_v10  ;;  %v5090_v10 = vld [vmem:[%s7363_s5 + $0x38] sm:$0xff] }
  0xa4   : > { %948 = vmatpush.bf16.msrb.mxu1 %v5090_v10 }
  0xa5   : > { %v692_v13 = vsel %vm7400_vm1, %v5506_v12, 0.0 }
  0xa6   : > { %693 = vadd.xlane.f32.xlu1 %v692_v13 }
  0xaa   : > { %v681_v15 = vpop.f32.mrf.mxu0 }
  0xab   : > { %v5513_v16 = vadd.f32 %v681_v15, %v636_v14 }
  0xad   : > { %v695_v17 = vsel %vm7400_vm1, %v5513_v16, 0.0 }
  0xae   : > { %696 = vadd.xlane.f32.xlu1 %v695_v17  ;;  %v5588_v17 = vld [vmem:[%s7408_s3] ss:$0 sm:$0xff] }
  0xb2   : > { %v684_v19 = vpop.f32.mrf.mxu0 }
  0xb3   : > { %v5520_v20 = vadd.f32 %v684_v19, %v637_v18  ;;  %v5089_v19 = vld [vmem:[%s7363_s5 + $0x30] sm:$0xff] }
  0xb4   : > { %949 = vmatpush.bf16.msrb.mxu1 %v5089_v19  ;;  %v5099_v19 = vld [vmem:[%s7365_s7] sm:$0xff] }
  0xb5   : > { %v698_v21 = vsel %vm7400_vm1, %v5520_v20, 0.0 }
  0xb6   : > { %699 = vadd.xlane.f32.xlu0 %v698_v21 }
  0xba   : > { %v686_v23 = vpop.f32.mrf.mxu0 }
  0xbb   : > { %v5527_v24 = vadd.f32 %v686_v23, %v638_v22 }
  0xbd   : > { %v701_v25 = vsel %vm7400_vm1, %v5527_v24, 0.0 }
  0xbe   : > { %702 = vadd.xlane.f32.xlu0 %v701_v25 }
 0x119   : > { %v694_v33 = vpop.xlane.xlu1 %693 }
 0x11a   : > { %v711_v34 = vmul.f32 %v5531_v32, %v694_v33  ;;  %v5086_v33 = vld [vmem:[%s7363_s5 + $0x18] sm:$0xff] }
 0x11b   : > { %886 = vmatpush.bf16.msrb.mxu2 %v5086_v33 }
 0x11c   : > { %v5535_v35 = vsub.f32 %v5506_v12, %v711_v34  ;;  %v5094_v34 = vld [vmem:[%s7364_s6 + $0x18] sm:$0xff] }
 0x11d   : > { %1026 = vmatpush.bf16.msrb.mxu3 %v5094_v34 }
 0x11e   : > { %v719_v36 = vmul.f32 %v5535_v35, %v5535_v35 }
 0x120   : > { %v723_v37 = vsel %vm7400_vm1, %v719_v36, 0.0 }
 0x121   : > { %724 = vadd.xlane.f32.xlu0 %v723_v37  ;;  %v697_v38 = vpop.xlane.xlu1 %696 }
 0x122   : > { %v712_v39 = vmul.f32 %v5531_v32, %v697_v38  ;;  %v5085_v38 = vld [vmem:[%s7363_s5 + $0x10] sm:$0xff] }
 0x123   : > { %887 = vmatpush.bf16.msrb.mxu2 %v5085_v38 }
 0x124   : > { %v5542_v40 = vsub.f32 %v5513_v16, %v712_v39  ;;  %v5093_v39 = vld [vmem:[%s7364_s6 + $0x10] sm:$0xff] }
 0x125   : > { %1027 = vmatpush.bf16.msrb.mxu3 %v5093_v39 }
 0x126   : > { %v720_v41 = vmul.f32 %v5542_v40, %v5542_v40 }
 0x128   : > { %v726_v42 = vsel %vm7400_vm1, %v720_v41, 0.0 }
 0x129   : > { %v700_v43 = vpop.xlane.xlu0 %699  ;;  %727 = vadd.xlane.f32.xlu1 %v726_v42 }
 0x12a   : > { %v713_v44 = vmul.f32 %v5531_v32, %v700_v43  ;;  %v5103_v43 = vld [vmem:[%s7365_s7 + $0x20] sm:$0xff] }
 0x12c   : > { %v5549_v45 = vsub.f32 %v5520_v20, %v713_v44 }
 0x12e   : > { %v721_v46 = vmul.f32 %v5549_v45, %v5549_v45 }
 0x130   : > { %v729_v47 = vsel %vm7400_vm1, %v721_v46, 0.0 }
 0x131   : > { %730 = vadd.xlane.f32.xlu2 %v729_v47  ;;  %v703_v48 = vpop.xlane.xlu0 %702 }
 0x132   : > { %v714_v49 = vmul.f32 %v5531_v32, %v703_v48 }
 0x134   : > { %v5556_v50 = vsub.f32 %v5527_v24, %v714_v49 }
 0x136   : > { %v722_v51 = vmul.f32 %v5556_v50, %v5556_v50 }
 0x138   : > { %v732_v52 = vsel %vm7400_vm1, %v722_v51, 0.0 }
 0x139   : > { %733 = vadd.xlane.f32.xlu2 %v732_v52 }
 0x194   : > { %v725_v53 = vpop.xlane.xlu0 %724 }
 0x195   : > { %v735_v54 = vmul.f32 %v725_v53, %v5531_v32 }
 0x197   : > { %v739_v58 = vadd.f32 1e-05, %v735_v54 }
 0x199   : > { %5176 = vrsqrt.f32 %v739_v58  ;;  %vm749_vm4 = vweird.f32 %v739_v58 }
 0x19c   : > { %v728_v62 = vpop.xlane.xlu1 %727 }
 0x19d   : > { %v736_v63 = vmul.f32 %v728_v62, %v5531_v32 }
 0x19f   : > { %v5177_v0 = vpop.eup %5176  ;;  %v740_v1 = vadd.f32 1e-05, %v736_v63 }
 0x1a0   : > { %v744_v2 = vmul.f32 %v5177_v0, %v739_v58  ;;  %vm750_vm3 = vweird.f32 %v5177_v0 }
 0x1a1   : > { %5178 = vrsqrt.f32 %v740_v1  ;;  %vm751_vm5 = vmor %vm749_vm4, %vm750_vm3  ;;  %vm759_vm7 = vweird.f32 %v740_v1 }
 0x1a2   : > { %v745_v3 = vmul.f32 %v5177_v0, %v744_v2 }
 0x1a4   : > { %v746_v4 = vmul.f32 0.5, %v745_v3  ;;  %v731_v5 = vpop.xlane.xlu2 %730 }
 0x1a5   : > { %v737_v6 = vmul.f32 %v731_v5, %v5531_v32 }
 0x1a6   : > { %v747_v7 = vsub.f32 1.5, %v746_v4 }
 0x1a7   : > { %v5179_v8 = vpop.eup %5178  ;;  %v741_v9 = vadd.f32 1e-05, %v737_v6 }
 0x1a8   : > { %v748_v11 = vmul.f32 %v5177_v0, %v747_v7  ;;  %v754_v13 = vmul.f32 %v5179_v8, %v740_v1  ;;  %vm760_vm6 = vweird.f32 %v5179_v8  ;;  %v5097_v1 = vld [vmem:[%s7364_s6 + $0x30] sm:$0xff] }
 0x1a9   : > { %5180 = vrsqrt.f32 %v741_v9  ;;  %vm761_vm8 = vmor %vm759_vm7, %vm760_vm6  ;;  %vm769_vm10 = vweird.f32 %v741_v9 }
 0x1aa   : > { %v752_v14 = vsel %vm751_vm5, %v5177_v0, %v748_v11  ;;  %v755_v15 = vmul.f32 %v5179_v8, %v754_v13  ;;  %v5098_v0 = vld [vmem:[%s7364_s6 + $0x38] sm:$0xff]  ;;  %v5091_v13 = vld [vmem:[%s7364_s6] sm:$0xff] }
 0x1ab   : > { %v783_v18 = vmul.f32 %v752_v14, %v5535_v35  ;;  %v5104_v35 = vld [vmem:[%s7365_s7 + $0x28] sm:$0xff]  ;;  %v5102_v11 = vld [vmem:[%s7365_s7 + $0x18] sm:$0xff]  ;;  %v5101_v14 = vld [vmem:[%s7365_s7 + $0x10] sm:$0xff] }
 0x1ac   : > { %v756_v21 = vmul.f32 0.5, %v755_v15  ;;  %v734_v22 = vpop.xlane.xlu2 %733  ;;  %1197 = vmatpush.bf16.msra.mxu0 %v5104_v35  ;;  %v5106_v15 = vld [vmem:[%s7365_s7 + $0x38] sm:$0xff] }
 0x1ad   : > { %v738_v23 = vmul.f32 %v734_v22, %v5531_v32  ;;  %v790_v28 = vmul.f32 %v5588_v17, %v783_v18  ;;  %v5100_v18 = vld [vmem:[%s7365_s7 + $0x8] sm:$0xff] }
 0x1ae   : > { %v757_v25 = vsub.f32 1.5, %v756_v21 }
 0x1af   : > { %v5181_v26 = vpop.eup %5180  ;;  %v742_v29 = vadd.f32 1e-05, %v738_v23  ;;  %v797_v41 = vadd.f32 %v5159_v27, %v790_v28 }
 0x1b0   : > { %v758_v30 = vmul.f32 %v5179_v8, %v757_v25  ;;  %v764_v31 = vmul.f32 %v5181_v26, %v741_v9  ;;  %vm770_vm9 = vweird.f32 %v5181_v26  ;;  %1198 = vmatpush.bf16.msra.mxu0 %v5103_v43 }
 0x1b1   : > { %5182 = vrsqrt.f32 %v742_v29  ;;  %v801_v49 = vpack.c.bf16 %v797_v41, %v797_v41  ;;  %vm771_vm11 = vmor %vm769_vm10, %vm770_vm9  ;;  %vm779_vm13 = vweird.f32 %v742_v29 }
 0x1b2   : > { %v762_v36 = vsel %vm761_vm8, %v5179_v8, %v758_v30  ;;  %v765_v37 = vmul.f32 %v5181_v26, %v764_v31 }
 0x1b3   : > { %v784_v42 = vmul.f32 %v762_v36, %v5542_v40  ;;  %v825_v56 = vunpack.c.l.b16 %v801_v49 }
 0x1b4   : > { %v766_v44 = vmul.f32 0.5, %v765_v37 }
 0x1b5   : > { %v791_v46 = vmul.f32 %v5588_v17, %v784_v42 }
 0x1b6   : > { %v767_v47 = vsub.f32 1.5, %v766_v44 }
 0x1b7   : > { %v5183_v48 = vpop.eup %5182  ;;  %v798_v51 = vadd.f32 %v5159_v27, %v791_v46 }
 0x1b8   : > { %v768_v52 = vmul.f32 %v5181_v26, %v767_v47  ;;  %v774_v53 = vmul.f32 %v5183_v48, %v742_v29  ;;  %vm780_vm12 = vweird.f32 %v5183_v48 }
 0x1b9   : > { %v802_v40 = vpack.c.bf16 %v798_v51, %v798_v51  ;;  %vm781_vm14 = vmor %vm779_vm13, %vm780_vm12 }
 0x1ba   : > { %v772_v54 = vsel %vm771_vm11, %v5181_v26, %v768_v52  ;;  %v775_v55 = vmul.f32 %v5183_v48, %v774_v53 }
 0x1bb   : > { %v826_v57 = vunpack.c.l.b16 %v802_v40  ;;  %v785_v58 = vmul.f32 %v772_v54, %v5549_v45 }
 0x1bc   : > { %v776_v59 = vmul.f32 0.5, %v775_v55 }
 0x1bd   : > { %v829_v60 = vpack.c.b16 %v826_v57, %v825_v56  ;;  %v792_v62 = vmul.f32 %v5588_v17, %v785_v58 }
 0x1be   : > { %v777_v61 = vsub.f32 1.5, %v776_v59 }
 0x1bf   : > { %4599 = vmatmul.msk.bf16.vlgmr.msra.gmra.mxu1 %vm7400_vm1, %v829_v60  ;;  %4619 = vmatmul.msk.bf16.vlgmr.msra.gmra.mxu3 %vm7400_vm1, %v829_v60  ;;  %v799_v2 = vadd.f32 %v5159_v27, %v792_v62 }
 0x1c0   : > { %v778_v63 = vmul.f32 %v5183_v48, %v777_v61  ;;  %4659 = vmatmul.msk.bf16.vlgmr.msrb.gmra.mxu0 %vm7400_vm1, %v829_v60  ;;  %1088 = vmatpush.bf16.msra.mxu1 %v5098_v0 }
 0x1c1   : > { %v803_v5 = vpack.c.bf16 %v799_v2, %v799_v2  ;;  %1166 = vmatpush.bf16.msra.mxu3 %v5102_v11 }
 0x1c2   : > { %v782_v45 = vsel %vm781_vm14, %v5183_v48, %v778_v63 }
 0x1c3   : > { %v786_v3 = vmul.f32 %v782_v45, %v5556_v50  ;;  %v827_v8 = vunpack.c.l.b16 %v803_v5  ;;  %v5092_v50 = vld [vmem:[%s7364_s6 + $0x8] sm:$0xff] }
 0x1c4   : > { %1089 = vmatpush.bf16.msra.mxu1 %v5097_v1 }
 0x1c5   : > { %v793_v4 = vmul.f32 %v5588_v17, %v786_v3  ;;  %1167 = vmatpush.bf16.msra.mxu3 %v5101_v14  ;;  %v5105_v17 = vld [vmem:[%s7365_s7 + $0x30] sm:$0xff] }
 0x1c7   : > { %v800_v6 = vadd.f32 %v5159_v27, %v793_v4 }
 0x1c9   : > { %v804_v7 = vpack.c.bf16 %v800_v6, %v800_v6 }
 0x1cb   : > { %v828_v9 = vunpack.c.l.b16 %v804_v7 }
 0x1cd   : > { %v830_v10 = vpack.c.b16 %v828_v9, %v827_v8  ;;  %v617_v8 = vlaneseq }
 0x1cf   : > { %4600 = vmatmul.msk.bf16.vlgmr.msra.gmra.mxu2 %vm7400_vm1, %v830_v10  ;;  %4620 = vmatmul.msk.bf16.gmra.mxu3 %vm7400_vm1, %v830_v10 }
 0x1d0   : > { %4629 = vmatmul.msk.bf16.vlgmr.msrb.gmra.mxu1 %vm7400_vm1, %v829_v60  ;;  %4660 = vmatmul.msk.bf16.gmra.mxu0 %vm7400_vm1, %v830_v10 }
 0x1d1   : > { %995 = vmatpush.bf16.msra.mxu2 %v5092_v50  ;;  %1228 = vmatpush.bf16.msrb.mxu1 %v5106_v15  ;;  %v5369_v50 = vmov -1e+30  }
 0x1d5   : > { %996 = vmatpush.bf16.msra.mxu2 %v5091_v13  ;;  %1229 = vmatpush.bf16.msrb.mxu1 %v5105_v17 }
 0x1df   : > { %4609 = vmatmul.msk.bf16.vlgmr.msrb.gmra.mxu2 %vm7400_vm1, %v829_v60  ;;  %4649 = vmatmul.msk.bf16.vlgmr.msrb.gmra.mxu3 %vm7400_vm1, %v829_v60 }
 0x1e0   : > { %4630 = vmatmul.msk.bf16.gmra.mxu1 %vm7400_vm1, %v830_v10  ;;  %4699 = vmatmul.msk.bf16.vlgmr.msra.gmra.mxu0 %vm7400_vm1, %v829_v60 }
 0x1e1   : > { %1135 = vmatpush.bf16.msrb.mxu2 %v5100_v18 }
 0x1e5   : > { %1136 = vmatpush.bf16.msrb.mxu2 %v5099_v19 }
 0x1ef   : > { %4610 = vmatmul.msk.bf16.gmra.mxu2 %vm7400_vm1, %v830_v10  ;;  %4650 = vmatmul.msk.bf16.gmra.mxu3 %vm7400_vm1, %v830_v10 }
 0x1f0   : > { %4669 = vmatmul.msk.bf16.vlgmr.msra.gmra.mxu1 %vm7400_vm1, %v829_v60  ;;  %4700 = vmatmul.msk.bf16.gmra.mxu0 %vm7400_vm1, %v830_v10 }
 0x1ff   : > { %4639 = vmatmul.msk.bf16.vlgmr.msra.gmra.mxu2 %vm7400_vm1, %v829_v60  ;;  %4689 = vmatmul.msk.bf16.vlgmr.msra.gmra.mxu3 %vm7400_vm1, %v829_v60 }
 0x200   : > { %4670 = vmatmul.msk.bf16.gmra.mxu1 %vm7400_vm1, %v830_v10 }
 0x20f   : > { %4640 = vmatmul.msk.bf16.gmra.mxu2 %vm7400_vm1, %v830_v10  ;;  %4690 = vmatmul.msk.bf16.gmra.mxu3 %vm7400_vm1, %v830_v10 }
 0x210   : > { %4709 = vmatmul.msk.bf16.vlgmr.msrb.gmra.mxu1 %vm7400_vm1, %v829_v60 }
 0x21f   : > { %4679 = vmatmul.msk.bf16.vlgmr.msrb.gmra.mxu2 %vm7400_vm1, %v829_v60 }
 0x220   : > { %4710 = vmatmul.msk.bf16.gmra.mxu1 %vm7400_vm1, %v830_v10 }
 0x22f   : > { %4680 = vmatmul.msk.bf16.gmra.mxu2 %vm7400_vm1, %v830_v10  ;;  %v618_v10 = vand.u32 127, %v617_v8 }
 0x231   : > { %vm619_vm2 = vcmp.lt.s32.totalorder %v618_v10, 17 }
 0x232   : > { %v5724_v11 = vsel %vm619_vm2, 0.0, %v5369_v50 }
 0x23c   : > { %v5677_v21 = vpop.f32.mrf.mxu1 }
 0x23d   : > { %v1060_v22 = vpop.f32.mrf.mxu0 }
 0x242   : > { %v920_v23 = vpop.f32.mrf.mxu3 }
 0x244   : > { %v5679_v25 = vpop.f32.mrf.mxu1 }
 0x245   : > { %v1062_v26 = vpop.f32.mrf.mxu0 }
 0x24a   : > { %v922_v27 = vpop.f32.mrf.mxu3 }
 0x24d   : > { %v951_v28 = vpop.f32.mrf.mxu1  ;;  %v1065_v29 = vpop.f32.mrf.mxu0 }
 0x252   : > { %v5681_v30 = vpop.f32.mrf.mxu2  ;;  %v925_v31 = vpop.f32.mrf.mxu3 }
 0x255   : > { %v953_v33 = vpop.f32.mrf.mxu1  ;;  %v1067_v34 = vpop.f32.mrf.mxu0 }
 0x256   : > { %4727 = vmatpush.xpose.msk.msrb.mxu0 %vm7396_vm15, %v1067_v34 }
 0x25a   : > { %4728 = vmatpush.xpose.msk.msrb.mxu0 %vm7396_vm15, %v1065_v29  ;;  %v5685_v35 = vpop.f32.mrf.mxu2  ;;  %v927_v36 = vpop.f32.mrf.mxu3 }
 0x25d   : > { %v956_v37 = vpop.f32.mrf.mxu1  ;;  %v1200_v38 = vpop.f32.mrf.mxu0 }
 0x25e   : > { %4729 = vmatpush.xpose.msk.msrb.mxu0 %vm7396_vm15, %v1062_v26 }
 0x262   : > { %4730 = vmatpush.xpose.msk.msrb.mxu0 %vm7396_vm15, %v1060_v22  ;;  %v889_v39 = vpop.f32.mrf.mxu2  ;;  %v1029_v41 = vpop.f32.mrf.mxu3 }
 0x265   : > { %v5689_v42 = vpop.f32.mrf.mxu1  ;;  %v1202_v43 = vpop.f32.mrf.mxu0  ;;  %4731 = vmatmul.msk.f32.vlgmr.msrb.gmra.mxu0 %vm7396_vm15, %v920_v23 }
 0x26a   : > { %v891_v44 = vpop.f32.mrf.mxu2  ;;  %v1031_v46 = vpop.f32.mrf.mxu3 }
 0x26d   : > { %v1091_v47 = vpop.f32.mrf.mxu1  ;;  %v1205_v48 = vpop.f32.mrf.mxu0  ;;  %4732 = vmatmul.msk.f32.gmra.mxu0 %vm7396_vm15, %v922_v27 }
 0x272   : > { %v894_v49 = vpop.f32.mrf.mxu2  ;;  %v1034_v51 = vpop.f32.mrf.mxu3 }
 0x275   : > { %v1093_v52 = vpop.f32.mrf.mxu1  ;;  %v1207_v53 = vpop.f32.mrf.mxu0  ;;  %4733 = vmatmul.msk.f32.gmra.mxu0 %vm7396_vm15, %v925_v31 }
 0x276   : > { %2001 = vmatpush.msra.mxu0 %v1207_v53 }
 0x278   : > { %2002 = vmatpush.msra.mxu0 %v1205_v48 }
 0x27a   : > { %2003 = vmatpush.msra.mxu0 %v1202_v43  ;;  %v896_v40 = vpop.f32.mrf.mxu2  ;;  %v1036_v54 = vpop.f32.mrf.mxu3 }
 0x27b   : > { %4719 = vmatpush.xpose.msk.msrb.mxu3 %vm7396_vm15, %v1036_v54 }
 0x27c   : > { %2004 = vmatpush.msra.mxu0 %v1200_v38 }
 0x27d   : > { %v1096_v55 = vpop.f32.mrf.mxu1  ;;  %4734 = vmatmul.msk.f32.gmra.mxu0 %vm7396_vm15, %v927_v36 }
 0x27f   : > { %4720 = vmatpush.xpose.msk.msrb.mxu3 %vm7396_vm15, %v1034_v51 }
 0x282   : > { %v998_v56 = vpop.f32.mrf.mxu2  ;;  %v1169_v57 = vpop.f32.mrf.mxu3 }
 0x283   : > { %4721 = vmatpush.xpose.msk.msrb.mxu3 %vm7396_vm15, %v1031_v46 }
 0x285   : > { %v1098_v58 = vpop.f32.mrf.mxu1 }
 0x286   : > { %4735 = vmatpush.xpose.msk.msra.mxu1 %vm7396_vm15, %v1098_v58 }
 0x287   : > { %4722 = vmatpush.xpose.msk.msrb.mxu3 %vm7396_vm15, %v1029_v41 }
 0x28a   : > { %4736 = vmatpush.xpose.msk.msra.mxu1 %vm7396_vm15, %v1096_v55  ;;  %v1000_v59 = vpop.f32.mrf.mxu2  ;;  %v1171_v60 = vpop.f32.mrf.mxu3  ;;  %4723 = vmatmul.msk.f32.vlgmr.msrb.gmra.mxu3 %vm7396_vm15, %v889_v39 }
 0x28d   : > { %v1231_v61 = vpop.f32.mrf.mxu1 }
 0x28e   : > { %4737 = vmatpush.xpose.msk.msra.mxu1 %vm7396_vm15, %v1093_v52 }
 0x292   : > { %4738 = vmatpush.xpose.msk.msra.mxu1 %vm7396_vm15, %v1091_v47  ;;  %v1003_v62 = vpop.f32.mrf.mxu2  ;;  %v1174_v63 = vpop.f32.mrf.mxu3  ;;  %4724 = vmatmul.msk.f32.gmra.mxu3 %vm7396_vm15, %v891_v44 }
 0x295   : > { %v1233_v0 = vpop.f32.mrf.mxu1  ;;  %4739 = vmatmul.msk.f32.vlgmr.msra.gmra.mxu1 %vm7396_vm15, %v951_v28 }
 0x29a   : > { %v1005_v45 = vpop.f32.mrf.mxu2  ;;  %v1176_v1 = vpop.f32.mrf.mxu3  ;;  %4725 = vmatmul.msk.f32.gmra.mxu3 %vm7396_vm15, %v894_v49 }
 0x29b   : > { %4711 = vmatpush.xpose.msk.msra.mxu2 %vm7396_vm15, %v1005_v45  ;;  %1964 = vmatpush.msra.mxu3 %v1176_v1 }
 0x29d   : > { %v1236_v2 = vpop.f32.mrf.mxu1  ;;  %4740 = vmatmul.msk.f32.gmra.mxu1 %vm7396_vm15, %v953_v33  ;;  %1965 = vmatpush.msra.mxu3 %v1174_v63 }
 0x29f   : > { %4712 = vmatpush.xpose.msk.msra.mxu2 %vm7396_vm15, %v1003_v62  ;;  %1966 = vmatpush.msra.mxu3 %v1171_v60 }
 0x2a1   : > { %1967 = vmatpush.msra.mxu3 %v1169_v57 }
 0x2a2   : > { %v1138_v3 = vpop.f32.mrf.mxu2  ;;  %4726 = vmatmul.msk.f32.gmra.mxu3 %vm7396_vm15, %v896_v40 }
 0x2a3   : > { %4713 = vmatpush.xpose.msk.msra.mxu2 %vm7396_vm15, %v1000_v59 }
 0x2a5   : > { %v1238_v4 = vpop.f32.mrf.mxu1  ;;  %4741 = vmatmul.msk.f32.gmra.mxu1 %vm7396_vm15, %v956_v37 }
 0x2a6   : > { %2038 = vmatpush.msrb.mxu1 %v1238_v4 }
 0x2a7   : > { %4714 = vmatpush.xpose.msk.msra.mxu2 %vm7396_vm15, %v998_v56 }
 0x2a8   : > { %2039 = vmatpush.msrb.mxu1 %v1236_v2 }
 0x2aa   : > { %2040 = vmatpush.msrb.mxu1 %v1233_v0  ;;  %v1140_v5 = vpop.f32.mrf.mxu2  ;;  %4715 = vmatmul.msk.f32.vlgmr.msra.gmra.mxu2 %vm7396_vm15, %v5677_v21 }
 0x2ac   : > { %2041 = vmatpush.msrb.mxu1 %v1231_v61 }
 0x2ad   : > { %4742 = vmatmul.msk.f32.gmra.mxu1 %vm7396_vm15, %v5689_v42 }
 0x2b2   : > { %v1143_v6 = vpop.f32.mrf.mxu2  ;;  %4716 = vmatmul.msk.f32.gmra.mxu2 %vm7396_vm15, %v5679_v25 }
 0x2ba   : > { %v1145_v7 = vpop.f32.mrf.mxu2  ;;  %4717 = vmatmul.msk.f32.gmra.mxu2 %vm7396_vm15, %v5681_v30 }
 0x2bb   : > { %1927 = vmatpush.msrb.mxu2 %v1145_v7 }
 0x2bd   : > { %1928 = vmatpush.msrb.mxu2 %v1143_v6 }
 0x2bf   : > { %1929 = vmatpush.msrb.mxu2 %v1140_v5 }
 0x2c1   : > { %1930 = vmatpush.msrb.mxu2 %v1138_v3 }
 0x2c2   : > { %4718 = vmatmul.msk.f32.gmra.mxu2 %vm7396_vm15, %v5685_v35 }
 0x2e2   : > { %v1389_v9 = vpop.f32.mrf.mxu0 }
 0x2e3   : > { %v5737_v21 = vadd.f32 %v1389_v9, %v5724_v11 }
 0x2e5   : > { %v1478_v25 = vsel %vm7400_vm1, %v5737_v21, -inf }
 0x2ea   : > { %v1392_v13 = vpop.f32.mrf.mxu0 }
 0x2eb   : > { %v5727_v14 = vadd.f32 %v1392_v13, %v5724_v11 }
 0x2ed   : > { %v1481_v15 = vsel %vm7400_vm1, %v5727_v14, -inf }
 0x2ee   : > { %1482 = vmax.xlane.f32.xlu1 %v1481_v15 }
 0x2f2   : > { %v1395_v51 = vpop.f32.mrf.mxu0 }
 0x2f3   : > { %v5792_v59 = vadd.f32 %v1395_v51, %v5724_v11 }
 0x2f5   : > { %v1484_v61 = vsel %vm7400_vm1, %v5792_v59, -inf }
 0x2fa   : > { %v1398_v58 = vpop.f32.mrf.mxu0 }
 0x2fb   : > { %v5795_v60 = vadd.f32 %v1398_v58, %v5724_v11 }
 0x2fd   : > { %v1487_v62 = vsel %vm7400_vm1, %v5795_v60, -inf }
 0x30d   : > { %v1336_v17 = vpop.f32.mrf.mxu3 }
 0x30e   : > { %v5732_v18 = vadd.f32 %v1336_v17, %v5724_v11 }
 0x310   : > { %v1466_v19 = vsel %vm7400_vm1, %v5732_v18, -inf }
 0x311   : > { %1467 = vmax.xlane.f32.xlu0 %v1466_v19 }
 0x312   : > { %v1442_v22 = vpop.f32.mrf.mxu1 }
 0x313   : > { %v5742_v26 = vadd.f32 %v1442_v22, %v5724_v11 }
 0x315   : > { %v1339_v23 = vpop.f32.mrf.mxu3  ;;  %v1490_v29 = vsel %vm7400_vm1, %v5742_v26, -inf }
 0x316   : > { %v5762_v41 = vadd.f32 %v1339_v23, %v5724_v11 }
 0x318   : > { %v1469_v44 = vsel %vm7400_vm1, %v5762_v41, -inf }
 0x319   : > { %1479 = vmax.xlane.f32.xlu0 %v1478_v25 }
 0x31a   : > { %v1445_v28 = vpop.f32.mrf.mxu1 }
 0x31b   : > { %v5782_v40 = vadd.f32 %v1445_v28, %v5724_v11 }
 0x31d   : > { %v1342_v27 = vpop.f32.mrf.mxu3  ;;  %v1493_v57 = vsel %vm7400_vm1, %v5782_v40, -inf }
 0x31e   : > { %v5772_v47 = vadd.f32 %v1342_v27, %v5724_v11 }
 0x320   : > { %v1472_v52 = vsel %vm7400_vm1, %v5772_v47, -inf }
 0x321   : > { %1491 = vmax.xlane.f32.xlu0 %v1490_v29 }
 0x322   : > { %v1448_v34 = vpop.f32.mrf.mxu1 }
 0x323   : > { %v5752_v35 = vadd.f32 %v1448_v34, %v5724_v11 }
 0x325   : > { %v1345_v30 = vpop.f32.mrf.mxu3  ;;  %v1496_v39 = vsel %vm7400_vm1, %v5752_v35, -inf }
 0x326   : > { %v5747_v31 = vadd.f32 %v1345_v30, %v5724_v11 }
 0x328   : > { %v1475_v33 = vsel %vm7400_vm1, %v5747_v31, -inf }
 0x329   : > { %1476 = vmax.xlane.f32.xlu0 %v1475_v33 }
 0x32a   : > { %v1451_v63 = vpop.f32.mrf.mxu1 }
 0x32b   : > { %v5802_v0 = vadd.f32 %v1451_v63, %v5724_v11 }
 0x32d   : > { %v1283_v36 = vpop.f32.mrf.mxu2  ;;  %v1499_v45 = vsel %vm7400_vm1, %v5802_v0, -inf }
 0x32e   : > { %v5755_v37 = vadd.f32 %v1283_v36, %v5724_v11 }
 0x330   : > { %v1454_v38 = vsel %vm7400_vm1, %v5755_v37, -inf }
 0x331   : > { %1455 = vmax.xlane.f32.xlu2 %v1454_v38  ;;  %1497 = vmax.xlane.f32.xlu0 %v1496_v39 }
 0x335   : > { %v1286_v42 = vpop.f32.mrf.mxu2 }
 0x336   : > { %v5765_v43 = vadd.f32 %v1286_v42, %v5724_v11 }
 0x338   : > { %v1457_v46 = vsel %vm7400_vm1, %v5765_v43, -inf }
 0x339   : > { %1470 = vmax.xlane.f32.xlu2 %v1469_v44  ;;  %1458 = vmax.xlane.f32.xlu1 %v1457_v46 }
 0x33d   : > { %v1289_v48 = vpop.f32.mrf.mxu2 }
 0x33e   : > { %v5775_v49 = vadd.f32 %v1289_v48, %v5724_v11 }
 0x340   : > { %v1460_v53 = vsel %vm7400_vm1, %v5775_v49, -inf }
 0x341   : > { %1473 = vmax.xlane.f32.xlu2 %v1472_v52  ;;  %1461 = vmax.xlane.f32.xlu1 %v1460_v53 }
 0x345   : > { %v1292_v54 = vpop.f32.mrf.mxu2 }
 0x346   : > { %v5785_v55 = vadd.f32 %v1292_v54, %v5724_v11 }
 0x348   : > { %v1463_v56 = vsel %vm7400_vm1, %v5785_v55, -inf }
 0x349   : > { %1464 = vmax.xlane.f32.xlu2 %v1463_v56  ;;  %1494 = vmax.xlane.f32.xlu1 %v1493_v57 }
 0x351   : > { %1485 = vmax.xlane.f32.xlu2 %v1484_v61  ;;  %1488 = vmax.xlane.f32.xlu1 %v1487_v62 }
 0x359   : > { %1500 = vmax.xlane.f32.xlu2 %v1499_v45 }
 0x361   : > { %v1483_v1 = vpop.xlane.xlu1 %1482 }
 0x362   : > { %v1511_v2 = vsub.f32 %v5727_v14, %v1483_v1 }
 0x364   : > { %v1536_v3 = vmul.f32 1.442695, %v1511_v2 }
 0x366   : > { %5184 = vpow2.f32 %v1536_v3 }
 0x36c   : > { %v5807_v4 = vpop.eup %5184 }
 0x36d   : > { %v1577_v5 = vsel %vm7400_vm1, %v5807_v4, 0.0 }
 0x36e   : > { %1578 = vadd.xlane.f32.xlu2 %v1577_v5 }
 0x384   : > { %v1468_v6 = vpop.xlane.xlu0 %1467 }
 0x385   : > { %v1506_v7 = vsub.f32 %v5732_v18, %v1468_v6 }
 0x387   : > { %v1526_v8 = vmul.f32 1.442695, %v1506_v7 }
 0x389   : > { %5186 = vpow2.f32 %v1526_v8 }
 0x38c   : > { %v1480_v9 = vpop.xlane.xlu0 %1479 }
 0x38d   : > { %v1510_v10 = vsub.f32 %v5737_v21, %v1480_v9 }
 0x38f   : > { %v5813_v50 = vpop.eup %5186  ;;  %v1534_v13 = vmul.f32 1.442695, %v1510_v10 }
 0x390   : > { %v1562_v14 = vsel %vm7400_vm1, %v5813_v50, 0.0 }
 0x391   : > { %5188 = vpow2.f32 %v1534_v13  ;;  %1563 = vadd.xlane.f32.xlu1 %v1562_v14 }
 0x394   : > { %v1492_v15 = vpop.xlane.xlu0 %1491 }
 0x395   : > { %v1514_v17 = vsub.f32 %v5742_v26, %v1492_v15 }
 0x397   : > { %v5818_v19 = vpop.eup %5188  ;;  %v1542_v22 = vmul.f32 1.442695, %v1514_v17 }
 0x398   : > { %v1574_v18 = vsel %vm7400_vm1, %v5818_v19, 0.0 }
 0x399   : > { %5190 = vpow2.f32 %v1542_v22  ;;  %1575 = vadd.xlane.f32.xlu1 %v1574_v18 }
 0x39c   : > { %v1477_v21 = vpop.xlane.xlu0 %1476 }
 0x39d   : > { %v1509_v23 = vsub.f32 %v5747_v31, %v1477_v21 }
 0x39f   : > { %v5823_v25 = vpop.eup %5190  ;;  %v1532_v27 = vmul.f32 1.442695, %v1509_v23 }
 0x3a0   : > { %v1586_v28 = vsel %vm7400_vm1, %v5823_v25, 0.0 }
 0x3a1   : > { %5192 = vpow2.f32 %v1532_v27  ;;  %1587 = vadd.xlane.f32.xlu1 %v1586_v28 }
 0x3a4   : > { %v1456_v26 = vpop.xlane.xlu2 %1455  ;;  %v1498_v29 = vpop.xlane.xlu0 %1497 }
 0x3a5   : > { %v1502_v30 = vsub.f32 %v5755_v37, %v1456_v26  ;;  %v1516_v33 = vsub.f32 %v5752_v35, %v1498_v29 }
 0x3a7   : > { %v5829_v34 = vpop.eup %5192  ;;  %v1518_v36 = vmul.f32 1.442695, %v1502_v30  ;;  %v1546_v38 = vmul.f32 1.442695, %v1516_v33 }
 0x3a8   : > { %v1571_v31 = vsel %vm7400_vm1, %v5829_v34, 0.0 }
 0x3a9   : > { %5194 = vpow2.f32 %v1518_v36  ;;  %1572 = vadd.xlane.f32.xlu1 %v1571_v31 }
 0x3aa   : > { %5196 = vpow2.f32 %v1546_v38 }
 0x3ac   : > { %v1471_v39 = vpop.xlane.xlu2 %1470  ;;  %v1459_v42 = vpop.xlane.xlu1 %1458 }
 0x3ad   : > { %v1507_v44 = vsub.f32 %v5762_v41, %v1471_v39  ;;  %v1503_v46 = vsub.f32 %v5765_v43, %v1459_v42 }
 0x3af   : > { %v5835_v48 = vpop.eup %5194  ;;  %v1528_v37 = vmul.f32 1.442695, %v1507_v44  ;;  %v1520_v35 = vmul.f32 1.442695, %v1503_v46 }
 0x3b0   : > { %v5837_v51 = vpop.eup %5196  ;;  %v1550_v52 = vsel %vm7400_vm1, %v5835_v48, 0.0 }
 0x3b1   : > { %5198 = vpow2.f32 %v1528_v37  ;;  %1551 = vadd.xlane.f32.xlu0 %v1550_v52  ;;  %v1592_v53 = vsel %vm7400_vm1, %v5837_v51, 0.0 }
 0x3b2   : > { %5200 = vpow2.f32 %v1520_v35  ;;  %1593 = vadd.xlane.f32.xlu1 %v1592_v53 }
 0x3b4   : > { %v1474_v54 = vpop.xlane.xlu2 %1473  ;;  %v1462_v41 = vpop.xlane.xlu1 %1461 }
 0x3b5   : > { %v1508_v43 = vsub.f32 %v5772_v47, %v1474_v54  ;;  %v1504_v56 = vsub.f32 %v5775_v49, %v1462_v41 }
 0x3b7   : > { %v5845_v57 = vpop.eup %5198  ;;  %v1530_v58 = vmul.f32 1.442695, %v1508_v43  ;;  %v1522_v61 = vmul.f32 1.442695, %v1504_v56 }
 0x3b8   : > { %v5847_v62 = vpop.eup %5200  ;;  %v1565_v63 = vsel %vm7400_vm1, %v5845_v57, 0.0 }
 0x3b9   : > { %5202 = vpow2.f32 %v1530_v58  ;;  %v1553_v45 = vsel %vm7400_vm1, %v5847_v62, 0.0  ;;  %1566 = vadd.xlane.f32.xlu0 %v1565_v63 }
 0x3ba   : > { %5204 = vpow2.f32 %v1522_v61  ;;  %1554 = vadd.xlane.f32.xlu2 %v1553_v45 }
 0x3bc   : > { %v1465_v1 = vpop.xlane.xlu2 %1464  ;;  %v1495_v47 = vpop.xlane.xlu1 %1494 }
 0x3bd   : > { %v1505_v49 = vsub.f32 %v5785_v55, %v1465_v1  ;;  %v1515_v2 = vsub.f32 %v5782_v40, %v1495_v47 }
 0x3bf   : > { %v5855_v3 = vpop.eup %5202  ;;  %v1524_v5 = vmul.f32 1.442695, %v1505_v49  ;;  %v1544_v6 = vmul.f32 1.442695, %v1515_v2 }
 0x3c0   : > { %v5857_v7 = vpop.eup %5204  ;;  %v1568_v8 = vsel %vm7400_vm1, %v5855_v3, 0.0 }
 0x3c1   : > { %5206 = vpow2.f32 %v1524_v5  ;;  %v1556_v9 = vsel %vm7400_vm1, %v5857_v7, 0.0  ;;  %1569 = vadd.xlane.f32.xlu0 %v1568_v8 }
 0x3c2   : > { %5208 = vpow2.f32 %v1544_v6  ;;  %1557 = vadd.xlane.f32.xlu2 %v1556_v9 }
 0x3c4   : > { %v1486_v10 = vpop.xlane.xlu2 %1485  ;;  %v1489_v55 = vpop.xlane.xlu1 %1488 }
 0x3c5   : > { %v1512_v40 = vsub.f32 %v5792_v59, %v1486_v10  ;;  %v1513_v13 = vsub.f32 %v5795_v60, %v1489_v55 }
 0x3c7   : > { %v5865_v14 = vpop.eup %5206  ;;  %v1538_v15 = vmul.f32 1.442695, %v1512_v40  ;;  %v1540_v17 = vmul.f32 1.442695, %v1513_v13 }
 0x3c8   : > { %v5867_v22 = vpop.eup %5208  ;;  %v1559_v18 = vsel %vm7400_vm1, %v5865_v14, 0.0 }
 0x3c9   : > { %5210 = vpow2.f32 %v1538_v15  ;;  %v1589_v21 = vsel %vm7400_vm1, %v5867_v22, 0.0  ;;  %1560 = vadd.xlane.f32.xlu0 %v1559_v18 }
 0x3ca   : > { %5212 = vpow2.f32 %v1540_v17  ;;  %1590 = vadd.xlane.f32.xlu2 %v1589_v21 }
 0x3cc   : > { %v1501_v23 = vpop.xlane.xlu2 %1500 }
 0x3cd   : > { %v1517_v59 = vsub.f32 %v5802_v0, %v1501_v23 }
 0x3cf   : > { %v5874_v60 = vpop.eup %5210  ;;  %v1548_v27 = vmul.f32 1.442695, %v1517_v59 }
 0x3d0   : > { %v5876_v28 = vpop.eup %5212  ;;  %v1580_v26 = vsel %vm7400_vm1, %v5874_v60, 0.0 }
 0x3d1   : > { %5214 = vpow2.f32 %v1548_v27  ;;  %v1583_v29 = vsel %vm7400_vm1, %v5876_v28, 0.0  ;;  %1581 = vadd.xlane.f32.xlu0 %v1580_v26 }
 0x3d2   : > { %1584 = vadd.xlane.f32.xlu2 %v1583_v29 }
 0x3d7   : > { %v5882_v30 = vpop.eup %5214 }
 0x3d8   : > { %v1595_v33 = vsel %vm7400_vm1, %v5882_v30, 0.0 }
 0x3d9   : > { %1596 = vadd.xlane.f32.xlu0 %v1595_v33 }
 0x3e1   : > { %v5886_v0 = vpop.xlane.xlu2 %1578 }
 0x3e2   : > { %vm1738_vm12 = vweird.f32 %v5886_v0  ;;  %v1742_v18 = vand.u32 2147483647, %v5886_v0 }
 0x404   : > { %v1564_v36 = vpop.xlane.xlu1 %1563 }
 0x405   : > { %5216 = vrcp.f32 %v1564_v36  ;;  %v1669_v46 = vand.u32 2147483648, %v1564_v36  ;;  %v1667_v52 = vand.u32 2147483647, %v1564_v36  ;;  %vm1663_vm4 = vweird.f32 %v1564_v36 }
 0x406   : > { %5218 = vrcp.f32 %v5886_v0 }
 0x407   : > { %v1670_v41 = vor.u32 1.1754944e-38, %v1669_v46  ;;  %vm1668_vm6 = vcmp.eq.f32.partialorder %v1667_v52, 8.507059e+37 }
 0x40b   : > { %v5217_v38 = vpop.eup %5216 }
 0x40c   : > { %v1659_v31 = vmul.f32 %v5217_v38, %v1564_v36  ;;  %v1576_v39 = vpop.xlane.xlu1 %1575  ;;  %v5219_v42 = vpop.eup %5218  ;;  %vm1664_vm3 = vweird.f32 %v5217_v38 }
 0x40d   : > { %5220 = vrcp.f32 %v1576_v39  ;;  %v1734_v37 = vmul.f32 %v5219_v42, %v5886_v0  ;;  %vm1665_vm5 = vmor %vm1663_vm4, %vm1664_vm3  ;;  %v1729_v47 = vand.u32 2147483648, %v1576_v39  ;;  %v1727_v5 = vand.u32 2147483647, %v1576_v39 }
 0x40e   : > { %v1660_v44 = vsub.f32 1.0, %v1659_v31  ;;  %vm1723_vm8 = vweird.f32 %v1576_v39  ;;  %vm1739_vm10 = vweird.f32 %v5219_v42  ;;  %vm1743_vm3 = vcmp.eq.f32.partialorder %v1742_v18, 8.507059e+37 }
 0x40f   : > { %v1735_v43 = vsub.f32 1.0, %v1734_v37  ;;  %v1730_v9 = vor.u32 1.1754944e-38, %v1729_v47  ;;  %vm1728_vm11 = vcmp.eq.f32.partialorder %v1727_v5, 8.507059e+37  ;;  %vm1740_vm13 = vmor %vm1738_vm12, %vm1739_vm10 }
 0x410   : > { %v1661_v35 = vmul.f32 %v5217_v38, %v1660_v44 }
 0x411   : > { %v1736_v49 = vmul.f32 %v5219_v42, %v1735_v43 }
 0x412   : > { %v1662_v53 = vadd.f32 %v5217_v38, %v1661_v35 }
 0x413   : > { %v5221_v54 = vpop.eup %5220  ;;  %v1737_v40 = vadd.f32 %v5219_v42, %v1736_v49 }
 0x414   : > { %v1666_v56 = vsel %vm1665_vm5, %v5217_v38, %v1662_v53  ;;  %v1719_v58 = vmul.f32 %v5221_v54, %v1576_v39  ;;  %v1588_v61 = vpop.xlane.xlu1 %1587  ;;  %vm1724_vm7 = vweird.f32 %v5221_v54 }
 0x415   : > { %v1671_v63 = vsel %vm1668_vm6, %v1670_v41, %v1666_v56  ;;  %5222 = vrcp.f32 %v1588_v61  ;;  %vm1725_vm9 = vmor %vm1723_vm8, %vm1724_vm7  ;;  %v1789_v21 = vand.u32 2147483648, %v1588_v61  ;;  %v1787_v27 = vand.u32 2147483647, %v1588_v61 }
 0x416   : > { %v1720_v45 = vsub.f32 1.0, %v1719_v58  ;;  %v5891_v1 = vmul.f32 %v5813_v50, %v1671_v63  ;;  %v1744_v50 = vand.u32 2147483648, %v5886_v0  ;;  %v1741_v26 = vsel %vm1740_vm13, %v5219_v42, %v1737_v40 }
 0x417   : > { %vm1783_vm2 = vweird.f32 %v1588_v61  ;;  %vm1788_vm5 = vcmp.eq.f32.partialorder %v1787_v27, 8.507059e+37 }
 0x418   : > { %v1721_v2 = vmul.f32 %v5221_v54, %v1720_v45  ;;  %4747 = vmatmul.msk.f32.vlgmr.msra.gmra.mxu3 %vm7400_vm1, %v5891_v1  ;;  %v1745_v29 = vor.u32 1.1754944e-38, %v1744_v50 }
 0x41a   : > { %v1722_v6 = vadd.f32 %v5221_v54, %v1721_v2  ;;  %v1746_v0 = vsel %vm1743_vm3, %v1745_v29, %v1741_v26 }
 0x41b   : > { %v5223_v8 = vpop.eup %5222  ;;  %v5907_v39 = vmul.f32 %v5807_v4, %v1746_v0 }
 0x41c   : > { %v1726_v10 = vsel %vm1725_vm9, %v5221_v54, %v1722_v6  ;;  %v1779_v55 = vmul.f32 %v5223_v8, %v1588_v61  ;;  %v5901_v23 = vpop.xlane.xlu1 %1572  ;;  %vm1784_vm14 = vweird.f32 %v5223_v8 }
 0x41d   : > { %v1731_v13 = vsel %vm1728_vm11, %v1730_v9, %v1726_v10  ;;  %5224 = vrcp.f32 %v5901_v23  ;;  %vm1785_vm4 = vmor %vm1783_vm2, %vm1784_vm14  ;;  %v1712_v50 = vand.u32 2147483647, %v5901_v23  ;;  %vm1708_vm11 = vweird.f32 %v5901_v23 }
 0x41e   : > { %v1780_v15 = vsub.f32 1.0, %v1779_v55  ;;  %v5898_v17 = vmul.f32 %v5818_v19, %v1731_v13  ;;  %v1790_v19 = vor.u32 1.1754944e-38, %v1789_v21 }
 0x41f   : > { %vm5969_vm2 = vcmp.eq.f32.partialorder %v1712_v50, 8.507059e+37 }
 0x420   : > { %v1781_v59 = vmul.f32 %v5223_v8, %v1780_v15  ;;  %4751 = vmatmul.msk.f32.vlgmr.msra.gmra.mxu0 %vm7400_vm1, %v5898_v17 }
 0x422   : > { %v1782_v33 = vadd.f32 %v5223_v8, %v1781_v59 }
 0x423   : > { %v5912_v42 = vpop.eup %5224 }
 0x424   : > { %v1786_v36 = vsel %vm1785_vm4, %v5223_v8, %v1782_v33  ;;  %v1552_v38 = vpop.xlane.xlu0 %1551  ;;  %v1704_v37 = vmul.f32 %v5912_v42, %v5901_v23  ;;  %v1714_v8 = vand.u32 2147483648, %v5901_v23  ;;  %vm1709_vm10 = vweird.f32 %v5912_v42 }
 0x425   : > { %v1791_v31 = vsel %vm1788_vm5, %v1790_v19, %v1786_v36  ;;  %5226 = vrcp.f32 %v1552_v38  ;;  %v5920_v35 = vpop.xlane.xlu1 %1593  ;;  %v1609_v41 = vand.u32 2147483648, %v1552_v38  ;;  %v1607_v56 = vand.u32 2147483647, %v1552_v38  ;;  %vm5965_vm14 = vmor %vm1708_vm11, %vm1709_vm10 }
 0x426   : > { %v5910_v44 = vmul.f32 %v5823_v25, %v1791_v31  ;;  %v1705_v54 = vsub.f32 1.0, %v1704_v37  ;;  %vm1603_vm7 = vweird.f32 %v1552_v38  ;;  %v1715_v27 = vor.u32 1.1754944e-38, %v1714_v8 }
 0x427   : > { %v1610_v45 = vor.u32 1.1754944e-38, %v1609_v41  ;;  %vm1608_vm9 = vcmp.eq.f32.partialorder %v1607_v56, 8.507059e+37  ;;  %v1819_v31 = vand.u32 2147483648, %v5920_v35 }
 0x428   : > { %7409 = vst [vmem:[#allocation2_spill] sm:$0xff] %v5910_v44  ;;  %4752 = vmatmul.msk.f32.gmra.mxu0 %vm7400_vm1, %v5907_v39  ;;  %4755 = vmatmul.msk.f32.vlgmr.msrb.gmra.mxu1 %vm7400_vm1, %v5910_v44  ;;  %v1706_v63 = vmul.f32 %v5912_v42, %v1705_v54 }
 0x42a   : > { %v5949_v18 = vadd.f32 %v5912_v42, %v1706_v63 }
 0x42b   : > { %v5227_v46 = vpop.eup %5226 }
 0x42c   : > { %v1599_v52 = vmul.f32 %v5227_v46, %v1552_v38  ;;  %v5922_v4 = vpop.xlane.xlu0 %1566  ;;  %vm1604_vm6 = vweird.f32 %v5227_v46 }
 0x42d   : > { %v5924_v53 = vpop.xlane.xlu2 %1554  ;;  %5228 = vrcp.f32 %v5922_v4  ;;  %vm1605_vm8 = vmor %vm1603_vm7, %vm1604_vm6  ;;  %vm1678_vm13 = vweird.f32 %v5922_v4  ;;  %v1682_v19 = vand.u32 2147483647, %v5922_v4 }
 0x42e   : > { %v1600_v25 = vsub.f32 1.0, %v1599_v52  ;;  %5230 = vrcp.f32 %v5924_v53  ;;  %v1624_v29 = vand.u32 2147483648, %v5924_v53  ;;  %v1622_v23 = vand.u32 2147483647, %v5924_v53 }
 0x42f   : > { %5232 = vrcp.f32 %v5920_v35  ;;  %v1711_v52 = vsel %vm5965_vm14, %v5912_v42, %v5949_v18  ;;  %vm1618_vm5 = vweird.f32 %v5924_v53 }
 0x430   : > { %v1601_v43 = vmul.f32 %v5227_v46, %v1600_v25  ;;  %v1625_v56 = vor.u32 1.1754944e-38, %v1624_v29  ;;  %vm1623_vm7 = vcmp.eq.f32.partialorder %v1622_v23, 8.507059e+37 }
 0x432   : > { %v1602_v58 = vadd.f32 %v5227_v46, %v1601_v43 }
 0x433   : > { %v5929_v61 = vpop.eup %5228 }
 0x434   : > { %v5231_v47 = vpop.eup %5230  ;;  %v1606_v49 = vsel %vm1605_vm8, %v5227_v46, %v1602_v58  ;;  %v1674_v2 = vmul.f32 %v5929_v61, %v5922_v4  ;;  %v5934_v5 = vpop.xlane.xlu0 %1569  ;;  %vm1679_vm12 = vweird.f32 %v5929_v61  ;;  %vm1683_vm8 = vcmp.eq.f32.partialorder %v1682_v19, 8.507059e+37 }
 0x435   : > { %v5936_v6 = vpop.eup %5232  ;;  %v1611_v9 = vsel %vm1608_vm9, %v1610_v45, %v1606_v49  ;;  %v1614_v10 = vmul.f32 %v5231_v47, %v5924_v53  ;;  %v5940_v55 = vpop.xlane.xlu2 %1557  ;;  %5234 = vrcp.f32 %v5934_v5  ;;  %vm1619_vm3 = vweird.f32 %v5231_v47  ;;  %vm5978_vm4 = vmor %vm1678_vm13, %vm1679_vm12 }
 0x436   : > { %v1675_v40 = vsub.f32 1.0, %v1674_v2  ;;  %5236 = vrcp.f32 %v5940_v55  ;;  %v5946_v15 = vmul.f32 %v5835_v48, %v1611_v9  ;;  %v1809_v21 = vmul.f32 %v5936_v6, %v5920_v35  ;;  %vm1620_vm6 = vmor %vm1618_vm5, %vm1619_vm3 }
 0x437   : > { %v1615_v13 = vsub.f32 1.0, %v1614_v10  ;;  %v1684_v48 = vand.u32 2147483648, %v5922_v4  ;;  %v1639_v49 = vand.u32 2147483648, %v5940_v55  ;;  %v1699_v50 = vand.u32 2147483648, %v5934_v5 }
 0x438   : > { %7410 = vst [vmem:[#allocation3_spill] sm:$0xff] %v5946_v15  ;;  %v1676_v59 = vmul.f32 %v5929_v61, %v1675_v40  ;;  %4743 = vmatmul.msk.f32.vlgmr.msrb.gmra.mxu2 %vm7400_vm1, %v5946_v15  ;;  %v1810_v25 = vsub.f32 1.0, %v1809_v21  ;;  %v1637_v18 = vand.u32 2147483647, %v5940_v55  ;;  %vm1693_vm10 = vweird.f32 %v5934_v5 }
 0x439   : > { %v1616_v26 = vmul.f32 %v5231_v47, %v1615_v13  ;;  %v1685_v58 = vor.u32 1.1754944e-38, %v1684_v48  ;;  %v1817_v21 = vand.u32 2147483647, %v5920_v35  ;;  %vm1633_vm13 = vweird.f32 %v5940_v55 }
 0x43a   : > { %v1677_v33 = vadd.f32 %v5929_v61, %v1676_v59  ;;  %v1640_v23 = vor.u32 1.1754944e-38, %v1639_v49  ;;  %vm1638_vm14 = vcmp.eq.f32.partialorder %v1637_v18, 8.507059e+37 }
 0x43b   : > { %v5973_v38 = vpop.eup %5234  ;;  %v1617_v46 = vadd.f32 %v5231_v47, %v1616_v26  ;;  %v1811_v26 = vmul.f32 %v5936_v6, %v1810_v25 }
 0x43c   : > { %v5986_v4 = vpop.eup %5236  ;;  %v1689_v54 = vmul.f32 %v5973_v38, %v5934_v5  ;;  %v5991_v41 = vpop.xlane.xlu0 %1560  ;;  %v1681_v43 = vsel %vm5978_vm4, %v5929_v61, %v1677_v33  ;;  %vm1694_vm9 = vweird.f32 %v5973_v38 }
 0x43d   : > { %v1629_v63 = vmul.f32 %v5986_v4, %v5940_v55  ;;  %v5998_v42 = vpop.xlane.xlu2 %1590  ;;  %5238 = vrcp.f32 %v5991_v41  ;;  %v1621_v61 = vsel %vm1620_vm6, %v5231_v47, %v1617_v46  ;;  %v1686_v2 = vsel %vm1683_vm8, %v1685_v58, %v1681_v43  ;;  %vm6030_vm12 = vmor %vm1693_vm10, %vm1694_vm9 }
 0x43e   : > { %v1690_v45 = vsub.f32 1.0, %v1689_v54  ;;  %5240 = vrcp.f32 %v5998_v42  ;;  %v1626_v9 = vsel %vm1623_vm7, %v1625_v56, %v1621_v61  ;;  %v6006_v10 = vmul.f32 %v5845_v57, %v1686_v2 }
 0x43f   : > { %v1630_v53 = vsub.f32 1.0, %v1629_v63  ;;  %v6012_v13 = vmul.f32 %v5847_v62, %v1626_v9  ;;  %v1697_v57 = vand.u32 2147483647, %v5934_v5  ;;  %vm1634_vm11 = vweird.f32 %v5986_v4 }
 0x440   : > { %v1691_v8 = vmul.f32 %v5973_v38, %v1690_v45  ;;  %4748 = vmatmul.msk.f32.gmra.mxu3 %vm7400_vm1, %v6006_v10  ;;  %v1716_v5 = vsel %vm5969_vm2, %v1715_v27, %v1711_v52  ;;  %v1700_v46 = vor.u32 1.1754944e-38, %v1699_v50  ;;  %vm1813_vm2 = vweird.f32 %v5920_v35  ;;  %vm1635_vm3 = vmor %vm1633_vm13, %vm1634_vm11 }
 0x441   : > { %v1631_v40 = vmul.f32 %v5986_v4, %v1630_v53  ;;  %7417 = vst [vmem:[#allocation4_spill] sm:$0xff] %v6012_v13  ;;  %4744 = vmatmul.msk.f32.gmra.mxu2 %vm7400_vm1, %v6012_v13  ;;  %v1654_v27 = vand.u32 2147483648, %v5991_v41  ;;  %vm1698_vm4 = vcmp.eq.f32.partialorder %v1697_v57, 8.507059e+37  ;;  %v1652_v53 = vand.u32 2147483647, %v5991_v41 }
 0x442   : > { %v1692_v47 = vadd.f32 %v5973_v38, %v1691_v8  ;;  %v1802_v49 = vand.u32 2147483647, %v5998_v42  ;;  %vm1648_vm6 = vweird.f32 %v5991_v41  ;;  %vm1814_vm8 = vweird.f32 %v5936_v6 }
 0x443   : > { %v6021_v59 = vpop.eup %5238  ;;  %v1632_v62 = vadd.f32 %v5986_v4, %v1631_v40  ;;  %vm1798_vm9 = vweird.f32 %v5998_v42  ;;  %v1812_v2 = vadd.f32 %v5936_v6, %v1811_v26  ;;  %v1655_v40 = vor.u32 1.1754944e-38, %v1654_v27 }
 0x444   : > { %v5241_v48 = vpop.eup %5240  ;;  %v1644_v33 = vmul.f32 %v6021_v59, %v5991_v41  ;;  %v6039_v19 = vpop.xlane.xlu0 %1581  ;;  %v1696_v0 = vsel %vm6030_vm12, %v5973_v38, %v1692_v47  ;;  %v1804_v38 = vand.u32 2147483648, %v5998_v42  ;;  %vm1649_vm5 = vweird.f32 %v6021_v59 }
 0x445   : > { %v1794_v37 = vmul.f32 %v5241_v48, %v5998_v42  ;;  %v6045_v25 = vpop.xlane.xlu2 %1584  ;;  %5242 = vrcp.f32 %v6039_v19  ;;  %v1636_v52 = vsel %vm1635_vm3, %v5986_v4, %v1632_v62  ;;  %v1701_v54 = vsel %vm1698_vm4, %v1700_v46, %v1696_v0  ;;  %vm6073_vm10 = vmor %vm1648_vm6, %vm1649_vm5 }
 0x446   : > { %v1645_v55 = vsub.f32 1.0, %v1644_v33  ;;  %5244 = vrcp.f32 %v6045_v25  ;;  %v1641_v56 = vsel %vm1638_vm14, %v1640_v23, %v1636_v52  ;;  %v6057_v58 = vmul.f32 %v5855_v3, %v1701_v54  ;;  %vm6101_vm14 = vmor %vm1813_vm2, %vm1814_vm8 }
 0x447   : > { %v1795_v36 = vsub.f32 1.0, %v1794_v37  ;;  %v6061_v45 = vmul.f32 %v5857_v7, %v1641_v56  ;;  %vm1799_vm7 = vweird.f32 %v5241_v48  ;;  %v6078_v41 = vmul.f32 %v5829_v34, %v1716_v5 }
 0x448   : > { %v1646_v43 = vmul.f32 %v6021_v59, %v1645_v55  ;;  %4749 = vmatmul.msk.f32.gmra.mxu3 %vm7400_vm1, %v6057_v58  ;;  %v1805_v9 = vor.u32 1.1754944e-38, %v1804_v38  ;;  %vm1653_vm11 = vcmp.eq.f32.partialorder %v1652_v53, 8.507059e+37  ;;  %vm1800_vm12 = vmor %vm1798_vm9, %vm1799_vm7  ;;  %vm1803_vm13 = vcmp.eq.f32.partialorder %v1802_v49, 8.507059e+37 }
 0x449   : > { %v1796_v63 = vmul.f32 %v5241_v48, %v1795_v36  ;;  %7420 = vst [vmem:[#allocation5_spill] sm:$0xff] %v6061_v45  ;;  %4745 = vmatmul.msk.f32.gmra.mxu2 %vm7400_vm1, %v6061_v45  ;;  %v1759_v26 = vand.u32 2147483648, %v6039_v19  ;;  %v1757_v33 = vand.u32 2147483647, %v6039_v19  ;;  %vm1753_vm4 = vweird.f32 %v6039_v19 }
 0x44a   : > { %v1647_v4 = vadd.f32 %v6021_v59, %v1646_v43  ;;  %7423 = vst [vmem:[#allocation6_spill] sm:$0xff] %v6078_v41  ;;  %vm1818_vm2 = vcmp.eq.f32.partialorder %v1817_v21, 8.507059e+37  ;;  %v1774_v38 = vand.u32 2147483648, %v6045_v25  ;;  %vm1768_vm8 = vweird.f32 %v6045_v25 }
 0x44b   : > { %v5243_v3 = vpop.eup %5242  ;;  %v1797_v61 = vadd.f32 %v5241_v48, %v1796_v63  ;;  %v1760_v27 = vor.u32 1.1754944e-38, %v1759_v26  ;;  %vm1758_vm6 = vcmp.eq.f32.partialorder %v1757_v33, 8.507059e+37  ;;  %v1772_v54 = vand.u32 2147483647, %v6045_v25 }
 0x44c   : > { %v6081_v8 = vpop.eup %5244  ;;  %v1749_v50 = vmul.f32 %v5243_v3, %v6039_v19  ;;  %v1597_v18 = vpop.xlane.xlu0 %1596  ;;  %v1651_v47 = vsel %vm6073_vm10, %v6021_v59, %v1647_v4  ;;  %vm1754_vm3 = vweird.f32 %v5243_v3  ;;  %v1775_v4 = vor.u32 1.1754944e-38, %v1774_v38 }
 0x44d   : > { %v1764_v57 = vmul.f32 %v6081_v8, %v6045_v25  ;;  %5246 = vrcp.f32 %v1597_v18  ;;  %v1656_v62 = vsel %vm1653_vm11, %v1655_v40, %v1651_v47  ;;  %v1801_v29 = vsel %vm1800_vm12, %v5241_v48, %v1797_v61  ;;  %vm1755_vm5 = vmor %vm1753_vm4, %vm1754_vm3 }
 0x44e   : > { %v1750_v34 = vsub.f32 1.0, %v1749_v50  ;;  %v6094_v23 = vmul.f32 %v5865_v14, %v1656_v62  ;;  %v1806_v59 = vsel %vm1803_vm13, %v1805_v9, %v1801_v29  ;;  %v1816_v14 = vsel %vm6101_vm14, %v5936_v6, %v1812_v2 }
 0x44f   : > { %v1765_v5 = vsub.f32 1.0, %v1764_v57  ;;  %v6106_v46 = vmul.f32 %v5867_v22, %v1806_v59  ;;  %v1820_v48 = vor.u32 1.1754944e-38, %v1819_v31  ;;  %vm1769_vm7 = vweird.f32 %v6081_v8 }
 0x450   : > { %7424 = vst [vmem:[#allocation7_spill] sm:$0xff] %v6094_v23  ;;  %v1751_v0 = vmul.f32 %v5243_v3, %v1750_v34  ;;  %4750 = vmatmul.msk.f32.gmra.mxu3 %vm7400_vm1, %v6078_v41  ;;  %v1834_v43 = vand.u32 2147483648, %v1597_v18  ;;  %vm1770_vm9 = vmor %vm1768_vm8, %vm1769_vm7  ;;  %v1832_v49 = vand.u32 2147483647, %v1597_v18  ;;  %vm1828_vm11 = vweird.f32 %v1597_v18 }
 0x451   : > { %7427 = vst [vmem:[#allocation8_spill] sm:$0xff] %v6106_v46  ;;  %v1766_v37 = vmul.f32 %v6081_v8, %v1765_v5  ;;  %4756 = vmatmul.msk.f32.gmra.mxu1 %vm7400_vm1, %v6106_v46  ;;  %4746 = vmatmul.msk.f32.gmra.mxu2 %vm7400_vm1, %v6094_v23  ;;  %v1821_v6 = vsel %vm1818_vm2, %v1820_v48, %v1816_v14  ;;  %vm1773_vm12 = vcmp.eq.f32.partialorder %v1772_v54, 8.507059e+37  ;;  %vm7397_vm3 = vcmask 1043456   ;;  %v2074_v5 = vld [vmem:[%s7366_s8 + $0xc] sm:$0xf] }
 0x452   : > { %v1752_v22 = vadd.f32 %v5243_v3, %v1751_v0  ;;  %v6132_v56 = vmul.f32 %v5837_v51, %v1821_v6  ;;  %v1835_v25 = vor.u32 1.1754944e-38, %v1834_v43  ;;  %vm1833_vm14 = vcmp.eq.f32.partialorder %v1832_v49, 8.507059e+37 }
 0x453   : > { %v5247_v55 = vpop.eup %5246  ;;  %v1767_v36 = vadd.f32 %v6081_v8, %v1766_v37  ;;  %v2207_v59 = vsel %vm7397_vm3, %v2074_v5, 0 }
 0x454   : > { %v1824_v31 = vmul.f32 %v5247_v55, %v1597_v18  ;;  %v1756_v19 = vsel %vm1755_vm5, %v5243_v3, %v1752_v22  ;;  %7429 = vst [vmem:[#allocation10_spill] sm:$0xff] %v6132_v56  ;;  %vm1829_vm10 = vweird.f32 %v5247_v55  ;;  %2216 = vmatpush.bf16.msra.mxu1 %v2207_v59 }
 0x455   : > { %v1761_v52 = vsel %vm1758_vm6, %v1760_v27, %v1756_v19  ;;  %v1771_v53 = vsel %vm1770_vm9, %v6081_v8, %v1767_v36  ;;  %vm1830_vm13 = vmor %vm1828_vm11, %vm1829_vm10  ;;  %v2073_v8 = vld [vmem:[%s7366_s8 + $0x8] sm:$0xf] }
 0x456   : > { %v1825_v35 = vsub.f32 1.0, %v1824_v31  ;;  %v6128_v21 = vmul.f32 %v5874_v60, %v1761_v52  ;;  %v1776_v3 = vsel %vm1773_vm12, %v1775_v4, %v1771_v53  ;;  %v2169_v9 = vsel %vm7397_vm3, %v2073_v8, 0 }
 0x457   : > { %v6140_v61 = vmul.f32 %v5876_v28, %v1776_v3  ;;  %2178 = vmatpush.bf16.msrb.mxu0 %v2169_v9  ;;  %v2071_v28 = vld [vmem:[%s7366_s8] sm:$0xf] }
 0x458   : > { %7428 = vst [vmem:[#allocation9_spill] sm:$0xff] %v6128_v21  ;;  %v1826_v63 = vmul.f32 %v5247_v55, %v1825_v35  ;;  %4753 = vmatmul.msk.f32.gmra.mxu0 %vm7400_vm1, %v6128_v21  ;;  %v2093_v50 = vsel %vm7397_vm3, %v2071_v28, 0 }
 0x459   : > { %4757 = vmatmul.msk.f32.gmra.mxu1 %vm7400_vm1, %v6132_v56  ;;  %2102 = vmatpush.bf16.msra.mxu2 %v2093_v50 }
 0x45a   : > { %v1827_v60 = vadd.f32 %v5247_v55, %v1826_v63 }
 0x45c   : > { %v1831_v51 = vsel %vm1830_vm13, %v5247_v55, %v1827_v60 }
 0x45d   : > { %v1836_v7 = vsel %vm1833_vm14, %v1835_v25, %v1831_v51 }
 0x45e   : > { %v6143_v2 = vmul.f32 %v5882_v30, %v1836_v7  ;;  %v2072_v30 = vld [vmem:[%s7366_s8 + $0x4] sm:$0xf] }
 0x45f   : > { %v2131_v18 = vsel %vm7397_vm3, %v2072_v30, 0 }
 0x460   : > { %7430 = vst [vmem:[#allocation11_spill] sm:$0xff] %v6143_v2  ;;  %4754 = vmatmul.msk.f32.gmra.mxu0 %vm7400_vm1, %v6140_v61  ;;  %2140 = vmatpush.bf16.msrb.mxu3 %v2131_v18 }
 0x461   : > { %4758 = vmatmul.msk.f32.gmra.mxu1 %vm7400_vm1, %v6143_v2 }
 0x49b   : > { %v1969_v42 = vpop.f32.mrf.mxu3 }
 0x49c   : > { %v2059_v0 = vpack.c.bf16 %v1969_v42, %v1969_v42 }
 0x49d   : > { %v2006_v40 = vpop.f32.mrf.mxu0 }
 0x49e   : > { %v2063_v47 = vpack.c.bf16 %v2006_v40, %v2006_v40  ;;  %v2118_v6 = vunpack.c.l.b16 %v2059_v0 }
 0x4a0   : > { %v2156_v26 = vunpack.c.l.b16 %v2063_v47 }
 0x4a5   : > { %v2009_v57 = vpop.f32.mrf.mxu0  ;;  %v2043_v55 = vpop.f32.mrf.mxu1 }
 0x4a6   : > { %v2064_v34 = vpack.c.bf16 %v2009_v57, %v2009_v57  ;;  %v2067_v54 = vpack.c.bf16 %v2043_v55, %v2043_v55 }
 0x4a8   : > { %v2157_v62 = vunpack.c.l.b16 %v2064_v34  ;;  %v2194_v49 = vunpack.c.l.b16 %v2067_v54 }
 0x4aa   : > { %v2160_v29 = vpack.c.b16 %v2157_v62, %v2156_v26 }
 0x4ac   : > { %4763 = vmatmul.msk.bf16.vlgmr.msrb.gmra.mxu0 %vm7396_vm15, %v2160_v29 }
 0x4bb   : > { %v1932_v33 = vpop.f32.mrf.mxu2 }
 0x4bc   : > { %v2055_v14 = vpack.c.bf16 %v1932_v33, %v1932_v33 }
 0x4be   : > { %v2079_v19 = vunpack.c.l.b16 %v2055_v14 }
 0x4c3   : > { %v1972_v48 = vpop.f32.mrf.mxu3 }
 0x4c4   : > { %v1935_v37 = vpop.f32.mrf.mxu2  ;;  %v2060_v22 = vpack.c.bf16 %v1972_v48, %v1972_v48 }
 0x4c5   : > { %v2056_v27 = vpack.c.bf16 %v1935_v37, %v1935_v37 }
 0x4c6   : > { %v2119_v31 = vunpack.c.l.b16 %v2060_v22 }
 0x4c7   : > { %v2080_v36 = vunpack.c.l.b16 %v2056_v27 }
 0x4c8   : > { %v2122_v38 = vpack.c.b16 %v2119_v31, %v2118_v6 }
 0x4c9   : > { %v2083_v52 = vpack.c.b16 %v2080_v36, %v2079_v19 }
 0x4ca   : > { %4761 = vmatmul.msk.bf16.vlgmr.msrb.gmra.mxu3 %vm7396_vm15, %v2122_v38 }
 0x4cb   : > { %4759 = vmatmul.msk.bf16.vlgmr.msra.gmra.mxu2 %vm7396_vm15, %v2083_v52  ;;  %v1975_v35 = vpop.f32.mrf.mxu3 }
 0x4cc   : > { %v1938_v43 = vpop.f32.mrf.mxu2  ;;  %v2061_v60 = vpack.c.bf16 %v1975_v35, %v1975_v35 }
 0x4cd   : > { %v2057_v3 = vpack.c.bf16 %v1938_v43, %v1938_v43 }
 0x4ce   : > { %v2046_v63 = vpop.f32.mrf.mxu1  ;;  %v2120_v30 = vunpack.c.l.b16 %v2061_v60 }
 0x4cf   : > { %v2068_v53 = vpack.c.bf16 %v2046_v63, %v2046_v63  ;;  %v2081_v18 = vunpack.c.l.b16 %v2057_v3  ;;  %v5160_v63 = vld [vmem:[%s7367_s9] ss:$0 sm:$0xff] }
 0x4d1   : > { %v2195_v4 = vunpack.c.l.b16 %v2068_v53 }
 0x4d3   : > { %v2198_v25 = vpack.c.b16 %v2195_v4, %v2194_v49  ;;  %v1978_v51 = vpop.f32.mrf.mxu3 }
 0x4d4   : > { %v1941_v8 = vpop.f32.mrf.mxu2  ;;  %v2062_v9 = vpack.c.bf16 %v1978_v51, %v1978_v51 }
 0x4d5   : > { %v2012_v7 = vpop.f32.mrf.mxu0  ;;  %4765 = vmatmul.msk.bf16.vlgmr.msra.gmra.mxu1 %vm7396_vm15, %v2198_v25  ;;  %v2058_v40 = vpack.c.bf16 %v1941_v8, %v1941_v8 }
 0x4d6   : > { %v2049_v28 = vpop.f32.mrf.mxu1  ;;  %v2121_v50 = vunpack.c.l.b16 %v2062_v9  ;;  %v2065_v26 = vpack.c.bf16 %v2012_v7, %v2012_v7 }
 0x4d7   : > { %v2082_v47 = vunpack.c.l.b16 %v2058_v40  ;;  %v2069_v29 = vpack.c.bf16 %v2049_v28, %v2049_v28 }
 0x4d8   : > { %v2123_v57 = vpack.c.b16 %v2121_v50, %v2120_v30  ;;  %v2158_v33 = vunpack.c.l.b16 %v2065_v26 }
 0x4d9   : > { %v2084_v34 = vpack.c.b16 %v2082_v47, %v2081_v18  ;;  %v2196_v14 = vunpack.c.l.b16 %v2069_v29 }
 0x4da   : > { %4762 = vmatmul.msk.bf16.gmra.mxu3 %vm7396_vm15, %v2123_v57 }
 0x4db   : > { %4760 = vmatmul.msk.bf16.gmra.mxu2 %vm7396_vm15, %v2084_v34 }
 0x4dd   : > { %v2015_v62 = vpop.f32.mrf.mxu0 }
 0x4de   : > { %v2066_v5 = vpack.c.bf16 %v2015_v62, %v2015_v62  ;;  %v2052_v59 = vpop.f32.mrf.mxu1 }
 0x4df   : > { %v2070_v0 = vpack.c.bf16 %v2052_v59, %v2052_v59 }
 0x4e0   : > { %v2159_v42 = vunpack.c.l.b16 %v2066_v5 }
 0x4e1   : > { %v2197_v48 = vunpack.c.l.b16 %v2070_v0 }
 0x4e2   : > { %v2161_v37 = vpack.c.b16 %v2159_v42, %v2158_v33 }
 0x4e3   : > { %v2199_v22 = vpack.c.b16 %v2197_v48, %v2196_v14 }
 0x4e4   : > { %4764 = vmatmul.msk.bf16.gmra.mxu0 %vm7396_vm15, %v2161_v37 }
 0x4e5   : > { %4766 = vmatmul.msk.bf16.gmra.mxu1 %vm7396_vm15, %v2199_v22 }
 0x529   : > { %v2180_v55 = vpop.f32.mrf.mxu0 }
 0x52a   : > { %v2231_v38 = vsel %vm7400_vm1, %v2180_v55, 0.0 }
 0x531   : > { %v2182_v49 = vpop.f32.mrf.mxu0 }
 0x532   : > { %v2238_v8 = vsel %vm7400_vm1, %v2182_v49, 0.0 }
 0x54d   : > { %v2142_v27 = vpop.f32.mrf.mxu3 }
 0x54e   : > { %v2104_v6 = vpop.f32.mrf.mxu2  ;;  %v2229_v31 = vsel %vm7400_vm1, %v2142_v27, 0.0 }
 0x54f   : > { %v2228_v19 = vsel %vm7400_vm1, %v2104_v6, 0.0 }
 0x550   : > { %v2230_v36 = vadd.f32 %v2229_v31, %v2228_v19 }
 0x552   : > { %v2218_v52 = vpop.f32.mrf.mxu1  ;;  %v2232_v35 = vadd.f32 %v2231_v38, %v2230_v36 }
 0x553   : > { %v2233_v54 = vsel %vm7400_vm1, %v2218_v52, 0.0 }
 0x554   : > { %v2234_v43 = vadd.f32 %v2233_v54, %v2232_v35 }
 0x555   : > { %v2144_v53 = vpop.f32.mrf.mxu3 }
 0x556   : > { %v2256_v4 = vadd.f32 %v2234_v43, %v5506_v12  ;;  %v2106_v60 = vpop.f32.mrf.mxu2  ;;  %v2236_v25 = vsel %vm7400_vm1, %v2144_v53, 0.0 }
 0x557   : > { %v2235_v3 = vsel %vm7400_vm1, %v2106_v60, 0.0 }
 0x558   : > { %v2237_v51 = vadd.f32 %v2236_v25, %v2235_v3  ;;  %v6183_v7 = vadd.f32 %v5160_v63, %v2256_v4 }
 0x55a   : > { %v2220_v9 = vpop.f32.mrf.mxu1  ;;  %v2239_v40 = vadd.f32 %v2238_v8, %v2237_v51  ;;  %v2270_v30 = vsel %vm7400_vm1, %v6183_v7, 0.0 }
 0x55b   : > { %v2240_v28 = vsel %vm7400_vm1, %v2220_v9, 0.0  ;;  %2271 = vadd.xlane.f32.xlu1 %v2270_v30 }
 0x55c   : > { %v2241_v50 = vadd.f32 %v2240_v28, %v2239_v40 }
 0x55d   : > { %v2147_v12 = vpop.f32.mrf.mxu3 }
 0x55e   : > { %v2257_v18 = vadd.f32 %v2241_v50, %v5513_v16  ;;  %v2109_v47 = vpop.f32.mrf.mxu2  ;;  %v2243_v57 = vsel %vm7400_vm1, %v2147_v12, 0.0 }
 0x55f   : > { %v2242_v34 = vsel %vm7400_vm1, %v2109_v47, 0.0 }
 0x560   : > { %v2244_v62 = vadd.f32 %v2243_v57, %v2242_v34  ;;  %v6193_v5 = vadd.f32 %v5160_v63, %v2257_v18 }
 0x561   : > { %v2185_v26 = vpop.f32.mrf.mxu0 }
 0x562   : > { %v2245_v29 = vsel %vm7400_vm1, %v2185_v26, 0.0  ;;  %v2223_v59 = vpop.f32.mrf.mxu1  ;;  %v2273_v42 = vsel %vm7400_vm1, %v6193_v5, 0.0 }
 0x563   : > { %v2246_v33 = vadd.f32 %v2245_v29, %v2244_v62  ;;  %v2247_v0 = vsel %vm7400_vm1, %v2223_v59, 0.0  ;;  %2274 = vadd.xlane.f32.xlu2 %v2273_v42  ;;  %v5108_v29 = vld [vmem:[%s7370_s12 + $0x8] sm:$0xff]  ;;  %v5107_v42 = vld [vmem:[%s7370_s12] sm:$0xff] }
 0x564   : > { %2406 = vmatpush.bf16.msrb.mxu2 %v5108_v29 }
 0x565   : > { %v2248_v16 = vadd.f32 %v2247_v0, %v2246_v33  ;;  %v2149_v14 = vpop.f32.mrf.mxu3 }
 0x566   : > { %v2111_v37 = vpop.f32.mrf.mxu2  ;;  %v2250_v22 = vsel %vm7400_vm1, %v2149_v14, 0.0 }
 0x567   : > { %v2258_v48 = vadd.f32 %v2248_v16, %v5520_v20  ;;  %v2249_v55 = vsel %vm7400_vm1, %v2111_v37, 0.0 }
 0x568   : > { %v2251_v6 = vadd.f32 %v2250_v22, %v2249_v55  ;;  %2407 = vmatpush.bf16.msrb.mxu2 %v5107_v42 }
 0x569   : > { %v2187_v27 = vpop.f32.mrf.mxu0  ;;  %v6202_v19 = vadd.f32 %v5160_v63, %v2258_v48 }
 0x56a   : > { %v2252_v31 = vsel %vm7400_vm1, %v2187_v27, 0.0  ;;  %v2225_v36 = vpop.f32.mrf.mxu1 }
 0x56b   : > { %v2253_v38 = vadd.f32 %v2252_v31, %v2251_v6  ;;  %v2276_v52 = vsel %vm7400_vm1, %v6202_v19, 0.0  ;;  %v2254_v35 = vsel %vm7400_vm1, %v2225_v36, 0.0 }
 0x56c   : > { %2277 = vadd.xlane.f32.xlu0 %v2276_v52 }
 0x56d   : > { %v2255_v20 = vadd.f32 %v2254_v35, %v2253_v38 }
 0x56f   : > { %v2259_v54 = vadd.f32 %v2255_v20, %v5527_v24 }
 0x571   : > { %v6208_v43 = vadd.f32 %v5160_v63, %v2259_v54 }
 0x573   : > { %v2279_v53 = vsel %vm7400_vm1, %v6208_v43, 0.0 }
 0x574   : > { %2280 = vadd.xlane.f32.xlu1 %v2279_v53 }
 0x5ce   : > { %v2272_v49 = vpop.xlane.xlu1 %2271 }
 0x5cf   : > { %v2282_v4 = vmul.f32 %v2272_v49, %v5531_v32 }
 0x5d1   : > { %v2286_v60 = vsub.f32 %v6183_v7, %v2282_v4 }
 0x5d3   : > { %v2290_v25 = vmul.f32 %v2286_v60, %v2286_v60 }
 0x5d5   : > { %v2294_v3 = vsel %vm7400_vm1, %v2290_v25, 0.0 }
 0x5d6   : > { %2295 = vadd.xlane.f32.xlu2 %v2294_v3  ;;  %v2275_v51 = vpop.xlane.xlu2 %2274 }
 0x5d7   : > { %v2283_v8 = vmul.f32 %v2275_v51, %v5531_v32  ;;  %v5161_v51 = vld [vmem:[%s7368_s10] ss:$0 sm:$0xff] }
 0x5d9   : > { %v6217_v24 = vsub.f32 %v6193_v5, %v2283_v8 }
 0x5db   : > { %v2291_v63 = vmul.f32 %v6217_v24, %v6217_v24 }
 0x5dd   : > { %v2297_v9 = vsel %vm7400_vm1, %v2291_v63, 0.0 }
 0x5de   : > { %2298 = vadd.xlane.f32.xlu0 %v2297_v9 }
 0x5df   : > { %v2278_v40 = vpop.xlane.xlu0 %2277 }
 0x5e0   : > { %v2284_v28 = vmul.f32 %v2278_v40, %v5531_v32 }
 0x5e2   : > { %v6224_v30 = vsub.f32 %v6202_v19, %v2284_v28 }
 0x5e4   : > { %v2292_v50 = vmul.f32 %v6224_v30, %v6224_v30 }
 0x5e6   : > { %v2300_v12 = vsel %vm7400_vm1, %v2292_v50, 0.0 }
 0x5e7   : > { %2301 = vadd.xlane.f32.xlu1 %v2300_v12  ;;  %v2281_v18 = vpop.xlane.xlu1 %2280  ;;  %v5162_v12 = vld [vmem:[%s7369_s11] ss:$0 sm:$0xff] }
 0x5e8   : > { %v2285_v47 = vmul.f32 %v2281_v18, %v5531_v32 }
 0x5ea   : > { %v6231_v57 = vsub.f32 %v6208_v43, %v2285_v47 }
 0x5ec   : > { %v2293_v34 = vmul.f32 %v6231_v57, %v6231_v57 }
 0x5ee   : > { %v2303_v26 = vsel %vm7400_vm1, %v2293_v34, 0.0 }
 0x5ef   : > { %2304 = vadd.xlane.f32.xlu2 %v2303_v26 }
 0x649   : > { %v2296_v62 = vpop.xlane.xlu2 %2295 }
 0x64a   : > { %v2306_v59 = vmul.f32 %v2296_v62, %v5531_v32 }
 0x64c   : > { %v2310_v33 = vadd.f32 1e-05, %v2306_v59 }
 0x64e   : > { %5248 = vrsqrt.f32 %v2310_v33  ;;  %vm2320_vm2 = vweird.f32 %v2310_v33 }
 0x651   : > { %v2299_v0 = vpop.xlane.xlu0 %2298 }
 0x652   : > { %v2307_v16 = vmul.f32 %v2299_v0, %v5531_v32 }
 0x654   : > { %v5249_v14 = vpop.eup %5248  ;;  %v2311_v48 = vadd.f32 1e-05, %v2307_v16 }
 0x655   : > { %v2315_v37 = vmul.f32 %v5249_v14, %v2310_v33  ;;  %vm2321_vm4 = vweird.f32 %v5249_v14 }
 0x656   : > { %5250 = vrsqrt.f32 %v2311_v48  ;;  %vm2322_vm5 = vmor %vm2320_vm2, %vm2321_vm4  ;;  %vm2330_vm7 = vweird.f32 %v2311_v48 }
 0x657   : > { %v2316_v22 = vmul.f32 %v5249_v14, %v2315_v37 }
 0x659   : > { %v2317_v55 = vmul.f32 0.5, %v2316_v22 }
 0x65a   : > { %v2302_v27 = vpop.xlane.xlu1 %2301 }
 0x65b   : > { %v2308_v6 = vmul.f32 %v2302_v27, %v5531_v32  ;;  %v2318_v31 = vsub.f32 1.5, %v2317_v55 }
 0x65c   : > { %v5251_v36 = vpop.eup %5250 }
 0x65d   : > { %v2312_v38 = vadd.f32 1e-05, %v2308_v6  ;;  %v2319_v52 = vmul.f32 %v5249_v14, %v2318_v31  ;;  %v2325_v35 = vmul.f32 %v5251_v36, %v2311_v48  ;;  %vm2331_vm6 = vweird.f32 %v5251_v36 }
 0x65e   : > { %vm2332_vm8 = vmor %vm2330_vm7, %vm2331_vm6 }
 0x65f   : > { %5252 = vrsqrt.f32 %v2312_v38  ;;  %v2326_v20 = vmul.f32 %v5251_v36, %v2325_v35  ;;  %v2323_v54 = vsel %vm2322_vm5, %v5249_v14, %v2319_v52  ;;  %vm2340_vm10 = vweird.f32 %v2312_v38  ;;  %v5112_v35 = vld [vmem:[%s7372_s14 + $0x18] sm:$0xff] }
 0x660   : > { %v2354_v8 = vmul.f32 %v2323_v54, %v2286_v60  ;;  %2499 = vmatpush.bf16.msra.mxu3 %v5112_v35 }
 0x661   : > { %v2327_v53 = vmul.f32 0.5, %v2326_v20  ;;  %v5110_v20 = vld [vmem:[%s7372_s14 + $0x8] sm:$0xff] }
 0x662   : > { %v2305_v49 = vpop.xlane.xlu2 %2304  ;;  %v2361_v18 = vmul.f32 %v5161_v51, %v2354_v8 }
 0x663   : > { %v2309_v4 = vmul.f32 %v2305_v49, %v5531_v32  ;;  %v2328_v25 = vsub.f32 1.5, %v2327_v53  ;;  %v5109_v49 = vld [vmem:[%s7372_s14] sm:$0xff] }
 0x664   : > { %v2368_v60 = vadd.f32 %v5162_v12, %v2361_v18 }
 0x665   : > { %v5253_v3 = vpop.eup %5252  ;;  %v2313_v63 = vadd.f32 1e-05, %v2309_v4  ;;  %v2329_v9 = vmul.f32 %v5251_v36, %v2328_v25 }
 0x666   : > { %v2335_v40 = vmul.f32 %v5253_v3, %v2312_v38  ;;  %vm2341_vm9 = vweird.f32 %v5253_v3 }
 0x667   : > { %5254 = vrsqrt.f32 %v2313_v63  ;;  %v2333_v28 = vsel %vm2332_vm8, %v5251_v36, %v2329_v9  ;;  %vm2342_vm11 = vmor %vm2340_vm10, %vm2341_vm9  ;;  %vm2350_vm13 = vweird.f32 %v2313_v63 }
 0x668   : > { %v2336_v50 = vmul.f32 %v5253_v3, %v2335_v40  ;;  %v2355_v47 = vmul.f32 %v2333_v28, %v6217_v24 }
 0x66a   : > { %v2337_v34 = vmul.f32 0.5, %v2336_v50  ;;  %v2362_v26 = vmul.f32 %v5161_v51, %v2355_v47 }
 0x66c   : > { %v2338_v62 = vsub.f32 1.5, %v2337_v34  ;;  %v2369_v59 = vadd.f32 %v5162_v12, %v2362_v26 }
 0x66d   : > { %v5255_v29 = vpop.eup %5254 }
 0x66e   : > { %v2339_v33 = vmul.f32 %v5253_v3, %v2338_v62  ;;  %v2345_v42 = vmul.f32 %v5255_v29, %v2313_v63  ;;  %v2372_v0 = vpack.c.bf16 %v2369_v59, %v2368_v60  ;;  %vm2351_vm12 = vweird.f32 %v5255_v29 }
 0x66f   : > { %vm2352_vm14 = vmor %vm2350_vm13, %vm2351_vm12 }
 0x670   : > { %v2346_v16 = vmul.f32 %v5255_v29, %v2345_v42  ;;  %4775 = vmatmul.msk.bf16.vlgmr.msrb.gmra.mxu2 %vm7400_vm1, %v2372_v0  ;;  %v2343_v14 = vsel %vm2342_vm11, %v5253_v3, %v2339_v33 }
 0x671   : > { %v2356_v24 = vmul.f32 %v2343_v14, %v6224_v30  ;;  %v5111_v30 = vld [vmem:[%s7372_s14 + $0x10] sm:$0xff] }
 0x672   : > { %v2347_v48 = vmul.f32 0.5, %v2346_v16  ;;  %2500 = vmatpush.bf16.msra.mxu3 %v5111_v30 }
 0x673   : > { %v2363_v6 = vmul.f32 %v5161_v51, %v2356_v24 }
 0x674   : > { %v2348_v37 = vsub.f32 1.5, %v2347_v48 }
 0x675   : > { %v2370_v36 = vadd.f32 %v5162_v12, %v2363_v6 }
 0x676   : > { %v2349_v22 = vmul.f32 %v5255_v29, %v2348_v37  ;;  %2501 = vmatpush.bf16.msra.mxu3 %v5110_v20 }
 0x678   : > { %v2353_v55 = vsel %vm2352_vm14, %v5255_v29, %v2349_v22 }
 0x679   : > { %v2357_v27 = vmul.f32 %v2353_v55, %v6231_v57  ;;  %v5163_v57 = vld [vmem:[%s7371_s13] ss:$0 sm:$0xff] }
 0x67a   : > { %2502 = vmatpush.bf16.msra.mxu3 %v5109_v49 }
 0x67b   : > { %v2364_v31 = vmul.f32 %v5161_v51, %v2357_v27 }
 0x67d   : > { %v2371_v38 = vadd.f32 %v5162_v12, %v2364_v31 }
 0x67f   : > { %v2373_v52 = vpack.c.bf16 %v2371_v38, %v2370_v36 }
 0x681   : > { %4776 = vmatmul.msk.bf16.gmra.mxu2 %vm7400_vm1, %v2373_v52 }
 0x6f3   : > { %v2409_v54 = vpop.f32.mrf.mxu2 }
 0x6f4   : > { %v2410_v53 = vadd.f32 %v5163_v57, %v2409_v54 }
 0x6f6   : > { %v2419_v4 = vmul.f32 %v2410_v53, %v2410_v53 }
 0x6f8   : > { %v2423_v25 = vmul.f32 %v2419_v4, %v2410_v53 }
 0x6fa   : > { %v2427_v3 = vmul.f32 0.044715, %v2423_v25 }
 0x6fb   : > { %v2411_v51 = vpop.f32.mrf.mxu2 }
 0x6fc   : > { %v2431_v8 = vadd.f32 %v2427_v3, %v2410_v53  ;;  %v2412_v63 = vadd.f32 %v5163_v57, %v2411_v51 }
 0x6fe   : > { %v2435_v9 = vmul.f32 0.7978846, %v2431_v8  ;;  %v2420_v40 = vmul.f32 %v2412_v63, %v2412_v63 }
 0x700   : > { %v2424_v28 = vmul.f32 %v2420_v40, %v2412_v63  ;;  %5256 = vtanh.f32 %v2435_v9 }
 0x702   : > { %v2428_v50 = vmul.f32 0.044715, %v2424_v28 }
 0x704   : > { %v2414_v12 = vpop.f32.mrf.mxu2  ;;  %v2432_v18 = vadd.f32 %v2428_v50, %v2412_v63 }
 0x705   : > { %v2415_v47 = vadd.f32 %v5163_v57, %v2414_v12 }
 0x706   : > { %v2436_v34 = vmul.f32 0.7978846, %v2432_v18  ;;  %v5257_v62 = vpop.eup %5256 }
 0x707   : > { %v2421_v26 = vmul.f32 %v2415_v47, %v2415_v47  ;;  %v2443_v59 = vadd.f32 1.0, %v5257_v62 }
 0x708   : > { %5258 = vtanh.f32 %v2436_v34 }
 0x709   : > { %v2425_v29 = vmul.f32 %v2421_v26, %v2415_v47  ;;  %v2447_v37 = vmul.f32 0.5, %v2443_v59 }
 0x70b   : > { %v2429_v60 = vmul.f32 0.044715, %v2425_v29  ;;  %v2451_v6 = vmul.f32 %v2447_v37, %v2410_v53  ;;  %v5164_v53 = vld [vmem:[%s7373_s15] ss:$0 sm:$0xff] }
 0x70c   : > { %v2416_v33 = vpop.f32.mrf.mxu2 }
 0x70d   : > { %v2433_v42 = vadd.f32 %v2429_v60, %v2415_v47  ;;  %v2417_v0 = vadd.f32 %v5163_v57, %v2416_v33 }
 0x70e   : > { %v5259_v16 = vpop.eup %5258 }
 0x70f   : > { %v2437_v14 = vmul.f32 0.7978846, %v2433_v42  ;;  %v2422_v48 = vmul.f32 %v2417_v0, %v2417_v0  ;;  %v2444_v24 = vadd.f32 1.0, %v5259_v16 }
 0x711   : > { %v2426_v22 = vmul.f32 %v2422_v48, %v2417_v0  ;;  %v2448_v55 = vmul.f32 0.5, %v2444_v24  ;;  %5260 = vtanh.f32 %v2437_v14 }
 0x713   : > { %v2430_v27 = vmul.f32 0.044715, %v2426_v22  ;;  %v2452_v31 = vmul.f32 %v2448_v55, %v2412_v63 }
 0x715   : > { %v2434_v36 = vadd.f32 %v2430_v27, %v2417_v0  ;;  %v2455_v38 = vpack.c.bf16 %v2452_v31, %v2451_v6 }
 0x717   : > { %v2438_v52 = vmul.f32 0.7978846, %v2434_v36  ;;  %4793 = vmatmul.msk.bf16.vlgmr.msra.gmra.mxu3 %vm7395_vm0, %v2455_v38  ;;  %v5261_v35 = vpop.eup %5260 }
 0x718   : > { %v2445_v30 = vadd.f32 1.0, %v5261_v35 }
 0x719   : > { %5262 = vtanh.f32 %v2438_v52 }
 0x71a   : > { %v2449_v20 = vmul.f32 0.5, %v2445_v30 }
 0x71c   : > { %v2453_v4 = vmul.f32 %v2449_v20, %v2415_v47  ;;  %v5118_v20 = vld [vmem:[%s7363_s5 + $0x68] sm:$0xff] }
 0x71d   : > { %2749 = vmatpush.bf16.msra.mxu2 %v5118_v20  ;;  %v5128_v20 = vld [vmem:[%s7364_s6 + $0x78] sm:$0xff] }
 0x71f   : > { %v5263_v57 = vpop.eup %5262 }
 0x720   : > { %v2446_v54 = vadd.f32 1.0, %v5263_v57 }
 0x722   : > { %v2450_v49 = vmul.f32 0.5, %v2446_v54  ;;  %v5114_v54 = vld [vmem:[%s7363_s5 + $0x48] sm:$0xff] }
 0x723   : > { %2687 = vmatpush.bf16.msra.mxu0 %v5114_v54 }
 0x724   : > { %v2454_v25 = vmul.f32 %v2450_v49, %v2417_v0  ;;  %v5116_v49 = vld [vmem:[%s7363_s5 + $0x58] sm:$0xff] }
 0x725   : > { %2718 = vmatpush.bf16.msrb.mxu1 %v5116_v49 }
 0x726   : > { %v2456_v3 = vpack.c.bf16 %v2454_v25, %v2453_v4  ;;  %v5120_v4 = vld [vmem:[%s7363_s5 + $0x78] sm:$0xff] }
 0x727   : > { %2780 = vmatpush.bf16.msrb.mxu3 %v5120_v4  ;;  %v5121_v4 = vld [vmem:[%s7364_s6 + $0x40] sm:$0xff] }
 0x728   : > { %4794 = vmatmul.msk.bf16.gmra.mxu3 %vm7395_vm0, %v2456_v3  ;;  %v5113_v3 = vld [vmem:[%s7363_s5 + $0x40] sm:$0xff] }
 0x729   : > { %2688 = vmatpush.bf16.msra.mxu0 %v5113_v3 }
 0x79a   : > { %v2504_v51 = vpop.f32.mrf.mxu3 }
 0x79b   : > { %v2514_v8 = vadd.f32 %v2504_v51, %v6183_v7  ;;  %v5117_v51 = vld [vmem:[%s7363_s5 + $0x60] sm:$0xff] }
 0x79c   : > { %2750 = vmatpush.bf16.msra.mxu2 %v5117_v51  ;;  %v5123_v51 = vld [vmem:[%s7364_s6 + $0x50] sm:$0xff] }
 0x79d   : > { %v6278_v63 = vadd.f32 %v5164_v53, %v2514_v8 }
 0x79f   : > { %v2530_v9 = vsel %vm7400_vm1, %v6278_v63, 0.0 }
 0x7a0   : > { %2531 = vadd.xlane.f32.xlu0 %v2530_v9  ;;  %v5119_v9 = vld [vmem:[%s7363_s5 + $0x70] sm:$0xff] }
 0x7a1   : > { %2781 = vmatpush.bf16.msrb.mxu3 %v5119_v9 }
 0x7a2   : > { %v2506_v40 = vpop.f32.mrf.mxu3 }
 0x7a3   : > { %v2515_v28 = vadd.f32 %v2506_v40, %v6193_v5 }
 0x7a5   : > { %v6283_v50 = vadd.f32 %v5164_v53, %v2515_v28  ;;  %2921 = vmatpush.bf16.msra.mxu3 %v5128_v20  ;;  %v5129_v20 = vld [vmem:[%s7365_s7 + $0x40] sm:$0xff] }
 0x7a7   : > { %v2533_v12 = vsel %vm7400_vm1, %v6283_v50, 0.0 }
 0x7a8   : > { %2534 = vadd.xlane.f32.xlu1 %v2533_v12 }
 0x7ab   : > { %v2509_v18 = vpop.f32.mrf.mxu3 }
 0x7ac   : > { %v2516_v47 = vadd.f32 %v2509_v18, %v6202_v19 }
 0x7ae   : > { %v6288_v34 = vadd.f32 %v5164_v53, %v2516_v47 }
 0x7b0   : > { %v2536_v7 = vsel %vm7400_vm1, %v6288_v34, 0.0 }
 0x7b1   : > { %2537 = vadd.xlane.f32.xlu2 %v2536_v7 }
 0x7b3   : > { %v2511_v26 = vpop.f32.mrf.mxu3 }
 0x7b4   : > { %v2517_v62 = vadd.f32 %v2511_v26, %v6208_v43 }
 0x7b6   : > { %v6293_v29 = vadd.f32 %v5164_v53, %v2517_v62  ;;  %v5115_v53 = vld [vmem:[%s7363_s5 + $0x50] sm:$0xff] }
 0x7b7   : > { %2719 = vmatpush.bf16.msrb.mxu1 %v5115_v53 }
 0x7b8   : > { %v2539_v5 = vsel %vm7400_vm1, %v6293_v29, 0.0 }
 0x7b9   : > { %2540 = vadd.xlane.f32.xlu0 %v2539_v5 }
 0x813   : > { %v2532_v60 = vpop.xlane.xlu0 %2531 }
 0x814   : > { %v2542_v59 = vmul.f32 %v2532_v60, %v5531_v32 }
 0x816   : > { %v6299_v19 = vsub.f32 %v6278_v63, %v2542_v59 }
 0x818   : > { %v2550_v33 = vmul.f32 %v6299_v19, %v6299_v19 }
 0x81a   : > { %v2554_v42 = vsel %vm7400_vm1, %v2550_v33, 0.0 }
 0x81b   : > { %2555 = vadd.xlane.f32.xlu1 %v2554_v42  ;;  %v2535_v0 = vpop.xlane.xlu1 %2534 }
 0x81c   : > { %v2543_v43 = vmul.f32 %v2535_v0, %v5531_v32 }
 0x81e   : > { %v6306_v16 = vsub.f32 %v6283_v50, %v2543_v43  ;;  %v6355_v43 = vld [vmem:[%s7408_s3 + $0x1] ss:$0 sm:$0xff] }
 0x820   : > { %v2551_v14 = vmul.f32 %v6306_v16, %v6306_v16 }
 0x822   : > { %v2557_v48 = vsel %vm7400_vm1, %v2551_v14, 0.0 }
 0x823   : > { %2558 = vadd.xlane.f32.xlu2 %v2557_v48 }
 0x824   : > { %v2538_v37 = vpop.xlane.xlu2 %2537 }
 0x825   : > { %v2544_v24 = vmul.f32 %v2538_v37, %v5531_v32 }
 0x827   : > { %v6313_v22 = vsub.f32 %v6288_v34, %v2544_v24 }
 0x829   : > { %v2552_v55 = vmul.f32 %v6313_v22, %v6313_v22 }
 0x82b   : > { %v2560_v27 = vsel %vm7400_vm1, %v2552_v55, 0.0 }
 0x82c   : > { %2561 = vadd.xlane.f32.xlu0 %v2560_v27  ;;  %v2541_v6 = vpop.xlane.xlu0 %2540 }
 0x82d   : > { %v2545_v31 = vmul.f32 %v2541_v6, %v5531_v32  ;;  %v5166_v6 = vld [vmem:[%s7362_s4 + $0x1] ss:$0 sm:$0xff] }
 0x82f   : > { %v6320_v36 = vsub.f32 %v6293_v29, %v2545_v31 }
 0x831   : > { %v2553_v38 = vmul.f32 %v6320_v36, %v6320_v36 }
 0x833   : > { %v2563_v52 = vsel %vm7400_vm1, %v2553_v38, 0.0 }
 0x834   : > { %2564 = vadd.xlane.f32.xlu1 %v2563_v52 }
 0x88e   : > { %v2556_v35 = vpop.xlane.xlu1 %2555 }
 0x88f   : > { %v2566_v30 = vmul.f32 %v2556_v35, %v5531_v32 }
 0x891   : > { %v2570_v57 = vadd.f32 1e-05, %v2566_v30  ;;  %v5122_v30 = vld [vmem:[%s7364_s6 + $0x48] sm:$0xff] }
 0x892   : > { %2828 = vmatpush.bf16.msrb.mxu0 %v5122_v30 }
 0x893   : > { %5264 = vrsqrt.f32 %v2570_v57  ;;  %vm2580_vm2 = vweird.f32 %v2570_v57 }
 0x896   : > { %v2559_v25 = vpop.xlane.xlu2 %2558  ;;  %2829 = vmatpush.bf16.msrb.mxu0 %v5121_v4  ;;  %v5135_v4 = vld [vmem:[%s7365_s7 + $0x70] sm:$0xff] }
 0x897   : > { %v2567_v8 = vmul.f32 %v2559_v25, %v5531_v32  ;;  %v5125_v25 = vld [vmem:[%s7364_s6 + $0x60] sm:$0xff] }
 0x899   : > { %v5265_v40 = vpop.eup %5264  ;;  %v2571_v28 = vadd.f32 1e-05, %v2567_v8  ;;  %v5127_v8 = vld [vmem:[%s7364_s6 + $0x70] sm:$0xff] }
 0x89a   : > { %v2575_v12 = vmul.f32 %v5265_v40, %v2570_v57  ;;  %vm2581_vm4 = vweird.f32 %v5265_v40  ;;  %v5124_v57 = vld [vmem:[%s7364_s6 + $0x58] sm:$0xff]  ;;  %2922 = vmatpush.bf16.msra.mxu3 %v5127_v8 }
 0x89b   : > { %5266 = vrsqrt.f32 %v2571_v28  ;;  %vm2582_vm5 = vmor %vm2580_vm2, %vm2581_vm4  ;;  %vm2590_vm7 = vweird.f32 %v2571_v28  ;;  %2859 = vmatpush.bf16.msra.mxu1 %v5124_v57 }
 0x89c   : > { %v2576_v18 = vmul.f32 %v5265_v40, %v2575_v12 }
 0x89e   : > { %v2577_v47 = vmul.f32 0.5, %v2576_v18 }
 0x89f   : > { %v2562_v7 = vpop.xlane.xlu0 %2561  ;;  %2860 = vmatpush.bf16.msra.mxu1 %v5123_v51 }
 0x8a0   : > { %v2568_v26 = vmul.f32 %v2562_v7, %v5531_v32  ;;  %v2578_v62 = vsub.f32 1.5, %v2577_v47 }
 0x8a1   : > { %v5267_v5 = vpop.eup %5266 }
 0x8a2   : > { %v2572_v60 = vadd.f32 1e-05, %v2568_v26  ;;  %v2579_v59 = vmul.f32 %v5265_v40, %v2578_v62  ;;  %v2585_v33 = vmul.f32 %v5267_v5, %v2571_v28  ;;  %vm2591_vm6 = vweird.f32 %v5267_v5 }
 0x8a3   : > { %vm2592_vm8 = vmor %vm2590_vm7, %vm2591_vm6 }
 0x8a4   : > { %5268 = vrsqrt.f32 %v2572_v60  ;;  %v2583_v42 = vsel %vm2582_vm5, %v5265_v40, %v2579_v59  ;;  %v2586_v0 = vmul.f32 %v5267_v5, %v2585_v33  ;;  %vm2600_vm10 = vweird.f32 %v2572_v60 }
 0x8a5   : > { %v2614_v14 = vmul.f32 %v2583_v42, %v6299_v19  ;;  %v5126_v19 = vld [vmem:[%s7364_s6 + $0x68] sm:$0xff] }
 0x8a6   : > { %v2587_v48 = vmul.f32 0.5, %v2586_v0  ;;  %2890 = vmatpush.bf16.msrb.mxu2 %v5126_v19 }
 0x8a7   : > { %v2565_v37 = vpop.xlane.xlu1 %2564  ;;  %v2621_v31 = vmul.f32 %v6355_v43, %v2614_v14 }
 0x8a8   : > { %v2569_v24 = vmul.f32 %v2565_v37, %v5531_v32  ;;  %v2588_v55 = vsub.f32 1.5, %v2587_v48 }
 0x8a9   : > { %v2628_v3 = vadd.f32 %v5166_v6, %v2621_v31 }
 0x8aa   : > { %v5269_v27 = vpop.eup %5268  ;;  %v2573_v38 = vadd.f32 1e-05, %v2569_v24  ;;  %v2589_v52 = vmul.f32 %v5267_v5, %v2588_v55  ;;  %2891 = vmatpush.bf16.msrb.mxu2 %v5125_v25 }
 0x8ab   : > { %v2595_v35 = vmul.f32 %v5269_v27, %v2572_v60  ;;  %vm2601_vm9 = vweird.f32 %v5269_v27  ;;  %v2632_v18 = vpack.c.bf16 %v2628_v3, %v2628_v3 }
 0x8ac   : > { %5270 = vrsqrt.f32 %v2573_v38  ;;  %v2593_v54 = vsel %vm2592_vm8, %v5267_v5, %v2589_v52  ;;  %vm2602_vm11 = vmor %vm2600_vm10, %vm2601_vm9  ;;  %vm2610_vm13 = vweird.f32 %v2573_v38 }
 0x8ad   : > { %v2596_v49 = vmul.f32 %v5269_v27, %v2595_v35  ;;  %v2615_v53 = vmul.f32 %v2593_v54, %v6306_v16  ;;  %v2657_v59 = vunpack.c.l.b16 %v2632_v18  ;;  %v5131_v54 = vld [vmem:[%s7365_s7 + $0x50] sm:$0xff] }
 0x8af   : > { %v2597_v9 = vmul.f32 0.5, %v2596_v49  ;;  %v2622_v40 = vmul.f32 %v6355_v43, %v2615_v53  ;;  %v5133_v49 = vld [vmem:[%s7365_s7 + $0x60] sm:$0xff] }
 0x8b1   : > { %v2598_v28 = vsub.f32 1.5, %v2597_v9  ;;  %v2629_v16 = vadd.f32 %v5166_v6, %v2622_v40 }
 0x8b2   : > { %v5271_v12 = vpop.eup %5270 }
 0x8b3   : > { %v2599_v47 = vmul.f32 %v5269_v27, %v2598_v28  ;;  %v2605_v7 = vmul.f32 %v5271_v12, %v2573_v38  ;;  %v2633_v26 = vpack.c.bf16 %v2629_v16, %v2629_v16  ;;  %vm2611_vm12 = vweird.f32 %v5271_v12  ;;  %v5136_v38 = vld [vmem:[%s7365_s7 + $0x78] sm:$0xff] }
 0x8b4   : > { %vm2612_vm14 = vmor %vm2610_vm13, %vm2611_vm12 }
 0x8b5   : > { %v2603_v62 = vsel %vm2602_vm11, %v5269_v27, %v2599_v47  ;;  %v2606_v5 = vmul.f32 %v5271_v12, %v2605_v7  ;;  %v2658_v33 = vunpack.c.l.b16 %v2633_v26 }
 0x8b6   : > { %v2616_v42 = vmul.f32 %v2603_v62, %v6313_v22 }
 0x8b7   : > { %v2607_v0 = vmul.f32 0.5, %v2606_v5  ;;  %v2661_v14 = vpack.c.b16 %v2658_v33, %v2657_v59 }
 0x8b8   : > { %v2623_v37 = vmul.f32 %v6355_v43, %v2616_v42 }
 0x8b9   : > { %v2608_v48 = vsub.f32 1.5, %v2607_v0  ;;  %4821 = vmatmul.msk.bf16.vlgmr.msra.gmra.mxu0 %vm7400_vm1, %v2661_v14  ;;  %4831 = vmatmul.msk.bf16.vlgmr.msrb.gmra.mxu1 %vm7400_vm1, %v2661_v14 }
 0x8ba   : > { %4841 = vmatmul.msk.bf16.vlgmr.msra.gmra.mxu2 %vm7400_vm1, %v2661_v14  ;;  %4851 = vmatmul.msk.bf16.vlgmr.msrb.gmra.mxu3 %vm7400_vm1, %v2661_v14  ;;  %v2630_v55 = vadd.f32 %v5166_v6, %v2623_v37 }
 0x8bb   : > { %v2609_v60 = vmul.f32 %v5271_v12, %v2608_v48  ;;  %3062 = vmatpush.bf16.msrb.mxu3 %v5136_v38 }
 0x8bc   : > { %v2634_v31 = vpack.c.bf16 %v2630_v55, %v2630_v55 }
 0x8bd   : > { %v2613_v24 = vsel %vm2612_vm14, %v5271_v12, %v2609_v60 }
 0x8be   : > { %v2617_v22 = vmul.f32 %v2613_v24, %v6320_v36  ;;  %v2659_v19 = vunpack.c.l.b16 %v2634_v31  ;;  %v5130_v36 = vld [vmem:[%s7365_s7 + $0x48] sm:$0xff] }
 0x8bf   : > { %2969 = vmatpush.bf16.msra.mxu0 %v5130_v36  ;;  %3063 = vmatpush.bf16.msrb.mxu3 %v5135_v4 }
 0x8c0   : > { %v2624_v27 = vmul.f32 %v6355_v43, %v2617_v22  ;;  %v5132_v43 = vld [vmem:[%s7365_s7 + $0x58] sm:$0xff] }
 0x8c1   : > { %3000 = vmatpush.bf16.msrb.mxu1 %v5132_v43 }
 0x8c2   : > { %v2631_v52 = vadd.f32 %v5166_v6, %v2624_v27  ;;  %v5134_v6 = vld [vmem:[%s7365_s7 + $0x68] sm:$0xff] }
 0x8c3   : > { %3031 = vmatpush.bf16.msra.mxu2 %v5134_v6  ;;  %2970 = vmatpush.bf16.msra.mxu0 %v5129_v20 }
 0x8c4   : > { %v2635_v35 = vpack.c.bf16 %v2631_v52, %v2631_v52 }
 0x8c5   : > { %3001 = vmatpush.bf16.msrb.mxu1 %v5131_v54 }
 0x8c6   : > { %v2660_v30 = vunpack.c.l.b16 %v2635_v35 }
 0x8c7   : > { %3032 = vmatpush.bf16.msra.mxu2 %v5133_v49 }
 0x8c8   : > { %v2662_v57 = vpack.c.b16 %v2660_v30, %v2659_v19 }
 0x8ca   : > { %4822 = vmatmul.msk.bf16.gmra.mxu0 %vm7400_vm1, %v2662_v57  ;;  %4832 = vmatmul.msk.bf16.gmra.mxu1 %vm7400_vm1, %v2662_v57 }
 0x8cb   : > { %4842 = vmatmul.msk.bf16.gmra.mxu2 %vm7400_vm1, %v2662_v57  ;;  %4852 = vmatmul.msk.bf16.gmra.mxu3 %vm7400_vm1, %v2662_v57 }
 0x8da   : > { %4877 = vmatmul.msk.bf16.vlgmr.msrb.gmra.mxu0 %vm7400_vm1, %v2661_v14  ;;  %4887 = vmatmul.msk.bf16.vlgmr.msra.gmra.mxu1 %vm7400_vm1, %v2661_v14 }
 0x8db   : > { %4897 = vmatmul.msk.bf16.vlgmr.msrb.gmra.mxu2 %vm7400_vm1, %v2661_v14  ;;  %4907 = vmatmul.msk.bf16.vlgmr.msra.gmra.mxu3 %vm7400_vm1, %v2661_v14 }
 0x8ea   : > { %4878 = vmatmul.msk.bf16.gmra.mxu0 %vm7400_vm1, %v2662_v57  ;;  %4888 = vmatmul.msk.bf16.gmra.mxu1 %vm7400_vm1, %v2662_v57 }
 0x8eb   : > { %4898 = vmatmul.msk.bf16.gmra.mxu2 %vm7400_vm1, %v2662_v57  ;;  %4908 = vmatmul.msk.bf16.gmra.mxu3 %vm7400_vm1, %v2662_v57 }
 0x8fa   : > { %4933 = vmatmul.msk.bf16.vlgmr.msra.gmra.mxu0 %vm7400_vm1, %v2661_v14  ;;  %4943 = vmatmul.msk.bf16.vlgmr.msrb.gmra.mxu1 %vm7400_vm1, %v2661_v14 }
 0x8fb   : > { %4953 = vmatmul.msk.bf16.vlgmr.msra.gmra.mxu2 %vm7400_vm1, %v2661_v14  ;;  %4963 = vmatmul.msk.bf16.vlgmr.msrb.gmra.mxu3 %vm7400_vm1, %v2661_v14 }
 0x90a   : > { %4934 = vmatmul.msk.bf16.gmra.mxu0 %vm7400_vm1, %v2662_v57  ;;  %4944 = vmatmul.msk.bf16.gmra.mxu1 %vm7400_vm1, %v2662_v57 }
 0x90b   : > { %4954 = vmatmul.msk.bf16.gmra.mxu2 %vm7400_vm1, %v2662_v57  ;;  %4964 = vmatmul.msk.bf16.gmra.mxu3 %vm7400_vm1, %v2662_v57 }
 0x936   : > { %v2690_v25 = vpop.f32.mrf.mxu0  ;;  %v2721_v3 = vpop.f32.mrf.mxu1 }
 0x93d   : > { %v2752_v53 = vpop.f32.mrf.mxu2  ;;  %v2783_v51 = vpop.f32.mrf.mxu3 }
 0x93e   : > { %v2692_v8 = vpop.f32.mrf.mxu0  ;;  %v2723_v9 = vpop.f32.mrf.mxu1 }
 0x945   : > { %v2754_v40 = vpop.f32.mrf.mxu2  ;;  %v2785_v28 = vpop.f32.mrf.mxu3 }
 0x947   : > { %v2695_v12 = vpop.f32.mrf.mxu0  ;;  %v2726_v18 = vpop.f32.mrf.mxu1 }
 0x94e   : > { %v6441_v16 = vpop.f32.mrf.mxu2  ;;  %v6443_v47 = vpop.f32.mrf.mxu3 }
 0x94f   : > { %v6445_v7 = vpop.f32.mrf.mxu0  ;;  %v6447_v26 = vpop.f32.mrf.mxu1 }
 0x956   : > { %v6449_v62 = vpop.f32.mrf.mxu2  ;;  %v6451_v5 = vpop.f32.mrf.mxu3 }
 0x957   : > { %v2831_v59 = vpop.f32.mrf.mxu0  ;;  %v2862_v33 = vpop.f32.mrf.mxu1 }
 0x95e   : > { %v2893_v42 = vpop.f32.mrf.mxu2  ;;  %v2924_v0 = vpop.f32.mrf.mxu3 }
 0x95f   : > { %v2833_v14 = vpop.f32.mrf.mxu0  ;;  %v2864_v48 = vpop.f32.mrf.mxu1 }
 0x966   : > { %v2895_v37 = vpop.f32.mrf.mxu2  ;;  %v2926_v60 = vpop.f32.mrf.mxu3 }
 0x967   : > { %v2836_v24 = vpop.f32.mrf.mxu0  ;;  %v2867_v55 = vpop.f32.mrf.mxu1 }
 0x96e   : > { %v2898_v22 = vpop.f32.mrf.mxu2  ;;  %v2929_v27 = vpop.f32.mrf.mxu3 }
 0x96f   : > { %v2838_v31 = vpop.f32.mrf.mxu0  ;;  %v2869_v52 = vpop.f32.mrf.mxu1 }
 0x970   : > { %4965 = vmatpush.xpose.msk.msrb.mxu0 %vm7396_vm15, %v2838_v31  ;;  %4973 = vmatpush.xpose.msk.msra.mxu1 %vm7396_vm15, %v2869_v52 }
 0x974   : > { %4966 = vmatpush.xpose.msk.msrb.mxu0 %vm7396_vm15, %v2836_v24  ;;  %4974 = vmatpush.xpose.msk.msra.mxu1 %vm7396_vm15, %v2867_v55 }
 0x976   : > { %v2900_v35 = vpop.f32.mrf.mxu2  ;;  %v2931_v19 = vpop.f32.mrf.mxu3 }
 0x977   : > { %4981 = vmatpush.xpose.msk.msrb.mxu2 %vm7396_vm15, %v2900_v35  ;;  %4989 = vmatpush.xpose.msk.msra.mxu3 %vm7396_vm15, %v2931_v19  ;;  %v2972_v30 = vpop.f32.mrf.mxu0  ;;  %v3003_v57 = vpop.f32.mrf.mxu1 }
 0x978   : > { %4967 = vmatpush.xpose.msk.msrb.mxu0 %vm7396_vm15, %v2833_v14  ;;  %4975 = vmatpush.xpose.msk.msra.mxu1 %vm7396_vm15, %v2864_v48 }
 0x97b   : > { %4982 = vmatpush.xpose.msk.msrb.mxu2 %vm7396_vm15, %v2898_v22  ;;  %4990 = vmatpush.xpose.msk.msra.mxu3 %vm7396_vm15, %v2929_v27 }
 0x97c   : > { %4968 = vmatpush.xpose.msk.msrb.mxu0 %vm7396_vm15, %v2831_v59  ;;  %4976 = vmatpush.xpose.msk.msra.mxu1 %vm7396_vm15, %v2862_v33 }
 0x97e   : > { %v3034_v36 = vpop.f32.mrf.mxu2  ;;  %v3065_v43 = vpop.f32.mrf.mxu3 }
 0x97f   : > { %4983 = vmatpush.xpose.msk.msrb.mxu2 %vm7396_vm15, %v2895_v37  ;;  %4991 = vmatpush.xpose.msk.msra.mxu3 %vm7396_vm15, %v2926_v60  ;;  %v2974_v6 = vpop.f32.mrf.mxu0  ;;  %v3005_v38 = vpop.f32.mrf.mxu1 }
 0x980   : > { %4969 = vmatmul.msk.f32.vlgmr.msrb.gmra.mxu0 %vm7396_vm15, %v2690_v25  ;;  %4977 = vmatmul.msk.f32.vlgmr.msra.gmra.mxu1 %vm7396_vm15, %v2721_v3 }
 0x983   : > { %4984 = vmatpush.xpose.msk.msrb.mxu2 %vm7396_vm15, %v2893_v42  ;;  %4992 = vmatpush.xpose.msk.msra.mxu3 %vm7396_vm15, %v2924_v0 }
 0x986   : > { %v3036_v20 = vpop.f32.mrf.mxu2  ;;  %v3067_v54 = vpop.f32.mrf.mxu3  ;;  %4985 = vmatmul.msk.f32.vlgmr.msrb.gmra.mxu2 %vm7396_vm15, %v2752_v53  ;;  %4993 = vmatmul.msk.f32.vlgmr.msra.gmra.mxu3 %vm7396_vm15, %v2783_v51 }
 0x987   : > { %v2977_v49 = vpop.f32.mrf.mxu0  ;;  %v3008_v4 = vpop.f32.mrf.mxu1 }
 0x988   : > { %4970 = vmatmul.msk.f32.gmra.mxu0 %vm7396_vm15, %v2692_v8  ;;  %4978 = vmatmul.msk.f32.gmra.mxu1 %vm7396_vm15, %v2723_v9 }
 0x98e   : > { %v3039_v59 = vpop.f32.mrf.mxu2  ;;  %v3070_v25 = vpop.f32.mrf.mxu3  ;;  %4986 = vmatmul.msk.f32.gmra.mxu2 %vm7396_vm15, %v2754_v40  ;;  %4994 = vmatmul.msk.f32.gmra.mxu3 %vm7396_vm15, %v2785_v28 }
 0x98f   : > { %v2979_v3 = vpop.f32.mrf.mxu0  ;;  %v3010_v33 = vpop.f32.mrf.mxu1 }
 0x990   : > { %4971 = vmatmul.msk.f32.gmra.mxu0 %vm7396_vm15, %v2695_v12  ;;  %4979 = vmatmul.msk.f32.gmra.mxu1 %vm7396_vm15, %v2726_v18 }
 0x991   : > { %3760 = vmatpush.msra.mxu0 %v2979_v3  ;;  %3797 = vmatpush.msrb.mxu1 %v3010_v33 }
 0x993   : > { %3761 = vmatpush.msra.mxu0 %v2977_v49  ;;  %3798 = vmatpush.msrb.mxu1 %v3008_v4 }
 0x995   : > { %3762 = vmatpush.msra.mxu0 %v2974_v6  ;;  %3799 = vmatpush.msrb.mxu1 %v3005_v38 }
 0x996   : > { %v3041_v53 = vpop.f32.mrf.mxu2  ;;  %v3072_v51 = vpop.f32.mrf.mxu3  ;;  %4987 = vmatmul.msk.f32.gmra.mxu2 %vm7396_vm15, %v6441_v16  ;;  %4995 = vmatmul.msk.f32.gmra.mxu3 %vm7396_vm15, %v6443_v47 }
 0x997   : > { %3763 = vmatpush.msra.mxu0 %v2972_v30  ;;  %3800 = vmatpush.msrb.mxu1 %v3003_v57 }
 0x998   : > { %3834 = vmatpush.msra.mxu2 %v3041_v53  ;;  %3871 = vmatpush.msrb.mxu3 %v3072_v51 }
 0x999   : > { %4972 = vmatmul.msk.f32.gmra.mxu0 %vm7396_vm15, %v6445_v7  ;;  %4980 = vmatmul.msk.f32.gmra.mxu1 %vm7396_vm15, %v6447_v26 }
 0x99a   : > { %3835 = vmatpush.msra.mxu2 %v3039_v59  ;;  %3872 = vmatpush.msrb.mxu3 %v3070_v25 }
 0x99c   : > { %3836 = vmatpush.msra.mxu2 %v3036_v20  ;;  %3873 = vmatpush.msrb.mxu3 %v3067_v54 }
 0x99e   : > { %3837 = vmatpush.msra.mxu2 %v3034_v36  ;;  %3874 = vmatpush.msrb.mxu3 %v3065_v43 }
 0x99f   : > { %4988 = vmatmul.msk.f32.gmra.mxu2 %vm7396_vm15, %v6449_v62  ;;  %4996 = vmatmul.msk.f32.gmra.mxu3 %vm7396_vm15, %v6451_v5 }
 0x9fd   : > { %v3169_v8 = vpop.f32.mrf.mxu1  ;;  %v3116_v28 = vpop.f32.mrf.mxu0 }
 0x9fe   : > { %v6492_v9 = vadd.f32 %v3169_v8, %v5724_v11  ;;  %v6510_v42 = vadd.f32 %v3116_v28, %v5724_v11 }
 0xa00   : > { %v3299_v40 = vsel %vm7400_vm1, %v6492_v9, -inf  ;;  %v3287_v24 = vsel %vm7400_vm1, %v6510_v42, -inf }
 0xa01   : > { %3300 = vmax.xlane.f32.xlu0 %v3299_v40 }
 0xa05   : > { %v3119_v62 = vpop.f32.mrf.mxu0  ;;  %v3172_v27 = vpop.f32.mrf.mxu1 }
 0xa06   : > { %v6507_v5 = vadd.f32 %v3119_v62, %v5724_v11  ;;  %v6532_v30 = vadd.f32 %v3172_v27, %v5724_v11 }
 0xa08   : > { %v3290_v60 = vsel %vm7400_vm1, %v6507_v5, -inf  ;;  %v3302_v20 = vsel %vm7400_vm1, %v6532_v30, -inf }
 0xa09   : > { %v3222_v12 = vpop.f32.mrf.mxu2  ;;  %v3275_v18 = vpop.f32.mrf.mxu3 }
 0xa0a   : > { %v6497_v16 = vadd.f32 %v3222_v12, %v5724_v11  ;;  %v6500_v47 = vadd.f32 %v3275_v18, %v5724_v11 }
 0xa0c   : > { %v3311_v7 = vsel %vm7400_vm1, %v6497_v16, -inf  ;;  %v3323_v26 = vsel %vm7400_vm1, %v6500_v47, -inf }
 0xa0d   : > { %3312 = vmax.xlane.f32.xlu2 %v3311_v7  ;;  %3324 = vmax.xlane.f32.xlu0 %v3323_v26  ;;  %v3122_v43 = vpop.f32.mrf.mxu0  ;;  %v3175_v38 = vpop.f32.mrf.mxu1 }
 0xa0e   : > { %v6547_v59 = vadd.f32 %v3122_v43, %v5724_v11  ;;  %v6550_v25 = vadd.f32 %v3175_v38, %v5724_v11 }
 0xa10   : > { %v3293_v33 = vsel %vm7400_vm1, %v6547_v59, -inf  ;;  %v3305_v8 = vsel %vm7400_vm1, %v6550_v25, -inf }
 0xa11   : > { %v3225_v0 = vpop.f32.mrf.mxu2  ;;  %v3278_v48 = vpop.f32.mrf.mxu3 }
 0xa12   : > { %v6513_v14 = vadd.f32 %v3225_v0, %v5724_v11  ;;  %v6522_v55 = vadd.f32 %v3278_v48, %v5724_v11 }
 0xa14   : > { %v3314_v37 = vsel %vm7400_vm1, %v6513_v14, -inf  ;;  %v3326_v35 = vsel %vm7400_vm1, %v6522_v55, -inf }
 0xa15   : > { %3315 = vmax.xlane.f32.xlu1 %v3314_v37  ;;  %3291 = vmax.xlane.f32.xlu0 %v3290_v60 }
 0xa16   : > { %3288 = vmax.xlane.f32.xlu2 %v3287_v24  ;;  %v3125_v53 = vpop.f32.mrf.mxu0  ;;  %v3178_v40 = vpop.f32.mrf.mxu1 }
 0xa17   : > { %v6562_v28 = vadd.f32 %v3125_v53, %v5724_v11  ;;  %v6565_v12 = vadd.f32 %v3178_v40, %v5724_v11 }
 0xa19   : > { %v3228_v22 = vpop.f32.mrf.mxu2  ;;  %v3281_v52 = vpop.f32.mrf.mxu3  ;;  %v3296_v18 = vsel %vm7400_vm1, %v6562_v28, -inf  ;;  %v3308_v7 = vsel %vm7400_vm1, %v6565_v12, -inf }
 0xa1a   : > { %v6525_v31 = vadd.f32 %v3228_v22, %v5724_v11  ;;  %v6535_v57 = vadd.f32 %v3281_v52, %v5724_v11 }
 0xa1c   : > { %v3317_v19 = vsel %vm7400_vm1, %v6525_v31, -inf  ;;  %v3329_v49 = vsel %vm7400_vm1, %v6535_v57, -inf }
 0xa1d   : > { %3327 = vmax.xlane.f32.xlu1 %v3326_v35 }
 0xa1e   : > { %3318 = vmax.xlane.f32.xlu2 %v3317_v19 }
 0xa22   : > { %v3231_v36 = vpop.f32.mrf.mxu2  ;;  %v3284_v4 = vpop.f32.mrf.mxu3 }
 0xa23   : > { %v6538_v6 = vadd.f32 %v3231_v36, %v5724_v11  ;;  %v6553_v3 = vadd.f32 %v3284_v4, %v5724_v11 }
 0xa25   : > { %3303 = vmax.xlane.f32.xlu1 %v3302_v20  ;;  %v3320_v54 = vsel %vm7400_vm1, %v6538_v6, -inf  ;;  %v3332_v51 = vsel %vm7400_vm1, %v6553_v3, -inf }
 0xa26   : > { %3321 = vmax.xlane.f32.xlu0 %v3320_v54  ;;  %3330 = vmax.xlane.f32.xlu2 %v3329_v49 }
 0xa2d   : > { %3294 = vmax.xlane.f32.xlu1 %v3293_v33 }
 0xa2e   : > { %3333 = vmax.xlane.f32.xlu0 %v3332_v51  ;;  %3306 = vmax.xlane.f32.xlu2 %v3305_v8 }
 0xa35   : > { %3297 = vmax.xlane.f32.xlu1 %v3296_v18 }
 0xa36   : > { %3309 = vmax.xlane.f32.xlu2 %v3308_v7 }
 0xa74   : > { %v3301_v26 = vpop.xlane.xlu0 %3300 }
 0xa75   : > { %v3339_v62 = vsub.f32 %v6492_v9, %v3301_v26 }
 0xa77   : > { %v3359_v0 = vmul.f32 1.442695, %v3339_v62 }
 0xa79   : > { %5272 = vpow2.f32 %v3359_v0 }
 0xa7f   : > { %v6572_v48 = vpop.eup %5272 }
 0xa80   : > { %v3313_v37 = vpop.xlane.xlu2 %3312  ;;  %v3325_v60 = vpop.xlane.xlu0 %3324  ;;  %v3395_v11 = vsel %vm7400_vm1, %v6572_v48, 0.0 }
 0xa81   : > { %v3343_v24 = vsub.f32 %v6497_v16, %v3313_v37  ;;  %v3347_v22 = vsub.f32 %v6500_v47, %v3325_v60  ;;  %3396 = vadd.xlane.f32.xlu1 %v3395_v11 }
 0xa83   : > { %v3367_v27 = vmul.f32 1.442695, %v3343_v24  ;;  %v3375_v52 = vmul.f32 1.442695, %v3347_v22 }
 0xa85   : > { %5274 = vpow2.f32 %v3367_v27 }
 0xa86   : > { %5276 = vpow2.f32 %v3375_v52 }
 0xa88   : > { %v3316_v35 = vpop.xlane.xlu1 %3315  ;;  %v3292_v9 = vpop.xlane.xlu0 %3291 }
 0xa89   : > { %v3344_v19 = vsub.f32 %v6513_v14, %v3316_v35  ;;  %v3336_v36 = vsub.f32 %v6507_v5, %v3292_v9  ;;  %v3289_v43 = vpop.xlane.xlu2 %3288 }
 0xa8a   : > { %v3335_v38 = vsub.f32 %v6510_v42, %v3289_v43 }
 0xa8b   : > { %v6581_v20 = vpop.eup %5274  ;;  %v3369_v54 = vmul.f32 1.442695, %v3344_v19  ;;  %v3353_v16 = vmul.f32 1.442695, %v3336_v36 }
 0xa8c   : > { %v6583_v49 = vpop.eup %5276  ;;  %v3351_v47 = vmul.f32 1.442695, %v3335_v38  ;;  %v3407_v4 = vsel %vm7400_vm1, %v6581_v20, 0.0 }
 0xa8d   : > { %5278 = vpow2.f32 %v3369_v54  ;;  %v3419_v33 = vsel %vm7400_vm1, %v6583_v49, 0.0  ;;  %3408 = vadd.xlane.f32.xlu0 %v3407_v4 }
 0xa8e   : > { %5280 = vpow2.f32 %v3353_v16  ;;  %3420 = vadd.xlane.f32.xlu1 %v3419_v33 }
 0xa8f   : > { %5282 = vpow2.f32 %v3351_v47 }
 0xa90   : > { %v3328_v5 = vpop.xlane.xlu1 %3327 }
 0xa91   : > { %v3348_v42 = vsub.f32 %v6522_v55, %v3328_v5  ;;  %v3319_v14 = vpop.xlane.xlu2 %3318 }
 0xa92   : > { %v3345_v53 = vsub.f32 %v6525_v31, %v3319_v14 }
 0xa93   : > { %v6591_v51 = vpop.eup %5278  ;;  %v3377_v8 = vmul.f32 1.442695, %v3348_v42 }
 0xa94   : > { %v6593_v40 = vpop.eup %5280  ;;  %v3371_v18 = vmul.f32 1.442695, %v3345_v53  ;;  %v3410_v7 = vsel %vm7400_vm1, %v6591_v51, 0.0 }
 0xa95   : > { %v6597_v26 = vpop.eup %5282  ;;  %5284 = vpow2.f32 %v3377_v8  ;;  %v3386_v62 = vsel %vm7400_vm1, %v6593_v40, 0.0  ;;  %3411 = vadd.xlane.f32.xlu2 %v3410_v7 }
 0xa96   : > { %5286 = vpow2.f32 %v3371_v18  ;;  %3387 = vadd.xlane.f32.xlu1 %v3386_v62  ;;  %v3383_v55 = vsel %vm7400_vm1, %v6597_v26, 0.0 }
 0xa97   : > { %3384 = vadd.xlane.f32.xlu0 %v3383_v55 }
 0xa98   : > { %v3304_v31 = vpop.xlane.xlu1 %3303 }
 0xa99   : > { %v3340_v0 = vsub.f32 %v6532_v30, %v3304_v31  ;;  %v3322_v37 = vpop.xlane.xlu0 %3321  ;;  %v3331_v60 = vpop.xlane.xlu2 %3330 }
 0xa9a   : > { %v3346_v11 = vsub.f32 %v6538_v6, %v3322_v37  ;;  %v3349_v24 = vsub.f32 %v6535_v57, %v3331_v60 }
 0xa9b   : > { %v6606_v22 = vpop.eup %5284  ;;  %v3361_v27 = vmul.f32 1.442695, %v3340_v0 }
 0xa9c   : > { %v6608_v52 = vpop.eup %5286  ;;  %v3373_v35 = vmul.f32 1.442695, %v3346_v11  ;;  %v3379_v9 = vmul.f32 1.442695, %v3349_v24  ;;  %v3422_v19 = vsel %vm7400_vm1, %v6606_v22, 0.0 }
 0xa9d   : > { %5288 = vpow2.f32 %v3361_v27  ;;  %3423 = vadd.xlane.f32.xlu2 %v3422_v19  ;;  %v3413_v30 = vsel %vm7400_vm1, %v6608_v52, 0.0 }
 0xa9e   : > { %5290 = vpow2.f32 %v3373_v35 }
 0xa9f   : > { %5292 = vpow2.f32 %v3379_v9  ;;  %3414 = vadd.xlane.f32.xlu0 %v3413_v30 }
 0xaa0   : > { %v3295_v6 = vpop.xlane.xlu1 %3294 }
 0xaa1   : > { %v3337_v57 = vsub.f32 %v6547_v59, %v3295_v6  ;;  %v3334_v36 = vpop.xlane.xlu0 %3333  ;;  %v3307_v43 = vpop.xlane.xlu2 %3306 }
 0xaa2   : > { %v3350_v38 = vsub.f32 %v6553_v3, %v3334_v36  ;;  %v3341_v54 = vsub.f32 %v6550_v25, %v3307_v43 }
 0xaa3   : > { %v6617_v16 = vpop.eup %5288  ;;  %v3355_v47 = vmul.f32 1.442695, %v3337_v57 }
 0xaa4   : > { %v6619_v4 = vpop.eup %5290  ;;  %v3381_v33 = vmul.f32 1.442695, %v3350_v38  ;;  %v3363_v5 = vmul.f32 1.442695, %v3341_v54  ;;  %v3398_v42 = vsel %vm7400_vm1, %v6617_v16, 0.0 }
 0xaa5   : > { %v6623_v14 = vpop.eup %5292  ;;  %5294 = vpow2.f32 %v3355_v47  ;;  %v3416_v59 = vsel %vm7400_vm1, %v6619_v4, 0.0  ;;  %3399 = vadd.xlane.f32.xlu2 %v3398_v42 }
 0xaa6   : > { %5296 = vpow2.f32 %v3381_v33  ;;  %3417 = vadd.xlane.f32.xlu1 %v3416_v59  ;;  %v3425_v25 = vsel %vm7400_vm1, %v6623_v14, 0.0 }
 0xaa7   : > { %5298 = vpow2.f32 %v3363_v5  ;;  %3426 = vadd.xlane.f32.xlu0 %v3425_v25 }
 0xaa8   : > { %v3298_v3 = vpop.xlane.xlu1 %3297 }
 0xaa9   : > { %v3338_v53 = vsub.f32 %v6562_v28, %v3298_v3  ;;  %v3310_v8 = vpop.xlane.xlu2 %3309 }
 0xaaa   : > { %v3342_v18 = vsub.f32 %v6565_v12, %v3310_v8 }
 0xaab   : > { %v6631_v7 = vpop.eup %5294  ;;  %v3357_v62 = vmul.f32 1.442695, %v3338_v53 }
 0xaac   : > { %v6633_v55 = vpop.eup %5296  ;;  %v3365_v31 = vmul.f32 1.442695, %v3342_v18  ;;  %v3389_v0 = vsel %vm7400_vm1, %v6631_v7, 0.0 }
 0xaad   : > { %v6637_v37 = vpop.eup %5298  ;;  %5300 = vpow2.f32 %v3357_v62  ;;  %v3428_v60 = vsel %vm7400_vm1, %v6633_v55, 0.0  ;;  %3390 = vadd.xlane.f32.xlu2 %v3389_v0 }
 0xaae   : > { %5302 = vpow2.f32 %v3365_v31  ;;  %3429 = vadd.xlane.f32.xlu1 %v3428_v60  ;;  %v3401_v28 = vsel %vm7400_vm1, %v6637_v37, 0.0 }
 0xaaf   : > { %3402 = vadd.xlane.f32.xlu0 %v3401_v28 }
 0xab3   : > { %v6643_v12 = vpop.eup %5300 }
 0xab4   : > { %v6645_v11 = vpop.eup %5302  ;;  %v3392_v24 = vsel %vm7400_vm1, %v6643_v12, 0.0 }
 0xab5   : > { %3393 = vadd.xlane.f32.xlu2 %v3392_v24  ;;  %v3404_v27 = vsel %vm7400_vm1, %v6645_v11, 0.0 }
 0xab7   : > { %3405 = vadd.xlane.f32.xlu0 %v3404_v27 }
 0xaf4   : > { %v3397_v35 = vpop.xlane.xlu1 %3396 }
 0xaf5   : > { %5304 = vrcp.f32 %v3397_v35  ;;  %v3502_v6 = vand.u32 2147483648, %v3397_v35  ;;  %v3500_v36 = vand.u32 2147483647, %v3397_v35  ;;  %vm3496_vm2 = vweird.f32 %v3397_v35 }
 0xaf7   : > { %v3503_v47 = vor.u32 1.1754944e-38, %v3502_v6  ;;  %vm3501_vm6 = vcmp.eq.f32.partialorder %v3500_v36, 8.507059e+37 }
 0xafb   : > { %v5305_v9 = vpop.eup %5304 }
 0xafc   : > { %v3492_v19 = vmul.f32 %v5305_v9, %v3397_v35  ;;  %vm3497_vm4 = vweird.f32 %v5305_v9 }
 0xafd   : > { %vm3498_vm5 = vmor %vm3496_vm2, %vm3497_vm4 }
 0xafe   : > { %v3493_v30 = vsub.f32 1.0, %v3492_v19 }
 0xb00   : > { %v3494_v57 = vmul.f32 %v5305_v9, %v3493_v30  ;;  %v3409_v43 = vpop.xlane.xlu0 %3408 }
 0xb01   : > { %v3421_v38 = vpop.xlane.xlu1 %3420  ;;  %5306 = vrcp.f32 %v3409_v43  ;;  %v3560_v24 = vand.u32 2147483647, %v3409_v43  ;;  %vm3556_vm9 = vweird.f32 %v3409_v43 }
 0xb02   : > { %v3495_v54 = vadd.f32 %v5305_v9, %v3494_v57  ;;  %5308 = vrcp.f32 %v3421_v38  ;;  %v3622_v60 = vand.u32 2147483648, %v3421_v38  ;;  %v3620_v35 = vand.u32 2147483647, %v3421_v38 }
 0xb03   : > { %vm3616_vm10 = vweird.f32 %v3421_v38  ;;  %vm3561_vm13 = vcmp.eq.f32.partialorder %v3560_v24, 8.507059e+37 }
 0xb04   : > { %v3499_v33 = vsel %vm3498_vm5, %v5305_v9, %v3495_v54  ;;  %v3623_v36 = vor.u32 1.1754944e-38, %v3622_v60  ;;  %vm3621_vm14 = vcmp.eq.f32.partialorder %v3620_v35, 8.507059e+37 }
 0xb05   : > { %v3504_v5 = vsel %vm3501_vm6, %v3503_v47, %v3499_v33 }
 0xb06   : > { %v6652_v42 = vmul.f32 %v6572_v48, %v3504_v5  ;;  %v3562_v48 = vand.u32 2147483648, %v3409_v43 }
 0xb07   : > { %v5307_v59 = vpop.eup %5306 }
 0xb08   : > { %7431 = vst [vmem:[#allocation12_spill] sm:$0xff] %v6652_v42  ;;  %v5309_v25 = vpop.eup %5308  ;;  %v3552_v3 = vmul.f32 %v5307_v59, %v3409_v43  ;;  %5005 = vmatmul.msk.f32.vlgmr.msrb.gmra.mxu1 %vm7400_vm1, %v6652_v42  ;;  %v6656_v53 = vpop.xlane.xlu2 %3411  ;;  %vm3557_vm7 = vweird.f32 %v5307_v59  ;;  %v3563_v6 = vor.u32 1.1754944e-38, %v3562_v48 }
 0xb09   : > { %v3612_v8 = vmul.f32 %v5309_v25, %v3421_v38  ;;  %v6658_v18 = vpop.xlane.xlu1 %3387  ;;  %5310 = vrcp.f32 %v6656_v53  ;;  %vm3617_vm8 = vweird.f32 %v5309_v25  ;;  %vm3558_vm11 = vmor %vm3556_vm9, %vm3557_vm7  ;;  %vm3571_vm9 = vweird.f32 %v6656_v53 }
 0xb0a   : > { %v3553_v62 = vsub.f32 1.0, %v3552_v3  ;;  %5312 = vrcp.f32 %v6658_v18  ;;  %v3385_v31 = vpop.xlane.xlu0 %3384  ;;  %vm3618_vm12 = vmor %vm3616_vm10, %vm3617_vm8  ;;  %v3457_v35 = vand.u32 2147483648, %v6658_v18  ;;  %vm3451_vm8 = vweird.f32 %v6658_v18 }
 0xb0b   : > { %v3613_v0 = vsub.f32 1.0, %v3612_v8  ;;  %5314 = vrcp.f32 %v3385_v31  ;;  %vm3436_vm2 = vweird.f32 %v3385_v31 }
 0xb0c   : > { %v3554_v28 = vmul.f32 %v5307_v59, %v3553_v62 }
 0xb0d   : > { %v3614_v27 = vmul.f32 %v5309_v25, %v3613_v0 }
 0xb0e   : > { %v3555_v9 = vadd.f32 %v5307_v59, %v3554_v28 }
 0xb0f   : > { %v6662_v19 = vpop.eup %5310  ;;  %v3615_v30 = vadd.f32 %v5309_v25, %v3614_v27 }
 0xb10   : > { %v6664_v57 = vpop.eup %5312  ;;  %v3559_v54 = vsel %vm3558_vm11, %v5307_v59, %v3555_v9  ;;  %v3567_v47 = vmul.f32 %v6662_v19, %v6656_v53  ;;  %v6668_v33 = vpop.xlane.xlu2 %3423  ;;  %vm3572_vm7 = vweird.f32 %v6662_v19 }
 0xb11   : > { %v5315_v5 = vpop.eup %5314  ;;  %v3619_v3 = vsel %vm3618_vm12, %v5309_v25, %v3615_v30  ;;  %v3564_v43 = vsel %vm3561_vm13, %v3563_v6, %v3559_v54  ;;  %v3447_v60 = vmul.f32 %v6664_v57, %v6658_v18  ;;  %v3442_v25 = vand.u32 2147483648, %v3385_v31  ;;  %vm6720_vm10 = vmor %vm3571_vm9, %vm3572_vm7 }
 0xb12   : > { %v3624_v8 = vsel %vm3621_vm14, %v3623_v36, %v3619_v3  ;;  %v6671_v38 = vmul.f32 %v6581_v20, %v3564_v43  ;;  %v3432_v62 = vmul.f32 %v5315_v5, %v3385_v31  ;;  %v6673_v0 = vpop.xlane.xlu0 %3414  ;;  %v3568_v59 = vsub.f32 1.0, %v3567_v47 }
 0xb13   : > { %v6676_v48 = vmul.f32 %v6583_v49, %v3624_v8  ;;  %5316 = vrcp.f32 %v6673_v0  ;;  %vm3437_vm4 = vweird.f32 %v5315_v5  ;;  %v3440_v49 = vand.u32 2147483647, %v3385_v31 }
 0xb14   : > { %7432 = vst [vmem:[#allocation13_spill] sm:$0xff] %v6671_v38  ;;  %v3433_v28 = vsub.f32 1.0, %v3432_v62  ;;  %5009 = vmatmul.msk.f32.vlgmr.msra.gmra.mxu2 %vm7400_vm1, %v6671_v38  ;;  %5318 = vrcp.f32 %v6668_v33  ;;  %v3569_v24 = vmul.f32 %v6662_v19, %v3568_v59  ;;  %v3448_v27 = vsub.f32 1.0, %v3447_v60  ;;  %vm3438_vm5 = vmor %vm3436_vm2, %vm3437_vm4 }
 0xb15   : > { %7433 = vst [vmem:[#allocation14_spill] sm:$0xff] %v6676_v48  ;;  %5013 = vmatmul.msk.f32.vlgmr.msrb.gmra.mxu3 %vm7400_vm1, %v6676_v48  ;;  %v3443_v36 = vor.u32 1.1754944e-38, %v3442_v25  ;;  %v3575_v54 = vand.u32 2147483647, %v6656_v53  ;;  %v3577_v47 = vand.u32 2147483648, %v6656_v53  ;;  %vm3441_vm6 = vcmp.eq.f32.partialorder %v3440_v49, 8.507059e+37 }
 0xb16   : > { %v3434_v20 = vmul.f32 %v5315_v5, %v3433_v28  ;;  %v3570_v60 = vadd.f32 %v6662_v19, %v3569_v24  ;;  %v3592_v28 = vand.u32 2147483648, %v6673_v0  ;;  %v3449_v25 = vmul.f32 %v6664_v57, %v3448_v27 }
 0xb17   : > { %v3637_v49 = vand.u32 2147483648, %v6668_v33  ;;  %v6718_v24 = vor.u32 1.1754944e-38, %v3457_v35  ;;  %vm6724_vm11 = vcmp.eq.f32.partialorder %v3575_v54, 8.507059e+37  ;;  %vm3452_vm12 = vweird.f32 %v6664_v57 }
 0xb18   : > { %v3435_v9 = vadd.f32 %v5315_v5, %v3434_v20  ;;  %v6688_v30 = vpop.xlane.xlu2 %3399  ;;  %v3578_v53 = vor.u32 1.1754944e-38, %v3577_v47  ;;  %v6734_v35 = vor.u32 1.1754944e-38, %v3592_v28  ;;  %v3574_v54 = vsel %vm6720_vm10, %v6662_v19, %v3570_v60  ;;  %vm6791_vm7 = vmor %vm3451_vm8, %vm3452_vm12 }
 0xb19   : > { %v6690_v6 = vpop.eup %5316  ;;  %v6694_v3 = vpop.xlane.xlu1 %3417  ;;  %5320 = vrcp.f32 %v6688_v30  ;;  %vm3586_vm13 = vweird.f32 %v6673_v0  ;;  %v6744_v48 = vor.u32 1.1754944e-38, %v3637_v49  ;;  %v3515_v28 = vand.u32 2147483647, %v6688_v30 }
 0xb1a   : > { %v3439_v43 = vsel %vm3438_vm5, %v5315_v5, %v3435_v9  ;;  %v3582_v8 = vmul.f32 %v6690_v6, %v6673_v0  ;;  %5322 = vrcp.f32 %v6694_v3  ;;  %v6700_v31 = vpop.xlane.xlu0 %3426  ;;  %v6702_v62 = vpop.eup %5318  ;;  %v3455_v9 = vand.u32 2147483647, %v6658_v18 }
 0xb1b   : > { %v3444_v59 = vsel %vm3441_vm6, %v3443_v36, %v3439_v43  ;;  %v3627_v20 = vmul.f32 %v6702_v62, %v6668_v33  ;;  %5324 = vrcp.f32 %v6700_v31  ;;  %v3590_v43 = vand.u32 2147483647, %v6673_v0 }
 0xb1c   : > { %v6709_v5 = vmul.f32 %v6597_v26, %v3444_v59  ;;  %v3583_v36 = vsub.f32 1.0, %v3582_v8  ;;  %v3450_v8 = vadd.f32 %v6664_v57, %v3449_v25  ;;  %vm6746_vm14 = vcmp.eq.f32.partialorder %v3455_v9, 8.507059e+37 }
 0xb1d   : > { %v3628_v45 = vsub.f32 1.0, %v3627_v20  ;;  %v3607_v19 = vand.u32 2147483648, %v6694_v3  ;;  %vm3587_vm4 = vweird.f32 %v6690_v6  ;;  %vm6760_vm2 = vcmp.eq.f32.partialorder %v3590_v43, 8.507059e+37 }
 0xb1e   : > { %7434 = vst [vmem:[#allocation15_spill] sm:$0xff] %v6709_v5  ;;  %5001 = vmatmul.msk.f32.vlgmr.msra.gmra.mxu0 %vm7400_vm1, %v6709_v5  ;;  %v3635_v5 = vand.u32 2147483647, %v6668_v33  ;;  %v3584_v20 = vmul.f32 %v6690_v6, %v3583_v36  ;;  %vm3631_vm5 = vweird.f32 %v6668_v33  ;;  %v3579_v9 = vsel %vm6724_vm11, %v3578_v53, %v3574_v54 }
 0xb1f   : > { %v6731_v59 = vpop.eup %5320  ;;  %v3605_v13 = vand.u32 2147483647, %v6694_v3  ;;  %v3652_v43 = vand.u32 2147483648, %v6700_v31  ;;  %v6777_v38 = vmul.f32 %v6591_v51, %v3579_v9  ;;  %v3629_v42 = vmul.f32 %v6702_v62, %v3628_v45 }
 0xb20   : > { %v6739_v23 = vpop.eup %5322  ;;  %v3507_v60 = vmul.f32 %v6731_v59, %v6688_v30  ;;  %v6770_v56 = vpop.xlane.xlu2 %3390  ;;  %vm6780_vm6 = vcmp.eq.f32.partialorder %v3635_v5, 8.507059e+37  ;;  %v3517_v21 = vand.u32 2147483648, %v6688_v30  ;;  %vm3632_vm9 = vweird.f32 %v6702_v62 }
 0xb21   : > { %v3597_v47 = vmul.f32 %v6739_v23, %v6694_v3  ;;  %v6756_v25 = vpop.xlane.xlu1 %3429  ;;  %v6772_v15 = vpop.eup %5324  ;;  %7443 = vst [vmem:[#allocation16_spill] sm:$0xff] %v6777_v38  ;;  %v6796_v45 = vor.u32 1.1754944e-38, %v3607_v19  ;;  %5010 = vmatmul.msk.f32.gmra.mxu2 %vm7400_vm1, %v6777_v38  ;;  %v3585_v5 = vadd.f32 %v6690_v6, %v3584_v20  ;;  %v3650_v18 = vand.u32 2147483647, %v6700_v31 }
 0xb22   : > { %5326 = vrcp.f32 %v6756_v25  ;;  %v6768_v27 = vpop.xlane.xlu0 %3402  ;;  %v3642_v53 = vmul.f32 %v6772_v15, %v6700_v31  ;;  %v3508_v54 = vsub.f32 1.0, %v3507_v60  ;;  %v3667_v51 = vand.u32 2147483648, %v6756_v25 }
 0xb23   : > { %v3598_v36 = vsub.f32 1.0, %v3597_v47  ;;  %5328 = vrcp.f32 %v6768_v27  ;;  %v3454_v9 = vsel %vm6791_vm7, %v6664_v57, %v3450_v8  ;;  %vm3602_vm8 = vweird.f32 %v6739_v23  ;;  %vm6823_vm7 = vmor %vm3586_vm13, %vm3587_vm4 }
 0xb24   : > { %v3643_v19 = vsub.f32 1.0, %v3642_v53  ;;  %v6809_v44 = vor.u32 1.1754944e-38, %v3652_v43  ;;  %vm3511_vm10 = vweird.f32 %v6688_v30  ;;  %5330 = vrcp.f32 %v6770_v56  ;;  %vm6856_vm13 = vmor %vm3631_vm5, %vm3632_vm9 }
 0xb25   : > { %v3599_v60 = vmul.f32 %v6739_v23, %v3598_v36  ;;  %v3630_v20 = vadd.f32 %v6702_v62, %v3629_v42  ;;  %vm3601_vm11 = vweird.f32 %v6694_v3  ;;  %v3509_v36 = vmul.f32 %v6731_v59, %v3508_v54 }
 0xb26   : > { %vm3512_vm12 = vweird.f32 %v6731_v59  ;;  %v3518_v57 = vor.u32 1.1754944e-38, %v3517_v21  ;;  %vm3646_vm0 = vweird.f32 %v6700_v31  ;;  %vm3647_vm15 = vweird.f32 %v6772_v15 }
 0xb27   : > { %vm6829_vm3 = vcmp.eq.f32.partialorder %v3515_v28, 8.507059e+37  ;;  %v3665_v21 = vand.u32 2147483647, %v6756_v25  ;;  %v6836_v53 = vor.u32 1.1754944e-38, %v3667_v51  ;;  %v6839_v0 = vadd.f32 %v6739_v23, %v3599_v60 }
 0xb28   : > { %v6813_v38 = vpop.eup %5326  ;;  %v3530_v54 = vand.u32 2147483647, %v6768_v27  ;;  %v3459_v47 = vsel %vm6746_vm14, %v6718_v24, %v3454_v9  ;;  %v3589_v28 = vsel %vm6823_vm7, %v6690_v6, %v3585_v5  ;;  %vm6860_vm4 = vcmp.eq.f32.partialorder %v3605_v13, 8.507059e+37  ;;  %v6886_v49 = vpop.xlane.xlu2 %3393  ;;  %vm6917_vm7 = vmor %vm3511_vm10, %vm3512_vm12 }
 0xb29   : > { %v3657_v43 = vmul.f32 %v6813_v38, %v6756_v25  ;;  %v6850_v46 = vpop.eup %5328  ;;  %v3644_v2 = vmul.f32 %v6772_v15, %v3643_v19  ;;  %vm3526_vm14 = vweird.f32 %v6768_v27  ;;  %v6867_v6 = vmul.f32 %v6593_v40, %v3459_v47  ;;  %vm6934_vm10 = vmor %vm3601_vm11, %vm3602_vm8 }
 0xb2a   : > { %v6848_v41 = vpop.xlane.xlu0 %3405  ;;  %v3594_v33 = vsel %vm6760_vm2, %v6734_v35, %v3589_v28  ;;  %vm6872_vm5 = vcmp.eq.f32.partialorder %v3650_v18, 8.507059e+37  ;;  %v3510_v13 = vadd.f32 %v6731_v59, %v3509_v36  ;;  %v3522_v9 = vmul.f32 %v6850_v46, %v6768_v27  ;;  %v6888_v35 = vpop.eup %5330 }
 0xb2b   : > { %v3658_v24 = vsub.f32 1.0, %v3657_v43  ;;  %v6881_v19 = vmul.f32 %v6608_v52, %v3594_v33  ;;  %v3634_v40 = vsel %vm6856_vm13, %v6702_v62, %v3630_v20  ;;  %v3532_v18 = vand.u32 2147483648, %v6768_v27  ;;  %5002 = vmatmul.msk.f32.gmra.mxu0 %vm7400_vm1, %v6867_v6 }
 0xb2c   : > { %v3470_v36 = vand.u32 2147483647, %v6770_v56  ;;  %v3639_v52 = vsel %vm6780_vm6, %v6744_v48, %v3634_v40  ;;  %5332 = vrcp.f32 %v6848_v41  ;;  %v3523_v62 = vsub.f32 1.0, %v3522_v9 }
 0xb2d   : > { %v3659_v8 = vmul.f32 %v6813_v38, %v3658_v24  ;;  %v3462_v20 = vmul.f32 %v6888_v35, %v6770_v56  ;;  %5011 = vmatmul.msk.f32.gmra.mxu2 %vm7400_vm1, %v6881_v19  ;;  %v6904_v43 = vmul.f32 %v6606_v22, %v3639_v52  ;;  %v3645_v47 = vadd.f32 %v6772_v15, %v3644_v2 }
 0xb2e   : > { %vm6907_vm2 = vcmp.eq.f32.partialorder %v3530_v54, 8.507059e+37  ;;  %5334 = vrcp.f32 %v6886_v49  ;;  %vm3662_vm13 = vweird.f32 %v6813_v38  ;;  %vm6922_vm9 = vcmp.eq.f32.partialorder %v3665_v21, 8.507059e+37 }
 0xb2f   : > { %v3524_v26 = vmul.f32 %v6850_v46, %v3523_v62  ;;  %v3463_v54 = vsub.f32 1.0, %v3462_v20  ;;  %v3472_v51 = vand.u32 2147483648, %v6770_v56  ;;  %5014 = vmatmul.msk.f32.gmra.mxu3 %vm7400_vm1, %v6904_v43  ;;  %vm3527_vm12 = vweird.f32 %v6850_v46  ;;  %vm6950_vm1 = vmor %vm3646_vm0, %vm3647_vm15 }
 0xb30   : > { %v3533_v21 = vor.u32 1.1754944e-38, %v3532_v18  ;;  %vm6939_vm6 = vcmp.eq.f32.partialorder %v3470_v36, 8.507059e+37  ;;  %v3514_v24 = vsel %vm6917_vm7, %v6731_v59, %v3510_v13  ;;  %v3660_v33 = vadd.f32 %v6813_v38, %v3659_v8  ;;  %vm6972_vm0 = vmor %vm3526_vm14, %vm3527_vm12 }
 0xb31   : > { %v3525_v9 = vadd.f32 %v6850_v46, %v3524_v26  ;;  %v3464_v40 = vmul.f32 %v6888_v35, %v3463_v54  ;;  %v3519_v18 = vsel %vm6829_vm3, %v3518_v57, %v3514_v24  ;;  %vm3467_vm8 = vweird.f32 %v6888_v35  ;;  %v5019_v24 = vld [vmem:[%s7366_s8 + $0x18] sm:$0xf] }
 0xb32   : > { %v5333_v36 = vpop.eup %5332  ;;  %v6961_v59 = vmul.f32 %v6617_v16, %v3519_v18  ;;  %v3604_v31 = vsel %vm6934_vm10, %v6739_v23, %v6839_v0  ;;  %v3649_v13 = vsel %vm6950_vm1, %v6772_v15, %v3645_v47  ;;  %v3473_v52 = vor.u32 1.1754944e-38, %v3472_v51 }
 0xb33   : > { %v3465_v57 = vadd.f32 %v6888_v35, %v3464_v40  ;;  %v3537_v16 = vmul.f32 %v5333_v36, %v6848_v41  ;;  %v3609_v8 = vsel %vm6860_vm4, %v6796_v45, %v3604_v31  ;;  %vm7472_vm1 = vweird.f32 %v6756_v25 }
 0xb34   : > { %v5335_v23 = vpop.eup %5334  ;;  %vm6985_vm15 = vmor %vm7472_vm1, %vm3662_vm13  ;;  %vm3541_vm3 = vweird.f32 %v6848_v41  ;;  %vm7475_vm11 = vcmask 261120   ;;  %v6993_v27 = vmul.f32 %v6619_v4, %v3609_v8  ;;  %v3654_v45 = vsel %vm6872_vm5, %v6809_v44, %v3649_v13 }
 0xb35   : > { %5006 = vmatmul.msk.f32.gmra.mxu1 %vm7475_vm11, %v6961_v59  ;;  %v3529_v25 = vsel %vm6972_vm0, %v6850_v46, %v3525_v9  ;;  %vm7476_vm4 = vweird.f32 %v6770_v56  ;;  %v3538_v0 = vsub.f32 1.0, %v3537_v16  ;;  %v3477_v60 = vmul.f32 %v5335_v23, %v6886_v49  ;;  %vm7477_vm5 = vmmov %vm7475_vm11  ;;  %v5018_v9 = vld [vmem:[%s7366_s8 + $0x14] sm:$0xf] }
 0xb36   : > { %vm3468_vm14 = vmor %vm7476_vm4, %vm3467_vm8  ;;  %v7007_v62 = vmul.f32 %v6623_v14, %v3654_v45  ;;  %v3664_v4 = vsel %vm6985_vm15, %v6813_v38, %v3660_v33  ;;  %v3545_v44 = vand.u32 2147483647, %v6848_v41  ;;  %v3547_v5 = vand.u32 2147483648, %v6848_v41  ;;  %5012 = vmatmul.msk.f32.gmra.mxu2 %vm7477_vm5, %v6993_v27  ;;  %v5017_v33 = vld [vmem:[%s7366_s8 + $0x10] sm:$0xf] }
 0xb37   : > { %v3469_v46 = vsel %vm3468_vm14, %v6888_v35, %v3465_v57  ;;  %v3534_v56 = vsel %vm6907_vm2, %v3533_v21, %v3529_v25  ;;  %v3539_v20 = vmul.f32 %v5333_v36, %v3538_v0  ;;  %vm3542_vm7 = vweird.f32 %v5333_v36  ;;  %vm7478_vm13 = vmmov %vm7477_vm5 }
 0xb38   : > { %v3478_v14 = vsub.f32 1.0, %v3477_v60  ;;  %5015 = vmatmul.msk.f32.gmra.mxu3 %vm7478_vm13, %v7007_v62  ;;  %v3474_v38 = vsel %vm6939_vm6, %v3473_v52, %v3469_v46  ;;  %v3487_v47 = vand.u32 2147483648, %v6886_v49  ;;  %v7028_v26 = vmul.f32 %v6637_v37, %v3534_v56  ;;  %vm3543_vm6 = vmor %vm3541_vm3, %vm3542_vm7 }
 0xb39   : > { %v7025_v48 = vmul.f32 %v6631_v7, %v3474_v38  ;;  %v3669_v35 = vsel %vm6922_vm9, %v6836_v53, %v3664_v4  ;;  %v3540_v28 = vadd.f32 %v5333_v36, %v3539_v20  ;;  %vm3482_vm2 = vweird.f32 %v5335_v23  ;;  %vm7479_vm12 = vmmov %vm7477_vm5 }
 0xb3a   : > { %v3479_v54 = vmul.f32 %v5335_v23, %v3478_v14  ;;  %v3485_v51 = vand.u32 2147483647, %v6886_v49  ;;  %vm3481_vm10 = vweird.f32 %v6886_v49  ;;  %v3548_v7 = vor.u32 1.1754944e-38, %v3547_v5  ;;  %vm7480_vm0 = vmmov %vm7477_vm5 }
 0xb3b   : > { %5003 = vmatmul.msk.f32.gmra.mxu0 %vm7479_vm12, %v7025_v48  ;;  %v7040_v30 = vmul.f32 %v6633_v55, %v3669_v35  ;;  %v3544_v22 = vsel %vm3543_vm6, %v5333_v36, %v3540_v28  ;;  %vm3546_vm9 = vcmp.eq.f32.partialorder %v3545_v44, 8.507059e+37  ;;  %vm3483_vm8 = vmor %vm3481_vm10, %vm3482_vm2  ;;  %v3488_v53 = vor.u32 1.1754944e-38, %v3487_v47 }
 0xb3c   : > { %v3480_v37 = vadd.f32 %v5335_v23, %v3479_v54  ;;  %vm3486_vm1 = vcmp.eq.f32.partialorder %v3485_v51, 8.507059e+37  ;;  %v3549_v21 = vsel %vm3546_vm9, %v3548_v7, %v3544_v22  ;;  %vm7481_vm15 = vmmov %vm7480_vm0  ;;  %vm7484_vm4 = vcmask 1043456  }
 0xb3d   : > { %5007 = vmatmul.msk.f32.gmra.mxu1 %vm7480_vm0, %v7028_v26  ;;  %v7050_v55 = vmul.f32 %v6645_v11, %v3549_v21  ;;  %vm7482_vm3 = vmmov %vm7480_vm0  ;;  %v4002_v3 = vsel %vm7484_vm4, %v5019_v24, 0  ;;  %vm7488_vm13 = vcmask 64512  }
 0xb3e   : > { %v3484_v41 = vsel %vm3483_vm8, %v5335_v23, %v3480_v37  ;;  %vm7483_vm11 = vmmov %vm7480_vm0  ;;  %4011 = vmatpush.bf16.msrb.mxu2 %v4002_v3 }
 0xb3f   : > { %v3489_v2 = vsel %vm3486_vm1, %v3488_v53, %v3484_v41  ;;  %vm7485_vm14 = vmmov %vm7484_vm4 }
 0xb40   : > { %5016 = vmatmul.msk.f32.gmra.mxu3 %vm7481_vm15, %v7040_v30  ;;  %v7047_v49 = vmul.f32 %v6643_v12, %v3489_v2  ;;  %v5020_v12 = vld [vmem:[%s7366_s8 + $0x1c] sm:$0xf]  ;;  %vm7486_vm5 = vmmov %vm7484_vm4 }
 0xb41   : > { %v4040_v11 = vsel %vm7485_vm14, %v5020_v12, 0  ;;  %v3926_v40 = vsel %vm7486_vm5, %v5017_v33, 0  ;;  %vm7487_vm7 = vmmov %vm7484_vm4 }
 0xb42   : > { %4049 = vmatpush.bf16.msra.mxu3 %v4040_v11  ;;  %v3964_v18 = vsel %vm7487_vm7, %v5018_v9, 0  ;;  %3935 = vmatpush.bf16.msrb.mxu0 %v3926_v40  ;;  %vm7489_vm2 = vmmov %vm7488_vm13 }
 0xb43   : > { %5004 = vmatmul.msk.f32.gmra.mxu0 %vm7482_vm3, %v7047_v49  ;;  %3973 = vmatpush.bf16.msra.mxu1 %v3964_v18  ;;  %vm7490_vm6 = vmmov %vm7489_vm2 }
 0xb44   : > { %vm7491_vm10 = vmmov %vm7489_vm2 }
 0xb45   : > { %5008 = vmatmul.msk.f32.gmra.mxu1 %vm7483_vm11, %v7050_v55  ;;  %vm7492_vm12 = vmmov %vm7489_vm2 }
 0xb46   : > { %vm7493_vm9 = vmmov %vm7489_vm2 }
 0xb47   : > { %vm7494_vm8 = vmmov %vm7489_vm2 }
 0xb48   : > { %vm7495_vm0 = vmmov %vm7489_vm2 }
 0xb49   : > { %vm7496_vm1 = vmmov %vm7482_vm3 }
 0xb4a   : > { %vm7497_vm15 = vmmov %vm7496_vm1 }
 0xb4b   : > { %vm7498_vm3 = vmmov %vm7496_vm1 }
 0xb4c   : > { %vm7499_vm11 = vmmov %vm7496_vm1 }
 0xb4d   : > { %vm7500_vm4 = vmmov %vm7496_vm1 }
 0xb4e   : > { %vm7501_vm14 = vmmov %vm7496_vm1 }
 0xb4f   : > { %vm7502_vm5 = vmmov %vm7496_vm1 }
 0xb50   : > { %vm7503_vm7 = vmmov %vm7496_vm1 }
 0xb85   : > { %v3802_v16 = vpop.f32.mrf.mxu1 }
 0xb86   : > { %v3892_v5 = vpack.c.bf16 %v3802_v16, %v3802_v16 }
 0xb88   : > { %v3951_v35 = vunpack.c.l.b16 %v3892_v5 }
 0xb97   : > { %v3839_v36 = vpop.f32.mrf.mxu2 }
 0xb98   : > { %v3896_v13 = vpack.c.bf16 %v3839_v36, %v3839_v36  ;;  %v3876_v15 = vpop.f32.mrf.mxu3 }
 0xb99   : > { %v3900_v56 = vpack.c.bf16 %v3876_v15, %v3876_v15 }
 0xb9a   : > { %v3989_v23 = vunpack.c.l.b16 %v3896_v13 }
 0xb9b   : > { %v3765_v31 = vpop.f32.mrf.mxu0  ;;  %v4027_v54 = vunpack.c.l.b16 %v3900_v56 }
 0xb9c   : > { %v3888_v57 = vpack.c.bf16 %v3765_v31, %v3765_v31 }
 0xb9e   : > { %v3913_v0 = vunpack.c.l.b16 %v3888_v57 }
 0xba4   : > { %v3842_v42 = vpop.f32.mrf.mxu2 }
 0xba5   : > { %v3897_v52 = vpack.c.bf16 %v3842_v42, %v3842_v42 }
 0xba7   : > { %v3990_v45 = vunpack.c.l.b16 %v3897_v52 }
 0xba8   : > { %v3768_v8 = vpop.f32.mrf.mxu0 }
 0xba9   : > { %v3889_v25 = vpack.c.bf16 %v3768_v8, %v3768_v8  ;;  %v3993_v60 = vpack.c.b16 %v3990_v45, %v3989_v23 }
 0xbab   : > { %v3914_v4 = vunpack.c.l.b16 %v3889_v25  ;;  %5025 = vmatmul.msk.bf16.vlgmr.msrb.gmra.mxu2 %vm7488_vm13, %v3993_v60  ;;  %vm7504_vm13 = vmmov %vm7496_vm1 }
 0xbad   : > { %v3917_v44 = vpack.c.b16 %v3914_v4, %v3913_v0 }
 0xbaf   : > { %5021 = vmatmul.msk.bf16.vlgmr.msrb.gmra.mxu0 %vm7489_vm2, %v3917_v44  ;;  %vm7505_vm2 = vmmov %vm7496_vm1 }
 0xbb0   : > { %v3845_v46 = vpop.f32.mrf.mxu2 }
 0xbb1   : > { %v3898_v53 = vpack.c.bf16 %v3845_v46, %v3845_v46 }
 0xbb2   : > { %v3805_v20 = vpop.f32.mrf.mxu1  ;;  %v3879_v14 = vpop.f32.mrf.mxu3 }
 0xbb3   : > { %v3893_v38 = vpack.c.bf16 %v3805_v20, %v3805_v20  ;;  %v3901_v47 = vpack.c.bf16 %v3879_v14, %v3879_v14  ;;  %v3991_v3 = vunpack.c.l.b16 %v3898_v53  ;;  %v5167_v53 = vld [vmem:[%s7367_s9 + $0x1] ss:$0 sm:$0xff] }
 0xbb5   : > { %v3952_v28 = vunpack.c.l.b16 %v3893_v38  ;;  %v4028_v51 = vunpack.c.l.b16 %v3901_v47 }
 0xbb7   : > { %v3955_v7 = vpack.c.b16 %v3952_v28, %v3951_v35  ;;  %v4031_v37 = vpack.c.b16 %v4028_v51, %v4027_v54 }
 0xbb8   : > { %v3771_v22 = vpop.f32.mrf.mxu0 }
 0xbb9   : > { %5023 = vmatmul.msk.bf16.vlgmr.msra.gmra.mxu1 %vm7490_vm6, %v3955_v7  ;;  %5027 = vmatmul.msk.bf16.vlgmr.msra.gmra.mxu3 %vm7491_vm10, %v4031_v37  ;;  %v3848_v41 = vpop.f32.mrf.mxu2  ;;  %v3890_v33 = vpack.c.bf16 %v3771_v22, %v3771_v22  ;;  %vm7506_vm6 = vmmov %vm7496_vm1 }
 0xbba   : > { %v3808_v21 = vpop.f32.mrf.mxu1  ;;  %v3899_v2 = vpack.c.bf16 %v3848_v41, %v3848_v41  ;;  %vm7507_vm10 = vmmov %vm7496_vm1 }
 0xbbb   : > { %v3882_v24 = vpop.f32.mrf.mxu3  ;;  %v3894_v40 = vpack.c.bf16 %v3808_v21, %v3808_v21  ;;  %v3915_v13 = vunpack.c.l.b16 %v3890_v33 }
 0xbbc   : > { %v3992_v12 = vunpack.c.l.b16 %v3899_v2  ;;  %v3902_v36 = vpack.c.bf16 %v3882_v24, %v3882_v24 }
 0xbbd   : > { %v3953_v8 = vunpack.c.l.b16 %v3894_v40 }
 0xbbe   : > { %v3994_v11 = vpack.c.b16 %v3992_v12, %v3991_v3  ;;  %v4029_v45 = vunpack.c.l.b16 %v3902_v36 }
 0xbc0   : > { %v3774_v9 = vpop.f32.mrf.mxu0  ;;  %5026 = vmatmul.msk.bf16.gmra.mxu2 %vm7492_vm12, %v3994_v11  ;;  %vm7508_vm12 = vmmov %vm7496_vm1 }
 0xbc1   : > { %v3891_v18 = vpack.c.bf16 %v3774_v9, %v3774_v9 }
 0xbc2   : > { %v3811_v31 = vpop.f32.mrf.mxu1 }
 0xbc3   : > { %v3885_v42 = vpop.f32.mrf.mxu3  ;;  %v3916_v57 = vunpack.c.l.b16 %v3891_v18  ;;  %v3895_v52 = vpack.c.bf16 %v3811_v31, %v3811_v31 }
 0xbc4   : > { %v3903_v16 = vpack.c.bf16 %v3885_v42, %v3885_v42 }
 0xbc5   : > { %v3918_v23 = vpack.c.b16 %v3916_v57, %v3915_v13  ;;  %v3954_v15 = vunpack.c.l.b16 %v3895_v52 }
 0xbc6   : > { %v4030_v25 = vunpack.c.l.b16 %v3903_v16 }
 0xbc7   : > { %v3956_v0 = vpack.c.b16 %v3954_v15, %v3953_v8  ;;  %5022 = vmatmul.msk.bf16.gmra.mxu0 %vm7493_vm9, %v3918_v23  ;;  %vm7509_vm9 = vmmov %vm7496_vm1 }
 0xbc8   : > { %v4032_v60 = vpack.c.b16 %v4030_v25, %v4029_v45 }
 0xbc9   : > { %5024 = vmatmul.msk.bf16.gmra.mxu1 %vm7494_vm8, %v3956_v0  ;;  %vm7510_vm8 = vmmov %vm7496_vm1 }
 0xbca   : > { %5028 = vmatmul.msk.bf16.gmra.mxu3 %vm7495_vm0, %v4032_v60  ;;  %vm7511_vm0 = vmmov %vm7496_vm1 }
 0xc2c   : > { %v3937_v4 = vpop.f32.mrf.mxu0 }
 0xc2d   : > { %v4061_v46 = vsel %vm7496_vm1, %v3937_v4, 0.0  ;;  %vm7512_vm1 = vmmov %vm7511_vm0 }
 0xc2e   : > { %v4013_v44 = vpop.f32.mrf.mxu2 }
 0xc2f   : > { %v4064_v14 = vsel %vm7498_vm3, %v4013_v44, 0.0  ;;  %vm7514_vm3 = vmmov %vm7511_vm0 }
 0xc34   : > { %v3939_v35 = vpop.f32.mrf.mxu0 }
 0xc35   : > { %v4068_v7 = vsel %vm7500_vm4, %v3939_v35, 0.0  ;;  %vm7516_vm4 = vmmov %vm7511_vm0 }
 0xc36   : > { %v3975_v5 = vpop.f32.mrf.mxu1  ;;  %v4015_v38 = vpop.f32.mrf.mxu2 }
 0xc37   : > { %v4062_v56 = vsel %vm7497_vm15, %v3975_v5, 0.0  ;;  %v4071_v2 = vsel %vm7502_vm5, %v4015_v38, 0.0  ;;  %vm7513_vm15 = vmmov %vm7511_vm0 }
 0xc38   : > { %v4063_v20 = vadd.f32 %v4062_v56, %v4061_v46  ;;  %vm7518_vm5 = vmmov %vm7511_vm0 }
 0xc3a   : > { %v4065_v47 = vadd.f32 %v4064_v14, %v4063_v20 }
 0xc3c   : > { %v4051_v28 = vpop.f32.mrf.mxu3 }
 0xc3d   : > { %v4066_v54 = vsel %vm7499_vm11, %v4051_v28, 0.0  ;;  %vm7515_vm11 = vmmov %vm7511_vm0 }
 0xc3e   : > { %v3977_v51 = vpop.f32.mrf.mxu1  ;;  %v4067_v37 = vadd.f32 %v4066_v54, %v4065_v47 }
 0xc3f   : > { %v4069_v22 = vsel %vm7501_vm14, %v3977_v51, 0.0  ;;  %vm7517_vm14 = vmmov %vm7511_vm0 }
 0xc40   : > { %v4070_v41 = vadd.f32 %v4069_v22, %v4068_v7  ;;  %v4089_v21 = vadd.f32 %v4067_v37, %v6278_v63 }
 0xc42   : > { %v4072_v24 = vadd.f32 %v4071_v2, %v4070_v41  ;;  %v7091_v3 = vadd.f32 %v5167_v53, %v4089_v21 }
 0xc43   : > { %v4018_v11 = vpop.f32.mrf.mxu2 }
 0xc44   : > { %v3942_v12 = vpop.f32.mrf.mxu0  ;;  %v4053_v33 = vpop.f32.mrf.mxu3  ;;  %v4106_v9 = vsel %vm7503_vm7, %v7091_v3, 0.0  ;;  %v4078_v57 = vsel %vm7507_vm10, %v4018_v11, 0.0  ;;  %vm7519_vm7 = vmmov %vm7511_vm0 }
 0xc45   : > { %v4075_v40 = vsel %vm7504_vm13, %v3942_v12, 0.0  ;;  %v4073_v18 = vsel %vm7505_vm2, %v4053_v33, 0.0  ;;  %4107 = vadd.xlane.f32.xlu1 %v4106_v9 }
 0xc46   : > { %v3980_v36 = vpop.f32.mrf.mxu1  ;;  %v4074_v31 = vadd.f32 %v4073_v18, %v4072_v24 }
 0xc47   : > { %v4076_v63 = vsel %vm7506_vm6, %v3980_v36, 0.0 }
 0xc48   : > { %v4077_v13 = vadd.f32 %v4076_v63, %v4075_v40  ;;  %v4090_v42 = vadd.f32 %v4074_v31, %v6283_v50 }
 0xc4a   : > { %v4079_v52 = vadd.f32 %v4078_v57, %v4077_v13  ;;  %v7100_v16 = vadd.f32 %v5167_v53, %v4090_v42  ;;  %v7520_v42 = vld [vmem:[#allocation8_spill] sm:$0xff]  ;;  %v7521_v57 = vld [vmem:[#allocation6_spill] sm:$0xff] }
 0xc4b   : > { %v4020_v60 = vpop.f32.mrf.mxu2 }
 0xc4c   : > { %v3944_v8 = vpop.f32.mrf.mxu0  ;;  %v4109_v15 = vsel %vm7508_vm12, %v7100_v16, 0.0  ;;  %v4085_v46 = vsel %vm7512_vm1, %v4020_v60, 0.0 }
 0xc4d   : > { %v4056_v23 = vpop.f32.mrf.mxu3  ;;  %v4082_v45 = vsel %vm7509_vm9, %v3944_v8, 0.0  ;;  %4110 = vadd.xlane.f32.xlu2 %v4109_v15  ;;  %v5138_v8 = vld [vmem:[%s7370_s12 + $0x18] sm:$0xff] }
 0xc4e   : > { %v4080_v25 = vsel %vm7510_vm8, %v4056_v23, 0.0  ;;  %v3982_v0 = vpop.f32.mrf.mxu1  ;;  %4244 = vmatpush.bf16.msra.mxu0 %v5138_v8 }
 0xc4f   : > { %v4081_v4 = vadd.f32 %v4080_v25, %v4079_v52  ;;  %v4083_v50 = vsel %vm7511_vm0, %v3982_v0, 0.0  ;;  %v7522_v52 = vld [vmem:[#allocation2_spill] sm:$0xff] }
 0xc50   : > { %v4084_v44 = vadd.f32 %v4083_v50, %v4082_v45 }
 0xc51   : > { %v4091_v5 = vadd.f32 %v4081_v4, %v6288_v34 }
 0xc52   : > { %v4086_v56 = vadd.f32 %v4085_v46, %v4084_v44 }
 0xc53   : > { %v7109_v20 = vadd.f32 %v5167_v53, %v4091_v5 }
 0xc55   : > { %v4058_v14 = vpop.f32.mrf.mxu3  ;;  %v4112_v38 = vsel %vm7513_vm15, %v7109_v20, 0.0  ;;  %vm7527_vm15 = vmmov %vm7514_vm3 }
 0xc56   : > { %v4087_v47 = vsel %vm7514_vm3, %v4058_v14, 0.0  ;;  %4113 = vadd.xlane.f32.xlu0 %v4112_v38 }
 0xc57   : > { %v4088_v35 = vadd.f32 %v4087_v47, %v4086_v56 }
 0xc59   : > { %v4092_v28 = vadd.f32 %v4088_v35, %v6293_v29 }
 0xc5b   : > { %v7115_v54 = vadd.f32 %v5167_v53, %v4092_v28 }
 0xc5d   : > { %v4115_v34 = vsel %vm7515_vm11, %v7115_v54, 0.0 }
 0xc5e   : > { %4116 = vadd.xlane.f32.xlu1 %v4115_v34 }
 0xcb8   : > { %v4108_v51 = vpop.xlane.xlu1 %4107 }
 0xcb9   : > { %v4118_v7 = vmul.f32 %v4108_v51, %v5531_v32  ;;  %v5168_v51 = vld [vmem:[%s7368_s10 + $0x1] ss:$0 sm:$0xff] }
 0xcbb   : > { %v7121_v37 = vsub.f32 %v7091_v3, %v4118_v7 }
 0xcbd   : > { %v4126_v22 = vmul.f32 %v7121_v37, %v7121_v37 }
 0xcbf   : > { %v4130_v41 = vsel %vm7516_vm4, %v4126_v22, 0.0 }
 0xcc0   : > { %4131 = vadd.xlane.f32.xlu2 %v4130_v41  ;;  %v4111_v21 = vpop.xlane.xlu2 %4110 }
 0xcc1   : > { %v4119_v29 = vmul.f32 %v4111_v21, %v5531_v32 }
 0xcc3   : > { %v7128_v53 = vsub.f32 %v7100_v16, %v4119_v29 }
 0xcc5   : > { %v4127_v2 = vmul.f32 %v7128_v53, %v7128_v53 }
 0xcc7   : > { %v4133_v24 = vsel %vm7517_vm14, %v4127_v2, 0.0  ;;  %vm7529_vm14 = vmmov %vm7518_vm5 }
 0xcc8   : > { %4134 = vadd.xlane.f32.xlu0 %v4133_v24 }
 0xcc9   : > { %v4114_v12 = vpop.xlane.xlu0 %4113 }
 0xcca   : > { %v4120_v11 = vmul.f32 %v4114_v12, %v5531_v32  ;;  %v5169_v12 = vld [vmem:[%s7369_s11 + $0x1] ss:$0 sm:$0xff] }
 0xccc   : > { %v7135_v33 = vsub.f32 %v7109_v20, %v4120_v11 }
 0xcce   : > { %v4128_v9 = vmul.f32 %v7135_v33, %v7135_v33 }
 0xcd0   : > { %v4136_v40 = vsel %vm7518_vm5, %v4128_v9, 0.0  ;;  %vm1894_vm5 = vcmask 785408  }
 0xcd1   : > { %4137 = vadd.xlane.f32.xlu1 %v4136_v40  ;;  %v4117_v18 = vpop.xlane.xlu1 %4116 }
 0xcd2   : > { %v4121_v36 = vmul.f32 %v4117_v18, %v5531_v32 }
 0xcd4   : > { %v7142_v31 = vsub.f32 %v7115_v54, %v4121_v36 }
 0xcd6   : > { %v4129_v63 = vmul.f32 %v7142_v31, %v7142_v31 }
 0xcd8   : > { %v4139_v13 = vsel %vm7519_vm7, %v4129_v63, 0.0  ;;  %vm7530_vm7 = vcmask 523264  }
 0xcd9   : > { %4140 = vadd.xlane.f32.xlu2 %v4139_v13 }
 0xcdc   : > { %1842 = vrot.lane.b32.xlu0 %v5891_v1, %s5370_s23  ;;  %v7523_v1 = vld [vmem:[#allocation9_spill] sm:$0xff] }
 0xce4   : > { %1860 = vrot.lane.b32.xlu0 %v5907_v39, %s5371_s26  ;;  %v7524_v39 = vld [vmem:[#allocation12_spill] sm:$0xff] }
 0xcea   : > { %1844 = vrot.lane.b32.xlu1 %v6006_v10, %s5370_s23  ;;  %v7525_v10 = vld [vmem:[#allocation13_spill] sm:$0xff] }
 0xcec   : > { %1864 = vrot.lane.b32.xlu0 %v6140_v61, %s5371_s26 }
 0xcf1   : > { %1846 = vrot.lane.b32.xlu2 %v6057_v58, %s5370_s23 }
 0xcf2   : > { %1858 = vrot.lane.b32.xlu1 %v5898_v17, %s5371_s26  ;;  %v7526_v17 = vld [vmem:[#allocation16_spill] sm:$0xff] }
 0xcf4   : > { %1876 = vrot.lane.b32.xlu0 %v7520_v42, %s5372_s27 }
 0xcf9   : > { %1848 = vrot.lane.b32.xlu2 %v7521_v57, %s5370_s23 }
 0xcfa   : > { %1874 = vrot.lane.b32.xlu1 %v7522_v52, %s5372_s27 }
 0xcfc   : > { %3679 = vrot.lane.b32.xlu0 %v7028_v26, %s5370_s23 }
 0xd01   : > { %1862 = vrot.lane.b32.xlu2 %v7523_v1, %s5371_s26 }
 0xd02   : > { %3675 = vrot.lane.b32.xlu1 %v7524_v39, %s5370_s23 }
 0xd04   : > { %3691 = vrot.lane.b32.xlu0 %v7525_v10, %s5371_s26 }
 0xd09   : > { %3677 = vrot.lane.b32.xlu2 %v6961_v59, %s5370_s23  ;;  %v5137_v59 = vld [vmem:[%s7370_s12 + $0x10] sm:$0xff] }
 0xd0a   : > { %3681 = vrot.lane.b32.xlu1 %v7050_v55, %s5370_s23  ;;  %4245 = vmatpush.bf16.msra.mxu0 %v5137_v59 }
 0xd0c   : > { %3697 = vrot.lane.b32.xlu0 %v6993_v27, %s5371_s26 }
 0xd11   : > { %3693 = vrot.lane.b32.xlu2 %v7526_v17, %s5371_s26 }
 0xd12   : > { %3695 = vrot.lane.b32.xlu1 %v6881_v19, %s5371_s26  ;;  %s5078_s26 = sshll.u32 %s7568_s30, 6 }
 0xd13   : > { %s7196_s20 = scalar_lea.vmem %s7377_s19, %s5078_s26 }
 0xd33   : > { %v4132_v58 = vpop.xlane.xlu2 %4131 }
 0xd34   : > { %v4142_v61 = vmul.f32 %v4132_v58, %v5531_v32 }
 0xd36   : > { %v4146_v26 = vadd.f32 1e-05, %v4142_v61 }
 0xd38   : > { %5336 = vrsqrt.f32 %v4146_v26  ;;  %vm4156_vm2 = vweird.f32 %v4146_v26 }
 0xd3b   : > { %v4135_v55 = vpop.xlane.xlu0 %4134 }
 0xd3c   : > { %v4143_v27 = vmul.f32 %v4135_v55, %v5531_v32 }
 0xd3e   : > { %v5337_v23 = vpop.eup %5336  ;;  %v4147_v19 = vadd.f32 1e-05, %v4143_v27 }
 0xd3f   : > { %v4151_v15 = vmul.f32 %v5337_v23, %v4146_v26  ;;  %vm4157_vm13 = vweird.f32 %v5337_v23 }
 0xd40   : > { %5338 = vrsqrt.f32 %v4147_v19  ;;  %vm4158_vm6 = vmor %vm4156_vm2, %vm4157_vm13  ;;  %vm4166_vm12 = vweird.f32 %v4147_v19 }
 0xd41   : > { %v4152_v45 = vmul.f32 %v5337_v23, %v4151_v15  ;;  %vm7532_vm13 = vmmov %vm7529_vm14 }
 0xd42   : > { %vm7533_vm2 = vmmov %vm7532_vm13 }
 0xd43   : > { %v4153_v25 = vmul.f32 0.5, %v4152_v45 }
 0xd44   : > { %v4138_v0 = vpop.xlane.xlu1 %4137 }
 0xd45   : > { %v4144_v60 = vmul.f32 %v4138_v0, %v5531_v32  ;;  %v4154_v4 = vsub.f32 1.5, %v4153_v25 }
 0xd46   : > { %v5339_v50 = vpop.eup %5338 }
 0xd47   : > { %v4148_v44 = vadd.f32 1e-05, %v4144_v60  ;;  %v4155_v5 = vmul.f32 %v5337_v23, %v4154_v4  ;;  %v4161_v46 = vmul.f32 %v5339_v50, %v4147_v19  ;;  %vm4167_vm10 = vweird.f32 %v5339_v50 }
 0xd48   : > { %vm4168_vm9 = vmor %vm4166_vm12, %vm4167_vm10 }
 0xd49   : > { %5340 = vrsqrt.f32 %v4148_v44  ;;  %v4162_v56 = vmul.f32 %v5339_v50, %v4161_v46  ;;  %v4159_v14 = vsel %vm4158_vm6, %v5337_v23, %v4155_v5  ;;  %vm4176_vm0 = vweird.f32 %v4148_v44  ;;  %v7528_v23 = vld [vmem:[#allocation4_spill] sm:$0xff]  ;;  %vm7534_vm6 = vmmov %vm7530_vm7 }
 0xd4a   : > { %v4190_v7 = vmul.f32 %v4159_v14, %v7121_v37  ;;  %v5142_v14 = vld [vmem:[%s7372_s14 + $0x38] sm:$0xff]  ;;  %vm7535_vm10 = vmmov %vm7534_vm6 }
 0xd4b   : > { %v4163_v38 = vmul.f32 0.5, %v4162_v56  ;;  %4338 = vmatpush.bf16.msrb.mxu1 %v5142_v14  ;;  %vm7536_vm12 = vmmov %vm7534_vm6 }
 0xd4c   : > { %v4141_v47 = vpop.xlane.xlu2 %4140  ;;  %v4197_v11 = vmul.f32 %v5168_v51, %v4190_v7  ;;  %v5139_v7 = vld [vmem:[%s7372_s14 + $0x20] sm:$0xff] }
 0xd4d   : > { %v4145_v35 = vmul.f32 %v4141_v47, %v5531_v32  ;;  %v4164_v28 = vsub.f32 1.5, %v4163_v38  ;;  %v5141_v38 = vld [vmem:[%s7372_s14 + $0x30] sm:$0xff]  ;;  %v5170_v47 = vld [vmem:[%s7371_s13 + $0x1] ss:$0 sm:$0xff] }
 0xd4e   : > { %v1843_v41 = vpop.permute.xlu0 %1842  ;;  %v4204_v63 = vadd.f32 %v5169_v12, %v4197_v11 }
 0xd4f   : > { %v5341_v34 = vpop.eup %5340  ;;  %v4149_v22 = vadd.f32 1e-05, %v4145_v35  ;;  %v4165_v21 = vmul.f32 %v5339_v50, %v4164_v28  ;;  %4339 = vmatpush.bf16.msrb.mxu1 %v5141_v38  ;;  %v5140_v28 = vld [vmem:[%s7372_s14 + $0x28] sm:$0xff] }
 0xd50   : > { %v4171_v29 = vmul.f32 %v5341_v34, %v4148_v44  ;;  %vm4177_vm8 = vweird.f32 %v5341_v34 }
 0xd51   : > { %5342 = vrsqrt.f32 %v4149_v22  ;;  %v4169_v2 = vsel %vm4168_vm9, %v5339_v50, %v4165_v21  ;;  %vm4178_vm1 = vmor %vm4176_vm0, %vm4177_vm8  ;;  %vm4186_vm11 = vweird.f32 %v4149_v22  ;;  %v7531_v50 = vld [vmem:[#allocation3_spill] sm:$0xff] }
 0xd52   : > { %v4172_v24 = vmul.f32 %v5341_v34, %v4171_v29  ;;  %v4191_v9 = vmul.f32 %v4169_v2, %v7128_v53  ;;  %v1886_v44 = vsel %vm7532_vm13, %v7531_v50, %v1843_v41  ;;  %vm7537_vm9 = vmmov %vm7533_vm2 }
 0xd53   : > { %4340 = vmatpush.bf16.msrb.mxu1 %v5140_v28  ;;  %vm7538_vm8 = vmmov %vm7533_vm2 }
 0xd54   : > { %v4173_v40 = vmul.f32 0.5, %v4172_v24  ;;  %v4198_v18 = vmul.f32 %v5168_v51, %v4191_v9  ;;  %vm7539_vm0 = vmmov %vm7533_vm2 }
 0xd55   : > { %vm7552_vm13 = vmmov %vm7539_vm0 }
 0xd56   : > { %v4174_v36 = vsub.f32 1.5, %v4173_v40  ;;  %v4205_v13 = vadd.f32 %v5169_v12, %v4198_v18  ;;  %v1861_v42 = vpop.permute.xlu0 %1860 }
 0xd57   : > { %v5343_v37 = vpop.eup %5342  ;;  %4341 = vmatpush.bf16.msrb.mxu1 %v5139_v7 }
 0xd58   : > { %v4175_v57 = vmul.f32 %v5341_v34, %v4174_v36  ;;  %v4181_v52 = vmul.f32 %v5343_v37, %v4149_v22  ;;  %v4208_v1 = vpack.c.bf16 %v4205_v13, %v4204_v63  ;;  %vm4187_vm3 = vweird.f32 %v5343_v37 }
 0xd59   : > { %vm4188_vm4 = vmor %vm4186_vm11, %vm4187_vm3 }
 0xd5a   : > { %v4182_v39 = vmul.f32 %v5343_v37, %v4181_v52  ;;  %5045 = vmatmul.msk.bf16.vlgmr.msra.gmra.mxu0 %vm7527_vm15, %v4208_v1  ;;  %v4179_v10 = vsel %vm4178_vm1, %v5341_v34, %v4175_v57  ;;  %vm7540_vm1 = vmmov %vm7539_vm0 }
 0xd5b   : > { %v4192_v61 = vmul.f32 %v4179_v10, %v7135_v33  ;;  %vm7544_vm15 = vmmov %vm7539_vm0 }
 0xd5c   : > { %v4183_v17 = vmul.f32 0.5, %v4182_v39  ;;  %v1845_v53 = vpop.permute.xlu1 %1844  ;;  %vm7546_vm3 = vmmov %vm7539_vm0 }
 0xd5d   : > { %v4199_v27 = vmul.f32 %v5168_v51, %v4192_v61  ;;  %v1887_v19 = vsel %vm7529_vm14, %v7528_v23, %v1845_v53  ;;  %vm7547_vm11 = vmmov %vm7539_vm0 }
 0xd5e   : > { %v4184_v58 = vsub.f32 1.5, %v4183_v17  ;;  %v7187_v26 = vpop.permute.xlu0 %1864  ;;  %v1891_v25 = vsel %vm7530_vm7, %v1887_v19, %v1861_v42  ;;  %vm7549_vm14 = vmmov %vm7539_vm0 }
 0xd5f   : > { %v4206_v0 = vadd.f32 %v5169_v12, %v4199_v27  ;;  %vm7550_vm7 = vmmov %vm7539_vm0 }
 0xd60   : > { %v4185_v8 = vmul.f32 %v5343_v37, %v4184_v58 }
 0xd62   : > { %v4189_v59 = vsel %vm4188_vm4, %v5343_v37, %v4185_v8  ;;  %vm7548_vm4 = vmmov %vm7534_vm6 }
 0xd63   : > { %v4193_v55 = vmul.f32 %v4189_v59, %v7142_v31 }
 0xd64   : > { %v1859_v15 = vpop.permute.xlu1 %1858 }
 0xd65   : > { %v4200_v45 = vmul.f32 %v5168_v51, %v4193_v55  ;;  %v1890_v5 = vsel %vm7534_vm6, %v1886_v44, %v1859_v15  ;;  %vm7555_vm6 = vmmov %vm7539_vm0 }
 0xd66   : > { %v1877_v33 = vpop.permute.xlu0 %1876 }
 0xd67   : > { %v4207_v60 = vadd.f32 %v5169_v12, %v4200_v45  ;;  %v1896_v31 = vsel %vm1894_vm5, %v1891_v25, %v1877_v33 }
 0xd68   : > { %1900 = vst [vmem:[%s7196_s20 + $0x8] sm:$0xff] %v1896_v31 }
 0xd69   : > { %v4209_v4 = vpack.c.bf16 %v4207_v60, %v4206_v0 }
 0xd6b   : > { %5046 = vmatmul.msk.bf16.gmra.mxu0 %vm7533_vm2, %v4209_v4  ;;  %vm7553_vm2 = vmmov %vm7548_vm4 }
 0xd6c   : > { %v1875_v46 = vpop.permute.xlu1 %1874 }
 0xd6d   : > { %v1895_v56 = vsel %vm1894_vm5, %v1890_v5, %v1875_v46 }
 0xd6e   : > { %1899 = vst [vmem:[%s7196_s20] sm:$0xff] %v1895_v56  ;;  %v5171_v56 = vld [vmem:[%s7373_s15 + $0x1] ss:$0 sm:$0xff] }
 0xdd7   : > { %v4247_v35 = vpop.f32.mrf.mxu0 }
 0xdd8   : > { %v4248_v34 = vadd.f32 %v5170_v47, %v4247_v35 }
 0xdda   : > { %v4257_v51 = vmul.f32 %v4248_v34, %v4248_v34 }
 0xddc   : > { %v4261_v22 = vmul.f32 %v4257_v51, %v4248_v34 }
 0xdde   : > { %v4265_v41 = vmul.f32 0.044715, %v4261_v22 }
 0xddf   : > { %v4249_v21 = vpop.f32.mrf.mxu0 }
 0xde0   : > { %v4269_v29 = vadd.f32 %v4265_v41, %v4248_v34  ;;  %v4250_v2 = vadd.f32 %v5170_v47, %v4249_v21 }
 0xde2   : > { %v4273_v24 = vmul.f32 0.7978846, %v4269_v29  ;;  %v4258_v12 = vmul.f32 %v4250_v2, %v4250_v2 }
 0xde4   : > { %v4262_v11 = vmul.f32 %v4258_v12, %v4250_v2  ;;  %5344 = vtanh.f32 %v4273_v24 }
 0xde6   : > { %v4266_v9 = vmul.f32 0.044715, %v4262_v11  ;;  %v7542_v11 = vld [vmem:[#allocation11_spill] sm:$0xff] }
 0xde8   : > { %v4252_v40 = vpop.f32.mrf.mxu0  ;;  %v4270_v18 = vadd.f32 %v4266_v9, %v4250_v2  ;;  %v7543_v9 = vld [vmem:[#allocation14_spill] sm:$0xff] }
 0xde9   : > { %v4253_v36 = vadd.f32 %v5170_v47, %v4252_v40 }
 0xdea   : > { %v4274_v37 = vmul.f32 0.7978846, %v4270_v18  ;;  %v5345_v13 = vpop.eup %5344  ;;  %v7241_v18 = vpop.permute.xlu0 %3679 }
 0xdeb   : > { %v4259_v63 = vmul.f32 %v4253_v36, %v4253_v36  ;;  %v4281_v52 = vadd.f32 1.0, %v5345_v13 }
 0xdec   : > { %5346 = vtanh.f32 %v4274_v37 }
 0xded   : > { %v4263_v42 = vmul.f32 %v4259_v63, %v4253_v36  ;;  %v4285_v61 = vmul.f32 0.5, %v4281_v52 }
 0xdef   : > { %v4267_v57 = vmul.f32 0.044715, %v4263_v42  ;;  %v4289_v23 = vmul.f32 %v4285_v61, %v4248_v34 }
 0xdf0   : > { %v4254_v1 = vpop.f32.mrf.mxu0 }
 0xdf1   : > { %v4271_v39 = vadd.f32 %v4267_v57, %v4253_v36  ;;  %v4255_v10 = vadd.f32 %v5170_v47, %v4254_v1 }
 0xdf2   : > { %v5347_v17 = vpop.eup %5346  ;;  %v3692_v37 = vpop.permute.xlu0 %3691 }
 0xdf3   : > { %v4275_v53 = vmul.f32 0.7978846, %v4271_v39  ;;  %v4260_v58 = vmul.f32 %v4255_v10, %v4255_v10  ;;  %v4282_v8 = vadd.f32 1.0, %v5347_v17 }
 0xdf5   : > { %v4264_v59 = vmul.f32 %v4260_v58, %v4255_v10  ;;  %v4286_v55 = vmul.f32 0.5, %v4282_v8  ;;  %5348 = vtanh.f32 %v4275_v53 }
 0xdf7   : > { %v4268_v27 = vmul.f32 0.044715, %v4264_v59  ;;  %v4290_v19 = vmul.f32 %v4286_v55, %v4250_v2  ;;  %v7545_v55 = vld [vmem:[#allocation5_spill] sm:$0xff] }
 0xdf9   : > { %v4272_v15 = vadd.f32 %v4268_v27, %v4255_v10  ;;  %v4293_v45 = vpack.c.bf16 %v4290_v19, %v4289_v23 }
 0xdfa   : > { %v7245_v13 = vpop.permute.xlu0 %3697 }
 0xdfb   : > { %v4276_v33 = vmul.f32 0.7978846, %v4272_v15  ;;  %5071 = vmatmul.msk.bf16.vlgmr.msrb.gmra.mxu1 %vm7535_vm10, %v4293_v45  ;;  %v5349_v25 = vpop.eup %5348  ;;  %vm7556_vm10 = vmmov %vm7553_vm2 }
 0xdfc   : > { %v4283_v0 = vadd.f32 1.0, %v5349_v25 }
 0xdfd   : > { %5350 = vtanh.f32 %v4276_v33 }
 0xdfe   : > { %v4287_v31 = vmul.f32 0.5, %v4283_v0 }
 0xe00   : > { %v4291_v44 = vmul.f32 %v4287_v31, %v4253_v36 }
 0xe03   : > { %v5351_v60 = vpop.eup %5350 }
 0xe04   : > { %v4284_v4 = vadd.f32 1.0, %v5351_v60 }
 0xe06   : > { %v4288_v50 = vmul.f32 0.5, %v4284_v4 }
 0xe08   : > { %v4292_v5 = vmul.f32 %v4288_v50, %v4255_v10 }
 0xe0a   : > { %v4294_v46 = vpack.c.bf16 %v4292_v5, %v4291_v44 }
 0xe0c   : > { %5072 = vmatmul.msk.bf16.gmra.mxu1 %vm7536_vm12, %v4294_v46 }
 0xe78   : > { %v4343_v14 = vpop.f32.mrf.mxu1 }
 0xe79   : > { %v4353_v38 = vadd.f32 %v4343_v14, %v7091_v3 }
 0xe7b   : > { %v4362_v47 = vadd.f32 %v5171_v56, %v4353_v38 }
 0xe7d   : > { %v4368_v35 = vsel %vm7537_vm9, %v4362_v47, 0.0 }
 0xe7e   : > { %4369 = vadd.xlane.f32.xlu0 %v4368_v35 }
 0xe80   : > { %v4345_v28 = vpop.f32.mrf.mxu1 }
 0xe81   : > { %v4354_v34 = vadd.f32 %v4345_v28, %v7100_v16  ;;  %v7541_v16 = vld [vmem:[#allocation10_spill] sm:$0xff]  ;;  %v7554_v28 = vld [vmem:[#allocation15_spill] sm:$0xff] }
 0xe83   : > { %v4363_v51 = vadd.f32 %v5171_v56, %v4354_v34 }
 0xe85   : > { %v4371_v7 = vsel %vm7538_vm8, %v4363_v51, 0.0 }
 0xe86   : > { %4372 = vadd.xlane.f32.xlu2 %v4371_v7 }
 0xe89   : > { %v4348_v22 = vpop.f32.mrf.mxu1 }
 0xe8a   : > { %v4355_v41 = vadd.f32 %v4348_v22, %v7109_v20  ;;  %v1847_v20 = vpop.permute.xlu2 %1846 }
 0xe8b   : > { %v1888_v27 = vsel %vm7546_vm3, %v7545_v55, %v1847_v20 }
 0xe8c   : > { %v4364_v21 = vadd.f32 %v5171_v56, %v4355_v41 }
 0xe8e   : > { %v4374_v29 = vsel %vm7539_vm0, %v4364_v21, 0.0 }
 0xe8f   : > { %4375 = vadd.xlane.f32.xlu1 %v4374_v29 }
 0xe91   : > { %v4350_v2 = vpop.f32.mrf.mxu1 }
 0xe92   : > { %v4356_v3 = vadd.f32 %v4350_v2, %v7115_v54  ;;  %v1849_v40 = vpop.permute.xlu2 %1848  ;;  %v3676_v54 = vpop.permute.xlu1 %3675 }
 0xe93   : > { %v3719_v34 = vsel %vm7555_vm6, %v7554_v28, %v3676_v54  ;;  %vm7562_vm6 = vmmov %vm7539_vm0 }
 0xe94   : > { %v4365_v24 = vadd.f32 %v5171_v56, %v4356_v3  ;;  %v7551_v56 = vld [vmem:[#allocation7_spill] sm:$0xff] }
 0xe95   : > { %v1889_v14 = vsel %vm7552_vm13, %v7551_v56, %v1849_v40 }
 0xe96   : > { %v4377_v12 = vsel %vm7540_vm1, %v4365_v24, 0.0  ;;  %v1893_v38 = vsel %vm7553_vm2, %v1889_v14, %v7187_v26 }
 0xe97   : > { %4378 = vadd.xlane.f32.xlu0 %v4377_v12 }
 0xe9a   : > { %v1863_v36 = vpop.permute.xlu2 %1862  ;;  %v7247_v42 = vpop.permute.xlu1 %3681 }
 0xe9b   : > { %v1892_v19 = vsel %vm7548_vm4, %v1888_v27, %v1863_v36  ;;  %v3722_v55 = vsel %vm7539_vm0, %v7047_v49, %v7247_v42 }
 0xe9e   : > { %1878 = vrot.lane.b32.xlu2 %v7541_v16, %s5372_s27 }
 0xea2   : > { %v7243_v63 = vpop.permute.xlu2 %3677  ;;  %v7257_v53 = vpop.permute.xlu1 %3695 }
 0xea8   : > { %1880 = vrot.lane.b32.xlu1 %v7542_v11, %s5372_s27 }
 0xeaa   : > { %v7249_v57 = vpop.permute.xlu2 %3693 }
 0xeab   : > { %3707 = vrot.lane.b32.xlu0 %v7543_v9, %s5372_s27 }
 0xef1   : > { %v4370_v52 = vpop.xlane.xlu0 %4369 }
 0xef2   : > { %v4380_v1 = vmul.f32 %v4370_v52, %v5531_v32 }
 0xef4   : > { %v7252_v39 = vsub.f32 %v4362_v47, %v4380_v1  ;;  %v5173_v1 = vld [vmem:[%s7375_s17] ss:$0 sm:$0xff] }
 0xef6   : > { %v4388_v10 = vmul.f32 %v7252_v39, %v7252_v39 }
 0xef8   : > { %v4392_v17 = vsel %vm7544_vm15, %v4388_v10, 0.0  ;;  %vm7558_vm15 = vmmov %vm7553_vm2 }
 0xef9   : > { %4393 = vadd.xlane.f32.xlu2 %v4392_v17  ;;  %v4373_v58 = vpop.xlane.xlu2 %4372 }
 0xefa   : > { %v4381_v61 = vmul.f32 %v4373_v58, %v5531_v32 }
 0xefc   : > { %v7260_v8 = vsub.f32 %v4363_v51, %v4381_v61  ;;  %v3723_v51 = vsel %vm7556_vm10, %v3719_v34, %v3692_v37  ;;  %v7305_v37 = vld [vmem:[%s7374_s16] ss:$0 sm:$0xff] }
 0xefe   : > { %v4389_v59 = vmul.f32 %v7260_v8, %v7260_v8 }
 0xf00   : > { %v4395_v23 = vsel %vm7547_vm11, %v4389_v59, 0.0  ;;  %vm7559_vm11 = vmmov %vm7539_vm0 }
 0xf01   : > { %v1879_v15 = vpop.permute.xlu2 %1878  ;;  %4396 = vadd.xlane.f32.xlu0 %v4395_v23  ;;  %v3726_v23 = vsel %vm7558_vm15, %v3722_v55, %v7245_v13 }
 0xf02   : > { %v4376_v45 = vpop.xlane.xlu1 %4375  ;;  %v1897_v33 = vsel %vm1894_vm5, %v1892_v19, %v1879_v15 }
 0xf03   : > { %v4382_v25 = vmul.f32 %v4376_v45, %v5531_v32  ;;  %1901 = vst [vmem:[%s7196_s20 + $0x10] sm:$0xff] %v1897_v33 }
 0xf05   : > { %v7271_v0 = vsub.f32 %v4364_v21, %v4382_v25 }
 0xf07   : > { %v4390_v60 = vmul.f32 %v7271_v0, %v7271_v0 }
 0xf09   : > { %v4398_v31 = vsel %vm7549_vm14, %v4390_v60, 0.0  ;;  %vm7560_vm14 = vmmov %vm7539_vm0 }
 0xf0a   : > { %v4379_v4 = vpop.xlane.xlu0 %4378  ;;  %4399 = vadd.xlane.f32.xlu1 %v4398_v31  ;;  %v3720_v13 = vsel %vm7560_vm14, %v6867_v6, %v7243_v63 }
 0xf0b   : > { %v4383_v50 = vmul.f32 %v4379_v4, %v5531_v32 }
 0xf0d   : > { %v7277_v44 = vsub.f32 %v4365_v24, %v4383_v50 }
 0xf0f   : > { %v4391_v5 = vmul.f32 %v7277_v44, %v7277_v44 }
 0xf11   : > { %v4401_v46 = vsel %vm7550_vm7, %v4391_v5, 0.0  ;;  %vm7561_vm7 = vmmov %vm7553_vm2 }
 0xf12   : > { %4402 = vadd.xlane.f32.xlu2 %v4401_v46  ;;  %v3724_v31 = vsel %vm7561_vm7, %v3720_v13, %v7249_v57 }
 0xf15   : > { %3713 = vrot.lane.b32.xlu0 %v7040_v30, %s5372_s27 }
 0xf1a   : > { %v1881_v47 = vpop.permute.xlu1 %1880 }
 0xf1b   : > { %v1898_v35 = vsel %vm1894_vm5, %v1893_v38, %v1881_v47 }
 0xf1c   : > { %1902 = vst [vmem:[%s7196_s20 + $0x18] sm:$0xff] %v1898_v35 }
 0xf1d   : > { %v3708_v7 = vpop.permute.xlu0 %3707 }
 0xf1e   : > { %v3727_v22 = vsel %vm1894_vm5, %v3723_v51, %v3708_v7 }
 0xf1f   : > { %4997 = vst [vmem:[%s7196_s20 + $0x20] sm:$0xff] %v3727_v22 }
 0xf23   : > { %3711 = vrot.lane.b32.xlu1 %v7007_v62, %s5372_s27 }
 0xf2a   : > { %3709 = vrot.lane.b32.xlu2 %v6904_v43, %s5372_s27 }
 0xf6c   : > { %v4394_v30 = vpop.xlane.xlu2 %4393 }
 0xf6d   : > { %v4404_v26 = vmul.f32 %v4394_v30, %v5531_v32 }
 0xf6f   : > { %v4408_v41 = vadd.f32 1e-05, %v4404_v26 }
 0xf71   : > { %5352 = vrsqrt.f32 %v4408_v41  ;;  %vm4418_vm9 = vweird.f32 %v4408_v41 }
 0xf74   : > { %v4397_v21 = vpop.xlane.xlu0 %4396 }
 0xf75   : > { %v4405_v29 = vmul.f32 %v4397_v21, %v5531_v32 }
 0xf77   : > { %v5353_v2 = vpop.eup %5352  ;;  %v4409_v3 = vadd.f32 1e-05, %v4405_v29 }
 0xf78   : > { %v4413_v24 = vmul.f32 %v5353_v2, %v4408_v41  ;;  %vm4419_vm12 = vweird.f32 %v5353_v2 }
 0xf79   : > { %5354 = vrsqrt.f32 %v4409_v3  ;;  %vm4420_vm8 = vmor %vm4418_vm9, %vm4419_vm12  ;;  %vm4428_vm3 = vweird.f32 %v4409_v3 }
 0xf7a   : > { %v4414_v12 = vmul.f32 %v5353_v2, %v4413_v24  ;;  %vm7563_vm12 = vmmov %vm7539_vm0 }
 0xf7b   : > { %vm7564_vm9 = vmmov %vm7561_vm7 }
 0xf7c   : > { %v4415_v16 = vmul.f32 0.5, %v4414_v12 }
 0xf7d   : > { %v4400_v11 = vpop.xlane.xlu1 %4399 }
 0xf7e   : > { %v4406_v62 = vmul.f32 %v4400_v11, %v5531_v32  ;;  %v4416_v9 = vsub.f32 1.5, %v4415_v16 }
 0xf7f   : > { %v5355_v43 = vpop.eup %5354 }
 0xf80   : > { %v4410_v20 = vadd.f32 1e-05, %v4406_v62  ;;  %v4417_v40 = vmul.f32 %v5353_v2, %v4416_v9  ;;  %v4423_v36 = vmul.f32 %v5355_v43, %v4409_v3  ;;  %vm4429_vm1 = vweird.f32 %v5355_v43 }
 0xf81   : > { %vm4430_vm4 = vmor %vm4428_vm3, %vm4429_vm1 }
 0xf82   : > { %5356 = vrsqrt.f32 %v4410_v20  ;;  %v4421_v54 = vsel %vm4420_vm8, %v5353_v2, %v4417_v40  ;;  %v4424_v52 = vmul.f32 %v5355_v43, %v4423_v36  ;;  %vm4438_vm2 = vweird.f32 %v4410_v20  ;;  %vm7565_vm1 = vmmov %vm7562_vm6 }
 0xf83   : > { %v4452_v10 = vmul.f32 %v4421_v54, %v7252_v39  ;;  %vm7566_vm3 = vmmov %vm7565_vm1 }
 0xf84   : > { %v4425_v17 = vmul.f32 0.5, %v4424_v52 }
 0xf85   : > { %v4403_v58 = vpop.xlane.xlu2 %4402  ;;  %v4459_v61 = vmul.f32 %v7305_v37, %v4452_v10 }
 0xf86   : > { %v4407_v59 = vmul.f32 %v4403_v58, %v5531_v32  ;;  %v4426_v27 = vsub.f32 1.5, %v4425_v17 }
 0xf87   : > { %v4466_v19 = vadd.f32 %v5173_v1, %v4459_v61  ;;  %v3714_v15 = vpop.permute.xlu0 %3713 }
 0xf88   : > { %v5357_v39 = vpop.eup %5356  ;;  %v4411_v32 = vadd.f32 1e-05, %v4407_v59  ;;  %v4427_v45 = vmul.f32 %v5355_v43, %v4426_v27  ;;  %v3730_v25 = vsel %vm1894_vm5, %v3726_v23, %v3714_v15 }
 0xf89   : > { %v4433_v33 = vmul.f32 %v5357_v39, %v4410_v20  ;;  %4470 = vst.msk [vmem:[%s7318_s24] sm:$0xff] %vm7559_vm11, %v4466_v19  ;;  %vm4439_vm13 = vweird.f32 %v5357_v39 }
 0xf8a   : > { %5358 = vrsqrt.f32 %v4411_v32  ;;  %v4431_v49 = vsel %vm4430_vm4, %v5355_v43, %v4427_v45  ;;  %5000 = vst [vmem:[%s7196_s20 + $0x38] sm:$0xff] %v3730_v25  ;;  %vm4440_vm10 = vmor %vm4438_vm2, %vm4439_vm13  ;;  %vm4448_vm0 = vweird.f32 %v4411_v32 }
 0xf8b   : > { %v4434_v42 = vmul.f32 %v5357_v39, %v4433_v33  ;;  %v4453_v60 = vmul.f32 %v4431_v49, %v7260_v8  ;;  %v3721_v8 = vsel %vm7563_vm12, %v7025_v48, %v7241_v18 }
 0xf8c   : > { %v3725_v28 = vsel %vm7564_vm9, %v3721_v8, %v7257_v53 }
 0xf8d   : > { %v4435_v4 = vmul.f32 0.5, %v4434_v42  ;;  %v3710_v50 = vpop.permute.xlu2 %3709  ;;  %v4460_v5 = vmul.f32 %v7305_v37, %v4453_v60 }
 0xf8e   : > { %v3728_v46 = vsel %vm1894_vm5, %v3724_v31, %v3710_v50 }
 0xf8f   : > { %v4436_v56 = vsub.f32 1.5, %v4435_v4  ;;  %4998 = vst [vmem:[%s7196_s20 + $0x28] sm:$0xff] %v3728_v46  ;;  %v4467_v38 = vadd.f32 %v5173_v1, %v4460_v5 }
 0xf90   : > { %v5359_v14 = vpop.eup %5358 }
 0xf91   : > { %v4437_v47 = vmul.f32 %v5357_v39, %v4436_v56  ;;  %v4443_v6 = vmul.f32 %v5359_v14, %v4411_v32  ;;  %4471 = vst.msk [vmem:[%s7318_s24 + $0x8] sm:$0xff] %vm7562_vm6, %v4467_v38  ;;  %vm4449_vm8 = vweird.f32 %v5359_v14 }
 0xf92   : > { %vm4450_vm15 = vmor %vm4448_vm0, %vm4449_vm8 }
 0xf93   : > { %v4441_v63 = vsel %vm4440_vm10, %v5357_v39, %v4437_v47  ;;  %v4444_v57 = vmul.f32 %v5359_v14, %v4443_v6 }
 0xf94   : > { %v4454_v35 = vmul.f32 %v4441_v63, %v7271_v0 }
 0xf95   : > { %v4445_v34 = vmul.f32 0.5, %v4444_v57  ;;  %v3712_v51 = vpop.permute.xlu1 %3711 }
 0xf96   : > { %v4461_v7 = vmul.f32 %v7305_v37, %v4454_v35  ;;  %v3729_v22 = vsel %vm1894_vm5, %v3725_v28, %v3712_v51 }
 0xf97   : > { %v4446_v30 = vsub.f32 1.5, %v4445_v34  ;;  %4999 = vst [vmem:[%s7196_s20 + $0x30] sm:$0xff] %v3729_v22 }
 0xf98   : > { %v4468_v26 = vadd.f32 %v5173_v1, %v4461_v7 }
 0xf99   : > { %v4447_v41 = vmul.f32 %v5359_v14, %v4446_v30 }
 0xf9a   : > { %4472 = vst.msk [vmem:[%s7318_s24 + $0x10] sm:$0xff] %vm7565_vm1, %v4468_v26 }
 0xf9b   : > { %v4451_v48 = vsel %vm4450_vm15, %v5359_v14, %v4447_v41 }
 0xf9c   : > { %v4455_v18 = vmul.f32 %v4451_v48, %v7277_v44 }
 0xf9e   : > { %v4462_v53 = vmul.f32 %v7305_v37, %v4455_v18 }
 0xfa0   : > { %v4469_v0 = vadd.f32 %v5173_v1, %v4462_v53 }
 0xfa2   : > { %4473 = vst.msk [vmem:[%s7318_s24 + $0x18] sm:$0xff] %vm7566_vm3, %v4469_v0 }
 0xfa3 PF: > { %s30_s0 = sadd.s32 1, %s5366_s0  }
 0xfa4   : > { %p27_p4 = scmp.ge.s32.totalorder %s30_s0, 4  }
 0xfa6   :  { %29 = sbr.rel (!%p27_p4) target bundleno = 5 (0x5), region = 148 }

</bundles_post_ra>
